<compile_context>
chip_gen: v7x
topology: tpu7x:2x2x1
jax: 0.10.0
libtpu: 0.0.40
codegen_flags: <defaults>
</compile_context>

<pallas_src>
import math

import jax
import jax.numpy as jnp
import numpy as np
from jax.experimental import pallas as pl
from jax.experimental.pallas import tpu as pltpu


def calculate_theta2(d):
    """Numeric equivalent of the sympy/scipy reference: Bernstein-beta coefficients
    in increasing power order (matches the torch module)."""
    thetas = []
    for i in range(d + 1):
        beta = math.factorial(i) * math.factorial(d - i) / math.factorial(d + 1)
        coeffs = [0.0] * (d + 1)
        for j in range(d - i + 1):
            coeffs[i + j] += math.comb(d - i, j) * ((-1.0) ** j) / (2.0 ** (i + j)) / beta
        thetas.append(coeffs)
    return thetas


def make_adagnn_kernel(thetas, h_feats):
    """thetas: 3 rows of 3 python floats (baked in as constants)."""
    assert all(len(t) == 3 for t in thetas), "module uses K=3 (d=2) PolyConv filters"

    def kernel(x_ref, at_ref, dinv_ref,
               w1_ref, b1_ref, w2_ref, b2_ref,
               diag1_ref, wl1_ref, bl1_ref,
               diag2_ref, wl2_ref, bl2_ref,
               diag3_ref, wl3_ref, bl3_ref,
               w3p_ref, b3p_ref, w4p_ref, b4p_ref,
               out_ref):
        f32 = jnp.float32
        x = x_ref[...]
        dinv = dinv_ref[...]                      # (N,1) f32, in_degree^-1/2, clamp(min=1)

        # --- MLP front end (dropout = identity in eval mode) ----------------------
        h = jnp.dot(x, w1_ref[...], preferred_element_type=f32) + b1_ref[...]
        h = jnp.maximum(h, 0.0)
        h = jnp.dot(h, w2_ref[...], preferred_element_type=f32) + b2_ref[...]
        h = jnp.maximum(h, 0.0)                   # (N,F) f32

        at = at_ref[...]                          # (N,N) bf16, exact 0/1, AT[dst,src]

        def prop(f):
            # D^-1/2 A^T D^-1/2 f  (DGL copy_src + sum over in-edges).
            # bf16 MXU matmul with f32 accumulation; dinv scaling stays f32 on the VPU.
            rhs = (f * dinv).astype(jnp.bfloat16)
            return jnp.dot(at, rhs, preferred_element_type=f32) * dinv

        # Shared propagations across the three PolyConv layers (6 -> 2 matmuls).
        p1 = prop(h)
        p2 = prop(p1)

        def polyconv(theta, diag_ref, wl_ref, bl_ref):
            d0 = diag_ref[0:1, :]
            d1 = diag_ref[1:2, :]
            d2 = diag_ref[2:3, :]
            out = jnp.dot(theta[0] * h * d0, wl_ref[...],
                          preferred_element_type=f32) + bl_ref[...]
            feat1 = h - p1 * d1
            out = out + theta[1] * feat1
            # prop(feat1) = p1 - p2 * d1 because d1 is a per-feature row scale.
            feat2 = feat1 - (p1 - p2 * d1) * d2
            out = out + theta[2] * feat2
            return out

        h0 = polyconv(thetas[0], diag1_ref, wl1_ref, bl1_ref)
        h1 = polyconv(thetas[1], diag2_ref, wl2_ref, bl2_ref)
        h2 = polyconv(thetas[2], diag3_ref, wl3_ref, bl3_ref)

        # h_final @ W3 without lane-concatenating h0/h1/h2: three partial matmuls
        # against static row blocks of the zero-padded W3, summed in f32.
        acc = jnp.dot(h0, w3p_ref[0:h_feats, :], preferred_element_type=f32)
        acc = acc + jnp.dot(h1, w3p_ref[h_feats:2 * h_feats, :],
                            preferred_element_type=f32)
        acc = acc + jnp.dot(h2, w3p_ref[2 * h_feats:3 * h_feats, :],
                            preferred_element_type=f32)
        emb_slab = jnp.maximum(acc + b3p_ref[...], 0.0)   # (N, OUTW): lanes [0:F] = emb

        # logits land in lanes [F:F+C] of the same slab (W4/b4 pre-shifted there in the
        # wrapper), so the kernel writes a single lane-dense (N, OUTW) block.
        out_ref[...] = (emb_slab
                        + jnp.dot(emb_slab, w4p_ref[...], preferred_element_type=f32)
                        + b4p_ref[...])

    return kernel


def adagnn_forward(x, at, dinv, params, thetas):
    n, in_feats = x.shape
    h_feats = params["w2"].shape[1]
    num_classes = params["w4"].shape[1]
    out_w = ((h_feats + num_classes + 127) // 128) * 128   # lane-dense padded slab width

    # --- one-time wrapper-side operand prep ------------------------------------
    at_bf16 = at.astype(jnp.bfloat16)                       # 0/1 adjacency: exact in bf16

    # W3: (3F, F) -> (3F, OUTW); emb written to lanes [0:F].
    w3p = jnp.zeros((3 * h_feats, out_w), jnp.float32).at[:, :h_feats].set(params["w3"])
    b3p = jnp.zeros((1, out_w), jnp.float32).at[:, :h_feats].set(params["b3"])
    # W4: (F, C) placed at rows [0:F], cols [F:F+C] so logits land next to emb.
    w4p = (jnp.zeros((out_w, out_w), jnp.float32)
           .at[:h_feats, h_feats:h_feats + num_classes].set(params["w4"]))
    b4p = (jnp.zeros((1, out_w), jnp.float32)
           .at[:, h_feats:h_feats + num_classes].set(params["b4"]))

    flat_inputs = (
        x, at_bf16, dinv,
        params["w1"], params["b1"], params["w2"], params["b2"],
        params["diag1"], params["wl1"], params["bl1"],
        params["diag2"], params["wl2"], params["bl2"],
        params["diag3"], params["wl3"], params["bl3"],
        w3p, b3p, w4p, b4p,
    )

    in_bytes = sum(int(np.prod(a.shape)) * a.dtype.itemsize for a in flat_inputs)
    out_bytes = n * out_w * 4
    # Resident f32 intermediates: h, p1, p2, per-layer feats/outs + the output slab.
    scratch_bytes = 12 * n * h_feats * 4 + 3 * n * out_w * 4
    vmem_limit = int(min(100 * 2**20,
                         2 * (in_bytes + out_bytes) + scratch_bytes + (4 << 20)))

    flops = (4 * n * n * h_feats                                   # 2 shared propagations
             + 2 * n * in_feats * h_feats + 2 * n * h_feats * h_feats   # MLP front end
             + 3 * 2 * n * h_feats * h_feats                       # per-layer Linear
             + 3 * 2 * n * h_feats * out_w                         # W3 partial matmuls
             + 2 * n * out_w * out_w)                              # padded W4
    cost = pl.CostEstimate(flops=flops, transcendentals=0,
                           bytes_accessed=in_bytes + out_bytes)

    vmem = pl.BlockSpec(memory_space=pltpu.MemorySpace.VMEM)
    out = pl.pallas_call(
        make_adagnn_kernel(thetas, h_feats),
        out_shape=jax.ShapeDtypeStruct((n, out_w), jnp.float32),
        in_specs=[vmem] * len(flat_inputs),
        out_specs=vmem,
        compiler_params=pltpu.CompilerParams(vmem_limit_bytes=vmem_limit),
        cost_estimate=cost,
    )(*flat_inputs)

    emb = out[:, :h_feats]
    logits = out[:, h_feats:h_feats + num_classes]
    return logits, emb


def adagnn_reference(x, at, dinv, params, thetas):
    """Pure-JAX f32 reference mirroring the torch forward (structurally independent:
    no propagation sharing, explicit concat)."""
    h = jnp.maximum(x @ params["w1"] + params["b1"], 0.0)
    h = jnp.maximum(h @ params["w2"] + params["b2"], 0.0)

    def prop(f):
        return (at @ (f * dinv)) * dinv

    def polyconv(theta, diag, wl, bl):
        feat = h
        out = theta[0] * feat
        out = out * diag[0:1, :]
        out = out @ wl + bl
        for k in range(1, len(theta)):
            feat = feat - prop(feat) * diag[k:k + 1, :]
            out = out + theta[k] * feat
        return out

    h0 = polyconv(thetas[0], params["diag1"], params["wl1"], params["bl1"])
    h1 = polyconv(thetas[1], params["diag2"], params["wl2"], params["bl2"])
    h2 = polyconv(thetas[2], params["diag3"], params["wl3"], params["bl3"])
    h_final = jnp.concatenate([h0, h1, h2], axis=-1)
    emb = jnp.maximum(h_final @ params["w3"] + params["b3"], 0.0)
    logits = emb @ params["w4"] + params["b4"]
    return logits, emb


if __name__ == "__main__":
    # Small shapes consistent with the module.
    N = 128            # number of graph nodes
    IN_FEATS = 16
    H_FEATS = 32
    NUM_CLASSES = 8
    D = 2

    thetas = calculate_theta2(D)   # 3 rows of 3 coeffs

    key = jax.random.PRNGKey(0)
    keys = jax.random.split(key, 20)

    # Node features.
    x = jax.random.normal(keys[0], (N, IN_FEATS), dtype=jnp.float32)

    # Synthetic random directed graph as a dense adjacency A[src, dst].
    adj = jax.random.bernoulli(keys[1], 0.1, (N, N)).astype(jnp.float32)
    adj = adj * (1.0 - jnp.eye(N, dtype=jnp.float32))      # no self loops
    at = adj.T                                             # AT[dst, src]
    in_deg = jnp.maximum(jnp.sum(adj, axis=0), 1.0)        # clamp(min=1)
    dinv = (in_deg ** -0.5).reshape(N, 1).astype(jnp.float32)

    def lin(kw, kb, fan_in, fan_out):
        bound = 1.0 / math.sqrt(fan_in)
        w = jax.random.uniform(kw, (fan_in, fan_out), jnp.float32, -bound, bound)
        b = jax.random.uniform(kb, (1, fan_out), jnp.float32, -bound, bound)
        return w, b

    w1, b1 = lin(keys[2], keys[3], IN_FEATS, H_FEATS)
    w2, b2 = lin(keys[4], keys[5], H_FEATS, H_FEATS)
    w3, b3 = lin(keys[6], keys[7], H_FEATS * 3, H_FEATS)
    w4, b4 = lin(keys[8], keys[9], H_FEATS, NUM_CLASSES)

    params = dict(w1=w1, b1=b1, w2=w2, b2=b2, w3=w3, b3=b3, w4=w4, b4=b4)
    # Three PolyConv layers: learnable_diag (3, h_feats) ~ U[0,1) and a Linear(h,h).
    for c in range(3):
        kd, kw, kb = keys[10 + 3 * c], keys[11 + 3 * c], keys[12 + 3 * c]
        params[f"diag{c + 1}"] = jax.random.uniform(kd, (3, H_FEATS), jnp.float32)
        wl, bl = lin(kw, kb, H_FEATS, H_FEATS)
        params[f"wl{c + 1}"] = wl
        params[f"bl{c + 1}"] = bl

    logits, emb = adagnn_forward(x, at, dinv, params, thetas)
    logits = jax.block_until_ready(logits)
    emb = jax.block_until_ready(emb)

    ref_logits, ref_emb = adagnn_reference(x, at, dinv, params, thetas)
    np.testing.assert_allclose(np.asarray(logits), np.asarray(ref_logits),
                               rtol=2e-2, atol=2e-2)
    np.testing.assert_allclose(np.asarray(emb), np.asarray(ref_emb),
                               rtol=2e-2, atol=2e-2)

    assert logits.shape == (N, NUM_CLASSES) and emb.shape == (N, H_FEATS)
    print("KERNEL_OK")
</pallas_src>

<mosaic_0001>
module attributes {stable_mosaic.version = 11 : i64} {
  func.func @kernel(%arg0: memref<128x16xf32, #tpu.memory_space<vmem>>, %arg1: memref<128x128xbf16, #tpu.memory_space<vmem>>, %arg2: memref<128x1xf32, #tpu.memory_space<vmem>>, %arg3: memref<16x32xf32, #tpu.memory_space<vmem>>, %arg4: memref<1x32xf32, #tpu.memory_space<vmem>>, %arg5: memref<32x32xf32, #tpu.memory_space<vmem>>, %arg6: memref<1x32xf32, #tpu.memory_space<vmem>>, %arg7: memref<3x32xf32, #tpu.memory_space<vmem>>, %arg8: memref<32x32xf32, #tpu.memory_space<vmem>>, %arg9: memref<1x32xf32, #tpu.memory_space<vmem>>, %arg10: memref<3x32xf32, #tpu.memory_space<vmem>>, %arg11: memref<32x32xf32, #tpu.memory_space<vmem>>, %arg12: memref<1x32xf32, #tpu.memory_space<vmem>>, %arg13: memref<3x32xf32, #tpu.memory_space<vmem>>, %arg14: memref<32x32xf32, #tpu.memory_space<vmem>>, %arg15: memref<1x32xf32, #tpu.memory_space<vmem>>, %arg16: memref<96x128xf32, #tpu.memory_space<vmem>>, %arg17: memref<1x128xf32, #tpu.memory_space<vmem>>, %arg18: memref<128x128xf32, #tpu.memory_space<vmem>>, %arg19: memref<1x128xf32, #tpu.memory_space<vmem>>, %arg20: memref<128x128xf32, #tpu.memory_space<vmem>>) attributes {dimension_semantics = [], scalar_prefetch = 0 : i64, scratch_operands = 0 : i64, tpu.core_type = #tpu.core_type<tc>} {
    %c0 = arith.constant 0 : index
    %c0_0 = arith.constant 0 : index
    %0 = vector.load %arg0[%c0, %c0_0] : memref<128x16xf32, #tpu.memory_space<vmem>>, vector<128x16xf32>
    %c0_1 = arith.constant 0 : index
    %c0_2 = arith.constant 0 : index
    %1 = vector.load %arg2[%c0_1, %c0_2] : memref<128x1xf32, #tpu.memory_space<vmem>>, vector<128x1xf32>
    %c0_3 = arith.constant 0 : index
    %c0_4 = arith.constant 0 : index
    %2 = vector.load %arg3[%c0_3, %c0_4] : memref<16x32xf32, #tpu.memory_space<vmem>>, vector<16x32xf32>
    %cst = arith.constant dense<0.000000e+00> : vector<128x32xf32>
    %3 = tpu.matmul %0, %2, %cst {dimension_numbers = #tpu.dot_dimension_numbers<[1], [0], [0], [1], [0, 0, 1, 1], [], []>} : vector<128x16xf32>, vector<16x32xf32>, vector<128x32xf32> -> vector<128x32xf32>
    %c0_5 = arith.constant 0 : index
    %c0_6 = arith.constant 0 : index
    %4 = vector.load %arg4[%c0_5, %c0_6] : memref<1x32xf32, #tpu.memory_space<vmem>>, vector<1x32xf32>
    %5 = vector.broadcast %4 : vector<1x32xf32> to vector<128x32xf32>
    %6 = arith.addf %3, %5 : vector<128x32xf32>
    %cst_7 = arith.constant 0.000000e+00 : f32
    %7 = vector.broadcast %cst_7 : f32 to vector<128x32xf32>
    %8 = arith.maximumf %6, %7 : vector<128x32xf32>
    %c0_8 = arith.constant 0 : index
    %c0_9 = arith.constant 0 : index
    %9 = vector.load %arg5[%c0_8, %c0_9] : memref<32x32xf32, #tpu.memory_space<vmem>>, vector<32x32xf32>
    %cst_10 = arith.constant dense<0.000000e+00> : vector<128x32xf32>
    %10 = tpu.matmul %8, %9, %cst_10 {dimension_numbers = #tpu.dot_dimension_numbers<[1], [0], [0], [1], [0, 0, 1, 1], [], []>} : vector<128x32xf32>, vector<32x32xf32>, vector<128x32xf32> -> vector<128x32xf32>
    %c0_11 = arith.constant 0 : index
    %c0_12 = arith.constant 0 : index
    %11 = vector.load %arg6[%c0_11, %c0_12] : memref<1x32xf32, #tpu.memory_space<vmem>>, vector<1x32xf32>
    %12 = vector.broadcast %11 : vector<1x32xf32> to vector<128x32xf32>
    %13 = arith.addf %10, %12 : vector<128x32xf32>
    %cst_13 = arith.constant 0.000000e+00 : f32
    %14 = vector.broadcast %cst_13 : f32 to vector<128x32xf32>
    %15 = arith.maximumf %13, %14 : vector<128x32xf32>
    %c0_14 = arith.constant 0 : index
    %c0_15 = arith.constant 0 : index
    %16 = vector.load %arg1[%c0_14, %c0_15] : memref<128x128xbf16, #tpu.memory_space<vmem>>, vector<128x128xbf16>
    %17 = vector.broadcast %1 : vector<128x1xf32> to vector<128x32xf32>
    %18 = arith.mulf %15, %17 : vector<128x32xf32>
    %19 = arith.truncf %18 : vector<128x32xf32> to vector<128x32xbf16>
    %cst_16 = arith.constant dense<0.000000e+00> : vector<128x32xf32>
    %20 = tpu.matmul %16, %19, %cst_16 {dimension_numbers = #tpu.dot_dimension_numbers<[1], [0], [0], [1], [0, 0, 1, 1], [], []>} : vector<128x128xbf16>, vector<128x32xbf16>, vector<128x32xf32> -> vector<128x32xf32>
    %21 = vector.broadcast %1 : vector<128x1xf32> to vector<128x32xf32>
    %22 = arith.mulf %20, %21 : vector<128x32xf32>
    %23 = vector.broadcast %1 : vector<128x1xf32> to vector<128x32xf32>
    %24 = arith.mulf %22, %23 : vector<128x32xf32>
    %25 = arith.truncf %24 : vector<128x32xf32> to vector<128x32xbf16>
    %cst_17 = arith.constant dense<0.000000e+00> : vector<128x32xf32>
    %26 = tpu.matmul %16, %25, %cst_17 {dimension_numbers = #tpu.dot_dimension_numbers<[1], [0], [0], [1], [0, 0, 1, 1], [], []>} : vector<128x128xbf16>, vector<128x32xbf16>, vector<128x32xf32> -> vector<128x32xf32>
    %27 = vector.broadcast %1 : vector<128x1xf32> to vector<128x32xf32>
    %28 = arith.mulf %26, %27 : vector<128x32xf32>
    %c0_18 = arith.constant 0 : index
    %c0_19 = arith.constant 0 : index
    %29 = vector.load %arg7[%c0_18, %c0_19] : memref<3x32xf32, #tpu.memory_space<vmem>>, vector<1x32xf32>
    %c1 = arith.constant 1 : index
    %c0_20 = arith.constant 0 : index
    %30 = vector.load %arg7[%c1, %c0_20] : memref<3x32xf32, #tpu.memory_space<vmem>>, vector<1x32xf32>
    %c2 = arith.constant 2 : index
    %c0_21 = arith.constant 0 : index
    %31 = vector.load %arg7[%c2, %c0_21] : memref<3x32xf32, #tpu.memory_space<vmem>>, vector<1x32xf32>
    %cst_22 = arith.constant 3.000000e+00 : f32
    %32 = vector.broadcast %cst_22 : f32 to vector<128x32xf32>
    %33 = arith.mulf %32, %15 : vector<128x32xf32>
    %34 = vector.broadcast %29 : vector<1x32xf32> to vector<128x32xf32>
    %35 = arith.mulf %33, %34 : vector<128x32xf32>
    %c0_23 = arith.constant 0 : index
    %c0_24 = arith.constant 0 : index
    %36 = vector.load %arg8[%c0_23, %c0_24] : memref<32x32xf32, #tpu.memory_space<vmem>>, vector<32x32xf32>
    %cst_25 = arith.constant dense<0.000000e+00> : vector<128x32xf32>
    %37 = tpu.matmul %35, %36, %cst_25 {dimension_numbers = #tpu.dot_dimension_numbers<[1], [0], [0], [1], [0, 0, 1, 1], [], []>} : vector<128x32xf32>, vector<32x32xf32>, vector<128x32xf32> -> vector<128x32xf32>
    %c0_26 = arith.constant 0 : index
    %c0_27 = arith.constant 0 : index
    %38 = vector.load %arg9[%c0_26, %c0_27] : memref<1x32xf32, #tpu.memory_space<vmem>>, vector<1x32xf32>
    %39 = vector.broadcast %38 : vector<1x32xf32> to vector<128x32xf32>
    %40 = arith.addf %37, %39 : vector<128x32xf32>
    %41 = vector.broadcast %30 : vector<1x32xf32> to vector<128x32xf32>
    %42 = arith.mulf %22, %41 : vector<128x32xf32>
    %43 = arith.subf %15, %42 : vector<128x32xf32>
    %cst_28 = arith.constant -3.000000e+00 : f32
    %44 = vector.broadcast %cst_28 : f32 to vector<128x32xf32>
    %45 = arith.mulf %44, %43 : vector<128x32xf32>
    %46 = arith.addf %40, %45 : vector<128x32xf32>
    %47 = vector.broadcast %30 : vector<1x32xf32> to vector<128x32xf32>
    %48 = arith.mulf %28, %47 : vector<128x32xf32>
    %49 = arith.subf %22, %48 : vector<128x32xf32>
    %50 = vector.broadcast %31 : vector<1x32xf32> to vector<128x32xf32>
    %51 = arith.mulf %49, %50 : vector<128x32xf32>
    %52 = arith.subf %43, %51 : vector<128x32xf32>
    %cst_29 = arith.constant 7.500000e-01 : f32
    %53 = vector.broadcast %cst_29 : f32 to vector<128x32xf32>
    %54 = arith.mulf %53, %52 : vector<128x32xf32>
    %55 = arith.addf %46, %54 : vector<128x32xf32>
    %c0_30 = arith.constant 0 : index
    %c0_31 = arith.constant 0 : index
    %56 = vector.load %arg10[%c0_30, %c0_31] : memref<3x32xf32, #tpu.memory_space<vmem>>, vector<1x32xf32>
    %c1_32 = arith.constant 1 : index
    %c0_33 = arith.constant 0 : index
    %57 = vector.load %arg10[%c1_32, %c0_33] : memref<3x32xf32, #tpu.memory_space<vmem>>, vector<1x32xf32>
    %c2_34 = arith.constant 2 : index
    %c0_35 = arith.constant 0 : index
    %58 = vector.load %arg10[%c2_34, %c0_35] : memref<3x32xf32, #tpu.memory_space<vmem>>, vector<1x32xf32>
    %cst_36 = arith.constant 0.000000e+00 : f32
    %59 = vector.broadcast %cst_36 : f32 to vector<128x32xf32>
    %60 = arith.mulf %59, %15 : vector<128x32xf32>
    %61 = vector.broadcast %56 : vector<1x32xf32> to vector<128x32xf32>
    %62 = arith.mulf %60, %61 : vector<128x32xf32>
    %c0_37 = arith.constant 0 : index
    %c0_38 = arith.constant 0 : index
    %63 = vector.load %arg11[%c0_37, %c0_38] : memref<32x32xf32, #tpu.memory_space<vmem>>, vector<32x32xf32>
    %cst_39 = arith.constant dense<0.000000e+00> : vector<128x32xf32>
    %64 = tpu.matmul %62, %63, %cst_39 {dimension_numbers = #tpu.dot_dimension_numbers<[1], [0], [0], [1], [0, 0, 1, 1], [], []>} : vector<128x32xf32>, vector<32x32xf32>, vector<128x32xf32> -> vector<128x32xf32>
    %c0_40 = arith.constant 0 : index
    %c0_41 = arith.constant 0 : index
    %65 = vector.load %arg12[%c0_40, %c0_41] : memref<1x32xf32, #tpu.memory_space<vmem>>, vector<1x32xf32>
    %66 = vector.broadcast %65 : vector<1x32xf32> to vector<128x32xf32>
    %67 = arith.addf %64, %66 : vector<128x32xf32>
    %68 = vector.broadcast %57 : vector<1x32xf32> to vector<128x32xf32>
    %69 = arith.mulf %22, %68 : vector<128x32xf32>
    %70 = arith.subf %15, %69 : vector<128x32xf32>
    %cst_42 = arith.constant 3.000000e+00 : f32
    %71 = vector.broadcast %cst_42 : f32 to vector<128x32xf32>
    %72 = arith.mulf %71, %70 : vector<128x32xf32>
    %73 = arith.addf %67, %72 : vector<128x32xf32>
    %74 = vector.broadcast %57 : vector<1x32xf32> to vector<128x32xf32>
    %75 = arith.mulf %28, %74 : vector<128x32xf32>
    %76 = arith.subf %22, %75 : vector<128x32xf32>
    %77 = vector.broadcast %58 : vector<1x32xf32> to vector<128x32xf32>
    %78 = arith.mulf %76, %77 : vector<128x32xf32>
    %79 = arith.subf %70, %78 : vector<128x32xf32>
    %cst_43 = arith.constant -1.500000e+00 : f32
    %80 = vector.broadcast %cst_43 : f32 to vector<128x32xf32>
    %81 = arith.mulf %80, %79 : vector<128x32xf32>
    %82 = arith.addf %73, %81 : vector<128x32xf32>
    %c0_44 = arith.constant 0 : index
    %c0_45 = arith.constant 0 : index
    %83 = vector.load %arg13[%c0_44, %c0_45] : memref<3x32xf32, #tpu.memory_space<vmem>>, vector<1x32xf32>
    %c1_46 = arith.constant 1 : index
    %c0_47 = arith.constant 0 : index
    %84 = vector.load %arg13[%c1_46, %c0_47] : memref<3x32xf32, #tpu.memory_space<vmem>>, vector<1x32xf32>
    %c2_48 = arith.constant 2 : index
    %c0_49 = arith.constant 0 : index
    %85 = vector.load %arg13[%c2_48, %c0_49] : memref<3x32xf32, #tpu.memory_space<vmem>>, vector<1x32xf32>
    %cst_50 = arith.constant 0.000000e+00 : f32
    %86 = vector.broadcast %cst_50 : f32 to vector<128x32xf32>
    %87 = arith.mulf %86, %15 : vector<128x32xf32>
    %88 = vector.broadcast %83 : vector<1x32xf32> to vector<128x32xf32>
    %89 = arith.mulf %87, %88 : vector<128x32xf32>
    %c0_51 = arith.constant 0 : index
    %c0_52 = arith.constant 0 : index
    %90 = vector.load %arg14[%c0_51, %c0_52] : memref<32x32xf32, #tpu.memory_space<vmem>>, vector<32x32xf32>
    %cst_53 = arith.constant dense<0.000000e+00> : vector<128x32xf32>
    %91 = tpu.matmul %89, %90, %cst_53 {dimension_numbers = #tpu.dot_dimension_numbers<[1], [0], [0], [1], [0, 0, 1, 1], [], []>} : vector<128x32xf32>, vector<32x32xf32>, vector<128x32xf32> -> vector<128x32xf32>
    %c0_54 = arith.constant 0 : index
    %c0_55 = arith.constant 0 : index
    %92 = vector.load %arg15[%c0_54, %c0_55] : memref<1x32xf32, #tpu.memory_space<vmem>>, vector<1x32xf32>
    %93 = vector.broadcast %92 : vector<1x32xf32> to vector<128x32xf32>
    %94 = arith.addf %91, %93 : vector<128x32xf32>
    %95 = vector.broadcast %84 : vector<1x32xf32> to vector<128x32xf32>
    %96 = arith.mulf %22, %95 : vector<128x32xf32>
    %97 = arith.subf %15, %96 : vector<128x32xf32>
    %cst_56 = arith.constant 0.000000e+00 : f32
    %98 = vector.broadcast %cst_56 : f32 to vector<128x32xf32>
    %99 = arith.mulf %98, %97 : vector<128x32xf32>
    %100 = arith.addf %94, %99 : vector<128x32xf32>
    %101 = vector.broadcast %84 : vector<1x32xf32> to vector<128x32xf32>
    %102 = arith.mulf %28, %101 : vector<128x32xf32>
    %103 = arith.subf %22, %102 : vector<128x32xf32>
    %104 = vector.broadcast %85 : vector<1x32xf32> to vector<128x32xf32>
    %105 = arith.mulf %103, %104 : vector<128x32xf32>
    %106 = arith.subf %97, %105 : vector<128x32xf32>
    %cst_57 = arith.constant 7.500000e-01 : f32
    %107 = vector.broadcast %cst_57 : f32 to vector<128x32xf32>
    %108 = arith.mulf %107, %106 : vector<128x32xf32>
    %109 = arith.addf %100, %108 : vector<128x32xf32>
    %c0_58 = arith.constant 0 : index
    %c0_59 = arith.constant 0 : index
    %110 = vector.load %arg16[%c0_58, %c0_59] : memref<96x128xf32, #tpu.memory_space<vmem>>, vector<32x128xf32>
    %cst_60 = arith.constant dense<0.000000e+00> : vector<128x128xf32>
    %111 = tpu.matmul %55, %110, %cst_60 {dimension_numbers = #tpu.dot_dimension_numbers<[1], [0], [0], [1], [0, 0, 1, 1], [], []>} : vector<128x32xf32>, vector<32x128xf32>, vector<128x128xf32> -> vector<128x128xf32>
    %c32 = arith.constant 32 : index
    %c0_61 = arith.constant 0 : index
    %112 = vector.load %arg16[%c32, %c0_61] : memref<96x128xf32, #tpu.memory_space<vmem>>, vector<32x128xf32>
    %cst_62 = arith.constant dense<0.000000e+00> : vector<128x128xf32>
    %113 = tpu.matmul %82, %112, %cst_62 {dimension_numbers = #tpu.dot_dimension_numbers<[1], [0], [0], [1], [0, 0, 1, 1], [], []>} : vector<128x32xf32>, vector<32x128xf32>, vector<128x128xf32> -> vector<128x128xf32>
    %114 = arith.addf %111, %113 : vector<128x128xf32>
    %c64 = arith.constant 64 : index
    %c0_63 = arith.constant 0 : index
    %115 = vector.load %arg16[%c64, %c0_63] : memref<96x128xf32, #tpu.memory_space<vmem>>, vector<32x128xf32>
    %cst_64 = arith.constant dense<0.000000e+00> : vector<128x128xf32>
    %116 = tpu.matmul %109, %115, %cst_64 {dimension_numbers = #tpu.dot_dimension_numbers<[1], [0], [0], [1], [0, 0, 1, 1], [], []>} : vector<128x32xf32>, vector<32x128xf32>, vector<128x128xf32> -> vector<128x128xf32>
    %117 = arith.addf %114, %116 : vector<128x128xf32>
    %c0_65 = arith.constant 0 : index
    %c0_66 = arith.constant 0 : index
    %118 = vector.load %arg17[%c0_65, %c0_66] : memref<1x128xf32, #tpu.memory_space<vmem>>, vector<1x128xf32>
    %119 = vector.broadcast %118 : vector<1x128xf32> to vector<128x128xf32>
    %120 = arith.addf %117, %119 : vector<128x128xf32>
    %cst_67 = arith.constant 0.000000e+00 : f32
    %121 = vector.broadcast %cst_67 : f32 to vector<128x128xf32>
    %122 = arith.maximumf %120, %121 : vector<128x128xf32>
    %c0_68 = arith.constant 0 : index
    %c0_69 = arith.constant 0 : index
    %123 = vector.load %arg18[%c0_68, %c0_69] : memref<128x128xf32, #tpu.memory_space<vmem>>, vector<128x128xf32>
    %cst_70 = arith.constant dense<0.000000e+00> : vector<128x128xf32>
    %124 = tpu.matmul %122, %123, %cst_70 {dimension_numbers = #tpu.dot_dimension_numbers<[1], [0], [0], [1], [0, 0, 1, 1], [], []>} : vector<128x128xf32>, vector<128x128xf32>, vector<128x128xf32> -> vector<128x128xf32>
    %125 = arith.addf %122, %124 : vector<128x128xf32>
    %c0_71 = arith.constant 0 : index
    %c0_72 = arith.constant 0 : index
    %126 = vector.load %arg19[%c0_71, %c0_72] : memref<1x128xf32, #tpu.memory_space<vmem>>, vector<1x128xf32>
    %127 = vector.broadcast %126 : vector<1x128xf32> to vector<128x128xf32>
    %128 = arith.addf %125, %127 : vector<128x128xf32>
    %c0_73 = arith.constant 0 : index
    %c0_74 = arith.constant 0 : index
    %129 = vector.load %arg20[%c0_73, %c0_74] : memref<128x128xf32, #tpu.memory_space<vmem>>, vector<128x128xf32>
    tpu.vector_store %arg20[%c0_73, %c0_74], %128 {strides = array<i32>} : memref<128x128xf32, #tpu.memory_space<vmem>>, vector<128x128xf32>,
    return
  }
}

</mosaic_0001>

<bundles_post_ra>
// kernel: tpu_custom_call.1
= control target key start
LH: loop header
LB: loop body
LE: loop exit
PB: predicated region body
PF: predicated region fallthrough
CT: control target
= control target key end

     0   :  { %s6542_s0 = inlined_call_operand.vmem [shape: f32[128,16], index: 0, kind: input, shape index: {}]   ;;  %s6543_s1 = inlined_call_operand.hbm [shape: bf16[128,128], index: 1, kind: input, shape index: {}]   ;;  %s6544_s2 = inlined_call_operand.vmem [shape: f32[128,1], index: 2, kind: input, shape index: {}]   ;;  %s6545_s3 = inlined_call_operand.hbm [shape: f32[16,32], index: 3, kind: input, shape index: {}]   ;;  %s6546_s4 = inlined_call_operand.hbm [shape: f32[1,32], index: 4, kind: input, shape index: {}]   ;;  %s6547_s5 = inlined_call_operand.vmem [shape: f32[32,32], index: 5, kind: input, shape index: {}]   ;;  %s6548_s6 = inlined_call_operand.vmem [shape: f32[1,32], index: 6, kind: input, shape index: {}]   ;;  %s6549_s7 = inlined_call_operand.hbm [shape: f32[3,32], index: 7, kind: input, shape index: {}]   ;;  %s6550_s8 = inlined_call_operand.vmem [shape: f32[32,32], index: 8, kind: input, shape index: {}]   ;;  %s6551_s9 = inlined_call_operand.vmem [shape: f32[1,32], index: 9, kind: input, shape index: {}]   ;;  %s6552_s10 = inlined_call_operand.hbm [shape: f32[3,32], index: 10, kind: input, shape index: {}]   ;;  %s6553_s11 = inlined_call_operand.hbm [shape: f32[32,32], index: 11, kind: input, shape index: {}]   ;;  %s6554_s12 = inlined_call_operand.hbm [shape: f32[1,32], index: 12, kind: input, shape index: {}]   ;;  %s6555_s13 = inlined_call_operand.hbm [shape: f32[3,32], index: 13, kind: input, shape index: {}]   ;;  %s6556_s14 = inlined_call_operand.vmem [shape: f32[32,32], index: 14, kind: input, shape index: {}]   ;;  %s6557_s15 = inlined_call_operand.vmem [shape: f32[1,32], index: 15, kind: input, shape index: {}]   ;;  %s6558_s16 = inlined_call_operand.vmem [shape: f32[96,128], index: 16, kind: input, shape index: {}]   ;;  %s6559_s17 = inlined_call_operand.vmem [shape: f32[1,128], index: 17, kind: input, shape index: {}]   ;;  %s6560_s18 = inlined_call_operand.vmem [shape: f32[128,128], index: 18, kind: input, shape index: {}]   ;;  %s6561_s19 = inlined_call_operand.vmem [shape: f32[1,128], index: 19, kind: input, shape index: {}]   ;;  %s6562_s20 = inlined_call_operand.hbm [shape: f32[128,128], index: 20, kind: output, shape index: {}]  }
   0x1   :  { %6683 = sst [smem:[#allocation157_spill]] %s6542_s0 }
   0x2   :  { %6684 = sst [smem:[#allocation158_spill]] %s6543_s1 }
   0x3   :  { %6685 = sst [smem:[#allocation159_spill]] %s6544_s2 }
   0x4   :  { %6686 = sst [smem:[#allocation160_spill]] %s6545_s3 }
   0x5   :  { %6687 = sst [smem:[#allocation161_spill]] %s6546_s4 }
   0x6   :  { %6688 = sst [smem:[#allocation162_spill]] %s6561_s19 }
   0x7   :  { %6689 = sst [smem:[#allocation163_spill]] %s6562_s20 }
   0x8   :  { %25 = vsyncpa [#allocation3], 0 }
   0x9   :  { %26 = vsyncpa [#allocation6], 0 }
   0xa   :  { %27 = vsyncpa [#allocation9], 0 }
   0xb   :  { %28 = vsyncpa [#allocation12], 0 }
   0xc   :  { %29 = vsyncpa [#allocation15], 0 }
   0xd   :  { %30 = vsyncpa [#allocation4], 0  ;;  %s4276_s1 = smov [#allocation5]   ;;  %s6690_s2 = sld [smem:[#allocation160_spill]] }
   0xe   :  { %s52_s22 = sshll.u32 %s4276_s1, 4  ;;  %s53_s22 = int_to_ptr.vmem [resolvable:$true] %s52_s22 }
  0x13   :  { %s4066_s25 = scalar_lea.hbm %s6690_s2, 256 }
  0x14   :  { %p4067_p0 = scmp.ne.s32.totalorder %s6690_s2, %s4066_s25  ;;  %p4070_p1 = scmp.lt.u32.totalorder %s4066_s25, %s6690_s2 }
  0x16   :  { %p4072_p2 = pnand %p4070_p1, %p4067_p0 }
  0x18   :  { %4075 = shalt.err (!%p4072_p2)
}
  0x19   :  { %s4076_s4 = scalar_lea.vmem %s53_s22, 256  ;;  %p4081_p4 = scmp.lt.s32.totalorder %s53_s22, %s53_s22 }
  0x1a   :  { %p4077_p3 = scmp.ne.s32.totalorder %s53_s22, %s4076_s4  ;;  %p4082_p5 = scmp.lt.s32.totalorder %s4076_s4, %s4076_s4 }
  0x1c   :  { %p4083_p6 = por %p4082_p5, %p4081_p4 }
  0x1e   :  { %p4084_p7 = pnand %p4083_p6, %p4077_p3 }
  0x20   :  { %4087 = shalt.err (!%p4084_p7)
}
  0x21   :  { %s6569_s29 = smov 128   ;;  %s4278_s30 = smov 8  }
  0x22   :  { %58 = dma.hbm_to_vmem [thread:$0]  %s6690_s2, 256, %s53_s22, [#allocation6], %s6569_s29, %s6569_s29, %s4278_s30  }
  0x23   :  { %s4279_s1 = smov [#allocation8]   ;;  %s4280_s24 = smov [#allocation11]  }
  0x24   :  { %s79_s23 = sshll.u32 %s4279_s1, 4  ;;  %s102_s25 = sshll.u32 %s4280_s24, 4  ;;  %s80_s23 = int_to_ptr.vmem [resolvable:$true] %s79_s23  ;;  %s103_s25 = int_to_ptr.vmem [resolvable:$true] %s102_s25 }
  0x25   :  { %s4088_s27 = scalar_lea.hbm %s6549_s7, 64 }
  0x26   :  { %p4089_p8 = scmp.ne.s32.totalorder %s6549_s7, %s4088_s27  ;;  %p4092_p9 = scmp.lt.u32.totalorder %s4088_s27, %s6549_s7 }
  0x28   :  { %p4094_p10 = pnand %p4092_p9, %p4089_p8 }
  0x2a   :  { %4097 = shalt.err (!%p4094_p10)
}
  0x2b   :  { %s4098_s22 = scalar_lea.vmem %s80_s23, 64  ;;  %p4103_p12 = scmp.lt.s32.totalorder %s80_s23, %s80_s23 }
  0x2c   :  { %p4099_p11 = scmp.ne.s32.totalorder %s80_s23, %s4098_s22  ;;  %p4104_p13 = scmp.lt.s32.totalorder %s4098_s22, %s4098_s22 }
  0x2e   :  { %p4105_p0 = por %p4104_p13, %p4103_p12 }
  0x30   :  { %p4106_p1 = pnand %p4105_p0, %p4099_p11 }
  0x32   :  { %4109 = shalt.err (!%p4106_p1)
}
  0x33   :  { %82 = dma.hbm_to_vmem [thread:$0]  %s6549_s7, 64, %s80_s23, [#allocation9]  }
  0x34   :  { %s4110_s24 = scalar_lea.hbm %s6553_s11, 512 }
  0x35   :  { %p4111_p2 = scmp.ne.s32.totalorder %s6553_s11, %s4110_s24  ;;  %p4114_p3 = scmp.lt.u32.totalorder %s4110_s24, %s6553_s11 }
  0x37   :  { %p4116_p4 = pnand %p4114_p3, %p4111_p2 }
  0x39   :  { %4119 = shalt.err (!%p4116_p4)
}
  0x3a   :  { %s4120_s27 = scalar_lea.vmem %s103_s25, 512  ;;  %p4125_p6 = scmp.lt.s32.totalorder %s103_s25, %s103_s25 }
  0x3b   :  { %p4121_p5 = scmp.ne.s32.totalorder %s103_s25, %s4120_s27  ;;  %p4126_p7 = scmp.lt.s32.totalorder %s4120_s27, %s4120_s27 }
  0x3d   :  { %p4127_p8 = por %p4126_p7, %p4125_p6 }
  0x3f   :  { %p4128_p9 = pnand %p4127_p8, %p4121_p5 }
  0x41   :  { %4131 = shalt.err (!%p4128_p9)
}
  0x42   :  { %108 = dma.hbm_to_vmem [thread:$0]  %s6553_s11, 512, %s103_s25, [#allocation12], %s6569_s29, %s6569_s29, %s4278_s30  }
  0x43   :  { %s4281_s28 = smov [#allocation2]   ;;  %s6691_s0 = sld [smem:[#allocation158_spill]] }
  0x44   :  { %s38_s4 = sshll.u32 %s4281_s28, 4  ;;  %s39_s4 = int_to_ptr.vmem [resolvable:$true] %s38_s4 }
  0x49   :  { %s4132_s21 = scalar_lea.hbm %s6691_s0, 1024 }
  0x4a   :  { %p4133_p10 = scmp.ne.s32.totalorder %s6691_s0, %s4132_s21  ;;  %p4136_p11 = scmp.lt.u32.totalorder %s4132_s21, %s6691_s0 }
  0x4c   :  { %p4138_p12 = pnand %p4136_p11, %p4133_p10 }
  0x4e   :  { %4141 = shalt.err (!%p4138_p12)
}
  0x4f   :  { %s4142_s3 = scalar_lea.vmem %s39_s4, 1024  ;;  %p4147_p0 = scmp.lt.s32.totalorder %s39_s4, %s39_s4 }
  0x50   :  { %p4143_p13 = scmp.ne.s32.totalorder %s39_s4, %s4142_s3  ;;  %p4148_p1 = scmp.lt.s32.totalorder %s4142_s3, %s4142_s3 }
  0x52   :  { %p4149_p2 = por %p4148_p1, %p4147_p0 }
  0x54   :  { %p4150_p3 = pnand %p4149_p2, %p4143_p13 }
  0x56   :  { %4153 = shalt.err (!%p4150_p3)
}
  0x57   :  { %s4282_s11 = smov 64   ;;  %s4283_s25 = smov 4  }
  0x58   :  { %44 = dma.hbm_to_vmem [thread:$0]  %s6691_s0, 1024, %s39_s4, [#allocation3], %s4282_s11, %s4282_s11, %s4283_s25  }
  0x59   :  { %s4284_s7 = smov [#allocation7]   ;;  %s4285_s28 = smov [#allocation10]  }
  0x5a   :  { %s65_s23 = sshll.u32 %s4284_s7, 4  ;;  %s93_s22 = sshll.u32 %s4285_s28, 4  ;;  %s66_s23 = int_to_ptr.vmem [resolvable:$true] %s65_s23  ;;  %s94_s22 = int_to_ptr.vmem [resolvable:$true] %s93_s22 }
  0x5b   :  { %s6692_s1 = sld [smem:[#allocation161_spill]] }
  0x61   :  { %s4154_s24 = scalar_lea.hbm %s6692_s1, 16 }
  0x62   :  { %p4155_p4 = scmp.ne.s32.totalorder %s6692_s1, %s4154_s24  ;;  %p4158_p5 = scmp.lt.u32.totalorder %s4154_s24, %s6692_s1 }
  0x64   :  { %p4160_p6 = pnand %p4158_p5, %p4155_p4 }
  0x66   :  { %4163 = shalt.err (!%p4160_p6)
}
  0x67   :  { %s4164_s4 = scalar_lea.vmem %s66_s23, 16  ;;  %s4168_s0 = scalar_lea.vmem %s66_s23, 32 }
  0x68   :  { %p4165_p7 = scmp.ne.s32.totalorder %s66_s23, %s4164_s4  ;;  %p4169_p8 = scmp.lt.s32.totalorder %s66_s23, %s66_s23 }
  0x69   :  { %p4170_p9 = scmp.lt.s32.totalorder %s4168_s0, %s4164_s4 }
  0x6b   :  { %p4171_p10 = por %p4170_p9, %p4169_p8 }
  0x6d   :  { %p4172_p11 = pnand %p4171_p10, %p4165_p7 }
  0x6f   :  { %4175 = shalt.err (!%p4172_p11)
}
  0x70   :  { %68 = dma.hbm_to_vmem [thread:$0]  %s6692_s1, 16, %s66_s23, [#allocation6]  }
  0x71   :  { %s4176_s7 = scalar_lea.hbm %s6552_s10, 64 }
  0x72   :  { %p4177_p12 = scmp.ne.s32.totalorder %s6552_s10, %s4176_s7  ;;  %p4180_p13 = scmp.lt.u32.totalorder %s4176_s7, %s6552_s10 }
  0x74   :  { %p4182_p0 = pnand %p4180_p13, %p4177_p12 }
  0x76   :  { %4185 = shalt.err (!%p4182_p0)
}
  0x77   :  { %s4186_s24 = scalar_lea.vmem %s94_s22, 64  ;;  %p4191_p2 = scmp.lt.s32.totalorder %s94_s22, %s94_s22 }
  0x78   :  { %p4187_p1 = scmp.ne.s32.totalorder %s94_s22, %s4186_s24  ;;  %p4192_p3 = scmp.lt.s32.totalorder %s4186_s24, %s4186_s24 }
  0x7a   :  { %p4193_p4 = por %p4192_p3, %p4191_p2 }
  0x7c   :  { %p4194_p5 = pnand %p4193_p4, %p4187_p1 }
  0x7e   :  { %4197 = shalt.err (!%p4194_p5)
}
  0x7f   :  { %96 = dma.hbm_to_vmem [thread:$0]  %s6552_s10, 64, %s94_s22, [#allocation9]  }
  0x80   :  { %s4286_s19 = smov [#allocation13]   ;;  %s4287_s3 = smov [#allocation14]  }
  0x81   :  { %s115_s20 = sshll.u32 %s4286_s19, 4  ;;  %s125_s4 = sshll.u32 %s4287_s3, 4  ;;  %s116_s20 = int_to_ptr.vmem [resolvable:$true] %s115_s20  ;;  %s126_s4 = int_to_ptr.vmem [resolvable:$true] %s125_s4 }
  0x82   :  { %s4198_s25 = scalar_lea.hbm %s6554_s12, 16 }
  0x83   :  { %p4199_p6 = scmp.ne.s32.totalorder %s6554_s12, %s4198_s25  ;;  %p4202_p7 = scmp.lt.u32.totalorder %s4198_s25, %s6554_s12 }
  0x85   :  { %p4204_p8 = pnand %p4202_p7, %p4199_p6 }
  0x87   :  { %4207 = shalt.err (!%p4204_p8)
}
  0x88   :  { %s4208_s10 = scalar_lea.vmem %s116_s20, 16  ;;  %s4212_s22 = scalar_lea.vmem %s116_s20, 32 }
  0x89   :  { %p4209_p9 = scmp.ne.s32.totalorder %s116_s20, %s4208_s10  ;;  %p4213_p10 = scmp.lt.s32.totalorder %s116_s20, %s116_s20 }
  0x8a   :  { %p4214_p11 = scmp.lt.s32.totalorder %s4212_s22, %s4208_s10 }
  0x8c   :  { %p4215_p12 = por %p4214_p11, %p4213_p10 }
  0x8e   :  { %p4216_p13 = pnand %p4215_p12, %p4209_p9 }
  0x90   :  { %4219 = shalt.err (!%p4216_p13)
}
  0x91   :  { %118 = dma.hbm_to_vmem [thread:$0]  %s6554_s12, 16, %s116_s20, [#allocation12]  }
  0x92   :  { %s4220_s23 = scalar_lea.hbm %s6555_s13, 64 }
  0x93   :  { %p4221_p0 = scmp.ne.s32.totalorder %s6555_s13, %s4220_s23  ;;  %p4224_p1 = scmp.lt.u32.totalorder %s4220_s23, %s6555_s13 }
  0x95   :  { %p4226_p2 = pnand %p4224_p1, %p4221_p0 }
  0x97   :  { %4229 = shalt.err (!%p4226_p2)
}
  0x98   :  { %s4230_s11 = scalar_lea.vmem %s126_s4, 64  ;;  %p4235_p4 = scmp.lt.s32.totalorder %s126_s4, %s126_s4 }
  0x99   :  { %p4231_p3 = scmp.ne.s32.totalorder %s126_s4, %s4230_s11  ;;  %p4236_p5 = scmp.lt.s32.totalorder %s4230_s11, %s4230_s11 }
  0x9b   :  { %p4237_p6 = por %p4236_p5, %p4235_p4 }
  0x9d   :  { %p4238_p7 = pnand %p4237_p6, %p4231_p3 }
  0x9f   :  { %4241 = shalt.err (!%p4238_p7)
}
  0xa0   :  { %128 = dma.hbm_to_vmem [thread:$0]  %s6555_s13, 64, %s126_s4, [#allocation15]  }
  0xa1   :  { %4264 = dma.done.wait [#allocation3], 1024  }
  0xa2   :  { %4265 = vsyncadd [#allocation3], 4294966272 }
  0xa3   :  { %4266 = dma.done.wait [#allocation6], 272  }
  0xa4   :  { %4267 = vsyncadd [#allocation6], 4294967024 }
  0xa5   :  { %4268 = dma.done.wait [#allocation9], 128  }
  0xa6   :  { %4269 = vsyncadd [#allocation9], 4294967168 }
  0xa7   :  { %4270 = dma.done.wait [#allocation12], 528  }
  0xa8   :  { %4271 = vsyncadd [#allocation12], 4294966768 }
  0xa9   :  { %4272 = dma.done.wait [#allocation15], 64  }
  0xaa   :  { %4273 = vsyncadd [#allocation15], 4294967232  ;;  %vm207_vm0 = vcmask 130048   ;;  %v198_v0 = vld [vmem:[#allocation5] sm:$0xff]  ;;  %v199_v1 = vld [vmem:[#allocation5 + $0x8] sm:$0xff]  ;;  %s6693_s27 = sld [smem:[#allocation157_spill]] }
  0xab   :  { %v3902_v3 = vpack.c.bf16 %v199_v1, %v198_v0  ;;  %v417_v7 = vld [vmem:[%s6547_s5] sm:$0xff]  ;;  %v418_v8 = vld [vmem:[%s6547_s5 + $0x8] sm:$0xff]  ;;  %v419_v22 = vld [vmem:[%s6547_s5 + $0x10] sm:$0xff]  ;;  %s6694_s13 = sld [smem:[#allocation159_spill]]  ;;  %v4288_v27 = vmov 0   ;;  %vm428_vm1 = vcmask 261120  }
  0xac   :  { %v3906_v10 = vpack.c.bf16 %v418_v8, %v417_v7  ;;  %v420_v23 = vld [vmem:[%s6547_s5 + $0x18] sm:$0xff]  ;;  %4056 = vset.pattern.permute.xlu0 %v4288_v27  ;;  %4057 = vset.pattern.permute.xlu1 %v4288_v27  ;;  %v3156_v42 = vld [vmem:[#allocation7] ss:$0 sm:$0xff]  ;;  %v4637_v27 = vld [vmem:[#allocation2] sm:$0xff]   ;;  %s7055_s2 = sld [smem:[#allocation162_spill]] }
  0xad   :  { %3903 = vmatprep.subr.bf16.mxu0 %v3902_v3  ;;  %v3910_v24 = vpack.c.bf16 %v420_v23, %v419_v22 }
  0xae   :  { %3905 = vmatpush3.bf16.msra.mxu0 %v3902_v3  ;;  %3907 = vmatprep.subr.bf16.mxu1 %v3906_v10 }
  0xaf   :  { %3909 = vmatpush3.bf16.msra.mxu1 %v3906_v10 }
  0xb0   :  { %v166_v2 = vld [vmem:[%s6693_s27] sm:$0xff]  ;;  %v167_v4 = vld [vmem:[%s6693_s27 + $0x8] sm:$0xff]  ;;  %v168_v5 = vld [vmem:[%s6693_s27 + $0x10] sm:$0xff]  ;;  %3911 = vmatprep.subr.bf16.mxu1 %v3910_v24 }
  0xb1   :  { %3534 = vmatprep.mubr.msk.f32.mxu0 %vm207_vm0, %v166_v2  ;;  %v169_v6 = vld [vmem:[%s6693_s27 + $0x18] sm:$0xff]  ;;  %v170_v9 = vld [vmem:[%s6693_s27 + $0x20] sm:$0xff]  ;;  %v171_v11 = vld [vmem:[%s6693_s27 + $0x28] sm:$0xff] }
  0xb2   :  { %3535 = vmatmul.mubr.msk.f32.vlgmr.msra.gmra.mrb[0].mxu0 %vm207_vm0, %v167_v4  ;;  %v172_v12 = vld [vmem:[%s6693_s27 + $0x30] sm:$0xff]  ;;  %v173_v13 = vld [vmem:[%s6693_s27 + $0x38] sm:$0xff]  ;;  %v174_v14 = vld [vmem:[%s6693_s27 + $0x40] sm:$0xff] }
  0xb3   :  { %3537 = vmatprep.mubr.msk.f32.mxu0 %vm207_vm0, %v168_v5  ;;  %v175_v15 = vld [vmem:[%s6693_s27 + $0x48] sm:$0xff]  ;;  %v176_v16 = vld [vmem:[%s6693_s27 + $0x50] sm:$0xff]  ;;  %v177_v17 = vld [vmem:[%s6693_s27 + $0x58] sm:$0xff]  ;;  %3913 = vmatpush3.bf16.msra.mxu1 %v3910_v24 }
  0xb4   :  { %v178_v18 = vld [vmem:[%s6693_s27 + $0x60] sm:$0xff]  ;;  %v179_v19 = vld [vmem:[%s6693_s27 + $0x68] sm:$0xff]  ;;  %v180_v20 = vld [vmem:[%s6693_s27 + $0x70] sm:$0xff] }
  0xb5   :  { %v181_v21 = vld [vmem:[%s6693_s27 + $0x78] sm:$0xff]  ;;  %v182_v25 = vld [vmem:[%s6694_s13] sm:$0xff]  ;;  %v184_v26 = vld [vmem:[%s6694_s13 + $0x10] sm:$0xff] }
  0xb6   :  { %3538 = vmatmul.mubr.msk.f32.gmra.mrb[2].mxu0 %vm207_vm0, %v169_v6  ;;  %656 = vperm.xlu0 %4056, %v182_v25   ;;  %v183_v28 = vld [vmem:[%s6694_s13 + $0x8] sm:$0xff]  ;;  %v185_v29 = vld [vmem:[%s6694_s13 + $0x18] sm:$0xff]  ;;  %v186_v30 = vld [vmem:[%s6694_s13 + $0x20] sm:$0xff] }
  0xb7   :  { %3540 = vmatprep.mubr.msk.f32.mxu0 %vm207_vm0, %v170_v9  ;;  %666 = vperm.xlu1 %4057, %v184_v26   ;;  %v187_v31 = vld [vmem:[%s6694_s13 + $0x28] sm:$0xff]  ;;  %v188_v32 = vld [vmem:[%s6694_s13 + $0x30] sm:$0xff]  ;;  %v189_v33 = vld [vmem:[%s6694_s13 + $0x38] sm:$0xff] }
  0xb8   :  { %v190_v34 = vld [vmem:[%s6694_s13 + $0x40] sm:$0xff]  ;;  %v191_v35 = vld [vmem:[%s6694_s13 + $0x48] sm:$0xff]  ;;  %v192_v36 = vld [vmem:[%s6694_s13 + $0x50] sm:$0xff] }
  0xb9   :  { %v193_v37 = vld [vmem:[%s6694_s13 + $0x58] sm:$0xff]  ;;  %v194_v38 = vld [vmem:[%s6694_s13 + $0x60] sm:$0xff]  ;;  %v195_v39 = vld [vmem:[%s6694_s13 + $0x68] sm:$0xff] }
  0xba   :  { %3541 = vmatmul.mubr.msk.f32.gmra.mrb[4].mxu0 %vm207_vm0, %v171_v11  ;;  %661 = vperm.xlu0 %4056, %v183_v28   ;;  %v196_v40 = vld [vmem:[%s6694_s13 + $0x70] sm:$0xff]  ;;  %v197_v41 = vld [vmem:[%s6694_s13 + $0x78] sm:$0xff]  ;;  %v4640_v28 = vld [vmem:[#allocation2 + $0x20] sm:$0xff]   ;;  %s4289_s13 = smov [#allocation16]  }
  0xbb   :  { %3543 = vmatprep.mubr.msk.f32.mxu0 %vm207_vm0, %v172_v12  ;;  %671 = vperm.xlu1 %4057, %v185_v29   ;;  %s3140_s21 = sshll.u32 %s4289_s13, 4  ;;  %s3141_s21 = int_to_ptr.vmem [resolvable:$true] %s3140_s21 }
  0xbc   :  { %p4247_p9 = scmp.lt.s32.totalorder %s3141_s21, %s3141_s21 }
  0xbe   :  { %3544 = vmatmul.mubr.msk.f32.gmra.mrb[6].mxu0 %vm207_vm0, %v173_v13  ;;  %676 = vperm.xlu0 %4056, %v186_v30  }
  0xbf   :  { %3546 = vmatprep.mubr.msk.f32.mxu0 %vm207_vm0, %v174_v14  ;;  %681 = vperm.xlu1 %4057, %v187_v31  }
  0xc2   :  { %3547 = vmatmul.mubr.msk.f32.gmra.mrb[8].mxu0 %vm207_vm0, %v175_v15  ;;  %686 = vperm.xlu0 %4056, %v188_v32  }
  0xc3   :  { %3549 = vmatprep.mubr.msk.f32.mxu0 %vm207_vm0, %v176_v16  ;;  %691 = vperm.xlu1 %4057, %v189_v33   ;;  %v4654_v33 = vld [vmem:[%s6548_s6] ss:$0 sm:$0xff]  ;;  %s4242_s6 = scalar_lea.vmem %s3141_s21, 2048 }
  0xc4   :  { %p4243_p8 = scmp.ne.s32.totalorder %s3141_s21, %s4242_s6  ;;  %p4248_p10 = scmp.lt.s32.totalorder %s4242_s6, %s4242_s6 }
  0xc6   :  { %3550 = vmatmul.mubr.msk.f32.gmra.mrb[10].mxu0 %vm207_vm0, %v177_v17  ;;  %696 = vperm.xlu0 %4056, %v190_v34   ;;  %p4249_p11 = por %p4248_p10, %p4247_p9 }
  0xc7   :  { %3552 = vmatprep.mubr.msk.f32.mxu0 %vm207_vm0, %v178_v18  ;;  %701 = vperm.xlu1 %4057, %v191_v35  }
  0xc8   :  { %p4250_p12 = pnand %p4249_p11, %p4243_p8 }
  0xca   :  { %3553 = vmatmul.mubr.msk.f32.gmra.mrb[12].mxu0 %vm207_vm0, %v179_v19  ;;  %706 = vperm.xlu0 %4056, %v192_v36  }
  0xcb   :  { %3555 = vmatprep.mubr.msk.f32.mxu0 %vm207_vm0, %v180_v20  ;;  %711 = vperm.xlu1 %4057, %v193_v37  }
  0xce   :  { %3556 = vmatmul.mubr.msk.f32.gmra.mrb[14].mxu0 %vm207_vm0, %v181_v21  ;;  %716 = vperm.xlu0 %4056, %v194_v38  }
  0xcf   :  { %721 = vperm.xlu1 %4057, %v195_v39   ;;  %3606 = vmatprep.mubr.bf16.mxu0 %v4637_v27 }
  0xd2   :  { %726 = vperm.xlu0 %4056, %v196_v40  }
  0xd3   :  { %731 = vperm.xlu1 %4057, %v197_v41  }
 0x135   :  { %v4645_v30 = vpop.permute.xlu0 %656 }
 0x136   :  { %v4643_v29 = vpop.permute.xlu1 %666 }
 0x139   :  { %v4649_v32 = vpop.permute.xlu0 %661 }
 0x13a   :  { %v4647_v31 = vpop.permute.xlu1 %671  ;;  %6696 = vst [vmem:[#allocation24_spill] sm:$0xff] %v4649_v32 }
 0x13b   :  { %6695 = vst [vmem:[#allocation23_spill] sm:$0xff] %v4647_v31 }
 0x13d   :  { %v4660_v39 = vpop.permute.xlu0 %676 }
 0x13e   :  { %v4657_v37 = vpop.permute.xlu1 %681  ;;  %6698 = vst [vmem:[#allocation26_spill] sm:$0xff] %v4660_v39 }
 0x13f   :  { %6697 = vst [vmem:[#allocation25_spill] sm:$0xff] %v4657_v37 }
 0x185   :  { %v3536_v43 = vpop.f32.mrb[0].mxu0 }
 0x186   :  { %v328_v44 = vadd.f32 %v3536_v43, %v3156_v42  ;;  %v322_v45 = vpop.f32.mrb[1].mxu0 }
 0x187   :  { %v323_v46 = vadd.f32 %v3156_v42, %v322_v45 }
 0x188   :  { %v402_v49 = vmax.f32 %v328_v44, 0.0 }
 0x189   :  { %v401_v47 = vmax.f32 %v323_v46, 0.0  ;;  %v3539_v48 = vpop.f32.mrb[2].mxu0 }
 0x18a   :  { %v338_v50 = vadd.f32 %v3539_v48, %v3156_v42  ;;  %v332_v51 = vpop.f32.mrb[3].mxu0 }
 0x18b   :  { %v333_v52 = vadd.f32 %v3156_v42, %v332_v51  ;;  %3566 = vmatprep.mubr.msk.f32.mxu1 %vm428_vm1, %v401_v47 }
 0x18c   :  { %3567 = vmatmul.mubr.msk.f32.vlgmr.msra.gmra.mrb[0].mxu1 %vm428_vm1, %v402_v49  ;;  %v404_v55 = vmax.f32 %v338_v50, 0.0  ;;  %v4674_v49 = vpop.permute.xlu1 %691 }
 0x18d   :  { %v403_v53 = vmax.f32 %v333_v52, 0.0  ;;  %v3542_v54 = vpop.f32.mrb[4].mxu0  ;;  %6699 = vst [vmem:[#allocation27_spill] sm:$0xff] %v4674_v49 }
 0x18e   :  { %v348_v56 = vadd.f32 %v3542_v54, %v3156_v42  ;;  %v342_v57 = vpop.f32.mrb[5].mxu0 }
 0x18f   :  { %v343_v58 = vadd.f32 %v3156_v42, %v342_v57  ;;  %3569 = vmatprep.mubr.msk.f32.mxu1 %vm428_vm1, %v403_v53  ;;  %v4678_v53 = vpop.permute.xlu0 %686 }
 0x190   :  { %3570 = vmatmul.mubr.msk.f32.gmra.mrb[2].mxu1 %vm428_vm1, %v404_v55  ;;  %v406_v61 = vmax.f32 %v348_v56, 0.0  ;;  %6700 = vst [vmem:[#allocation28_spill] sm:$0xff] %v4678_v53 }
 0x191   :  { %v405_v59 = vmax.f32 %v343_v58, 0.0  ;;  %v3545_v60 = vpop.f32.mrb[6].mxu0 }
 0x192   :  { %v358_v62 = vadd.f32 %v3545_v60, %v3156_v42  ;;  %v352_v63 = vpop.f32.mrb[7].mxu0 }
 0x193   :  { %v353_v0 = vadd.f32 %v3156_v42, %v352_v63  ;;  %3572 = vmatprep.mubr.msk.f32.mxu1 %vm428_vm1, %v405_v59 }
 0x194   :  { %3573 = vmatmul.mubr.msk.f32.gmra.mrb[4].mxu1 %vm428_vm1, %v406_v61  ;;  %v408_v3 = vmax.f32 %v358_v62, 0.0 }
 0x195   :  { %v407_v1 = vmax.f32 %v353_v0, 0.0  ;;  %v3548_v2 = vpop.f32.mrb[8].mxu0 }
 0x196   :  { %v368_v4 = vadd.f32 %v3548_v2, %v3156_v42  ;;  %v362_v5 = vpop.f32.mrb[9].mxu0  ;;  %v4693_v2 = vpop.permute.xlu1 %701 }
 0x197   :  { %v363_v6 = vadd.f32 %v3156_v42, %v362_v5  ;;  %3575 = vmatprep.mubr.msk.f32.mxu1 %vm428_vm1, %v407_v1  ;;  %6701 = vst [vmem:[#allocation29_spill] sm:$0xff] %v4693_v2  ;;  %v4698_v5 = vpop.permute.xlu0 %696 }
 0x198   :  { %3576 = vmatmul.mubr.msk.f32.gmra.mrb[6].mxu1 %vm428_vm1, %v408_v3  ;;  %v410_v9 = vmax.f32 %v368_v4, 0.0  ;;  %6702 = vst [vmem:[#allocation30_spill] sm:$0xff] %v4698_v5 }
 0x199   :  { %v409_v7 = vmax.f32 %v363_v6, 0.0  ;;  %v3551_v8 = vpop.f32.mrb[10].mxu0 }
 0x19a   :  { %v378_v10 = vadd.f32 %v3551_v8, %v3156_v42  ;;  %v372_v11 = vpop.f32.mrb[11].mxu0 }
 0x19b   :  { %v373_v12 = vadd.f32 %v3156_v42, %v372_v11  ;;  %3578 = vmatprep.mubr.msk.f32.mxu1 %vm428_vm1, %v409_v7 }
 0x19c   :  { %3579 = vmatmul.mubr.msk.f32.gmra.mrb[8].mxu1 %vm428_vm1, %v410_v9  ;;  %v412_v15 = vmax.f32 %v378_v10, 0.0 }
 0x19d   :  { %v411_v13 = vmax.f32 %v373_v12, 0.0  ;;  %v3554_v14 = vpop.f32.mrb[12].mxu0 }
 0x19e   :  { %v388_v16 = vadd.f32 %v3554_v14, %v3156_v42  ;;  %v382_v17 = vpop.f32.mrb[13].mxu0 }
 0x19f   :  { %v383_v18 = vadd.f32 %v3156_v42, %v382_v17  ;;  %3581 = vmatprep.mubr.msk.f32.mxu1 %vm428_vm1, %v411_v13 }
 0x1a0   :  { %3582 = vmatmul.mubr.msk.f32.gmra.mrb[10].mxu1 %vm428_vm1, %v412_v15  ;;  %v414_v21 = vmax.f32 %v388_v16, 0.0  ;;  %v4712_v16 = vpop.permute.xlu1 %711 }
 0x1a1   :  { %v413_v19 = vmax.f32 %v383_v18, 0.0  ;;  %v3557_v20 = vpop.f32.mrb[14].mxu0  ;;  %6703 = vst [vmem:[#allocation31_spill] sm:$0xff] %v4712_v16 }
 0x1a2   :  { %v398_v22 = vadd.f32 %v3557_v20, %v3156_v42  ;;  %v392_v23 = vpop.f32.mrb[15].mxu0  ;;  %v4716_v20 = vpop.permute.xlu0 %706 }
 0x1a3   :  { %v393_v24 = vadd.f32 %v3156_v42, %v392_v23  ;;  %3584 = vmatprep.mubr.msk.f32.mxu1 %vm428_vm1, %v413_v19 }
 0x1a4   :  { %3585 = vmatmul.mubr.msk.f32.gmra.mrb[12].mxu1 %vm428_vm1, %v414_v21  ;;  %v416_v26 = vmax.f32 %v398_v22, 0.0 }
 0x1a5   :  { %v415_v25 = vmax.f32 %v393_v24, 0.0 }
 0x1a7   :  { %3587 = vmatprep.mubr.msk.f32.mxu1 %vm428_vm1, %v415_v25 }
 0x1a8   :  { %3588 = vmatmul.mubr.msk.f32.gmra.mrb[14].mxu1 %vm428_vm1, %v416_v26 }
 0x1a9   :  { %3646 = vmatprep.mubr.bf16.mxu1 %v4640_v28 }
 0x25f   :  { %v3568_v34 = vpop.f32.mrb[0].mxu1 }
 0x260   :  { %v549_v35 = vadd.f32 %v3568_v34, %v4654_v33  ;;  %v543_v36 = vpop.f32.mrb[1].mxu1 }
 0x261   :  { %v544_v38 = vadd.f32 %v4654_v33, %v543_v36 }
 0x262   :  { %v4662_v40 = vmax.f32 %v549_v35, 0.0 }
 0x263   :  { %v4664_v41 = vmax.f32 %v544_v38, 0.0  ;;  %v3571_v42 = vpop.f32.mrb[2].mxu1 }
 0x264   :  { %v559_v43 = vadd.f32 %v3571_v42, %v4654_v33  ;;  %v553_v44 = vpop.f32.mrb[3].mxu1  ;;  %v735_v45 = vmul.f32 %v4649_v32, %v4662_v40 }
 0x265   :  { %v554_v46 = vadd.f32 %v4654_v33, %v553_v44  ;;  %v734_v47 = vmul.f32 %v4645_v30, %v4664_v41  ;;  %v4731_v44 = vpop.permute.xlu1 %721 }
 0x266   :  { %v4672_v48 = vmax.f32 %v559_v43, 0.0  ;;  %6704 = vst [vmem:[#allocation32_spill] sm:$0xff] %v4731_v44 }
 0x267   :  { %v4676_v50 = vmax.f32 %v554_v46, 0.0  ;;  %v3574_v51 = vpop.f32.mrb[4].mxu1  ;;  %v750_v52 = vpack.c.bf16 %v735_v45, %v734_v47  ;;  %v4736_v47 = vpop.permute.xlu0 %716 }
 0x268   :  { %v569_v54 = vadd.f32 %v3574_v51, %v4654_v33  ;;  %v563_v55 = vpop.f32.mrb[5].mxu1  ;;  %v737_v56 = vmul.f32 %v4647_v31, %v4672_v48  ;;  %6705 = vst [vmem:[#allocation33_spill] sm:$0xff] %v4736_v47 }
 0x269   :  { %v564_v57 = vadd.f32 %v4654_v33, %v563_v55  ;;  %3590 = vmatprep.subr.bf16.mxu0 %v750_v52  ;;  %v736_v58 = vmul.f32 %v4643_v29, %v4676_v50 }
 0x26a   :  { %v4686_v59 = vmax.f32 %v569_v54, 0.0  ;;  %3591 = vmatpush3.bf16.msra.mxu0 %v750_v52 }
 0x26b   :  { %v4688_v60 = vmax.f32 %v564_v57, 0.0  ;;  %v3577_v61 = vpop.f32.mrb[6].mxu1  ;;  %v751_v62 = vpack.c.bf16 %v737_v56, %v736_v58 }
 0x26c   :  { %v579_v63 = vadd.f32 %v3577_v61, %v4654_v33  ;;  %v573_v0 = vpop.f32.mrb[7].mxu1  ;;  %v739_v1 = vmul.f32 %v4657_v37, %v4686_v59 }
 0x26d   :  { %v574_v3 = vadd.f32 %v4654_v33, %v573_v0  ;;  %3592 = vmatprep.subr.bf16.mxu0 %v751_v62  ;;  %v738_v4 = vmul.f32 %v4660_v39, %v4688_v60  ;;  %v4750_v0 = vpop.permute.xlu1 %731 }
 0x26e   :  { %v4700_v6 = vmax.f32 %v579_v63, 0.0  ;;  %3593 = vmatpush3.bf16.msra.mxu0 %v751_v62  ;;  %6706 = vst [vmem:[#allocation34_spill] sm:$0xff] %v4750_v0 }
 0x26f   :  { %v4702_v7 = vmax.f32 %v574_v3, 0.0  ;;  %v3580_v8 = vpop.f32.mrb[8].mxu1  ;;  %v752_v9 = vpack.c.bf16 %v739_v1, %v738_v4  ;;  %v4754_v4 = vpop.permute.xlu0 %726 }
 0x270   :  { %v589_v10 = vadd.f32 %v3580_v8, %v4654_v33  ;;  %v583_v11 = vpop.f32.mrb[9].mxu1  ;;  %v741_v12 = vmul.f32 %v4674_v49, %v4700_v6  ;;  %6707 = vst [vmem:[#allocation35_spill] sm:$0xff] %v4754_v4 }
 0x271   :  { %v584_v13 = vadd.f32 %v4654_v33, %v583_v11  ;;  %3594 = vmatprep.subr.bf16.mxu0 %v752_v9  ;;  %v740_v14 = vmul.f32 %v4678_v53, %v4702_v7  ;;  %v4762_v11 = vld [vmem:[#allocation2 + $0x10] sm:$0xff]  }
 0x272   :  { %v4710_v15 = vmax.f32 %v589_v10, 0.0  ;;  %3595 = vmatpush3.bf16.msra.mxu0 %v752_v9  ;;  %v4760_v10 = vld [vmem:[#allocation2 + $0x8] sm:$0xff]  }
 0x273   :  { %v4714_v17 = vmax.f32 %v584_v13, 0.0  ;;  %v3583_v18 = vpop.f32.mrb[10].mxu1  ;;  %v753_v19 = vpack.c.bf16 %v741_v12, %v740_v14  ;;  %v4766_v12 = vld [vmem:[#allocation2 + $0x18] sm:$0xff]   ;;  %v4770_v13 = vld [vmem:[#allocation2 + $0x28] sm:$0xff]   ;;  %v4772_v14 = vld [vmem:[#allocation2 + $0x30] sm:$0xff]  }
 0x274   :  { %v599_v21 = vadd.f32 %v3583_v18, %v4654_v33  ;;  %v593_v22 = vpop.f32.mrb[11].mxu1  ;;  %v743_v23 = vmul.f32 %v4693_v2, %v4710_v15  ;;  %v4776_v18 = vld [vmem:[#allocation2 + $0x38] sm:$0xff]  }
 0x275   :  { %v594_v24 = vadd.f32 %v4654_v33, %v593_v22  ;;  %3596 = vmatprep.subr.bf16.mxu0 %v753_v19  ;;  %v742_v25 = vmul.f32 %v4698_v5, %v4714_v17 }
 0x276   :  { %v4724_v26 = vmax.f32 %v599_v21, 0.0  ;;  %3597 = vmatpush3.bf16.msra.mxu0 %v753_v19 }
 0x277   :  { %v4726_v34 = vmax.f32 %v594_v24, 0.0  ;;  %v3586_v35 = vpop.f32.mrb[12].mxu1  ;;  %v754_v36 = vpack.c.bf16 %v743_v23, %v742_v25 }
 0x278   :  { %v609_v38 = vadd.f32 %v3586_v35, %v4654_v33  ;;  %v603_v42 = vpop.f32.mrb[13].mxu1  ;;  %v745_v43 = vmul.f32 %v4712_v16, %v4724_v26 }
 0x279   :  { %v604_v45 = vadd.f32 %v4654_v33, %v603_v42  ;;  %3598 = vmatprep.subr.bf16.mxu0 %v754_v36  ;;  %v744_v46 = vmul.f32 %v4716_v20, %v4726_v34 }
 0x27a   :  { %v4738_v51 = vmax.f32 %v609_v38, 0.0  ;;  %3599 = vmatpush3.bf16.msra.mxu0 %v754_v36 }
 0x27b   :  { %v4740_v52 = vmax.f32 %v604_v45, 0.0  ;;  %v3589_v54 = vpop.f32.mrb[14].mxu1  ;;  %v755_v55 = vpack.c.bf16 %v745_v43, %v744_v46 }
 0x27c   :  { %v619_v56 = vadd.f32 %v3589_v54, %v4654_v33  ;;  %v613_v57 = vpop.f32.mrb[15].mxu1  ;;  %v747_v58 = vmul.f32 %v4731_v44, %v4738_v51 }
 0x27d   :  { %v614_v61 = vadd.f32 %v4654_v33, %v613_v57  ;;  %3600 = vmatprep.subr.bf16.mxu0 %v755_v55  ;;  %v746_v62 = vmul.f32 %v4736_v47, %v4740_v52 }
 0x27e   :  { %v4748_v63 = vmax.f32 %v619_v56, 0.0  ;;  %3601 = vmatpush3.bf16.msra.mxu0 %v755_v55 }
 0x27f   :  { %v4752_v1 = vmax.f32 %v614_v61, 0.0  ;;  %v756_v3 = vpack.c.bf16 %v747_v58, %v746_v62 }
 0x280   :  { %v749_v8 = vmul.f32 %v4750_v0, %v4748_v63 }
 0x281   :  { %3602 = vmatprep.subr.bf16.mxu0 %v756_v3  ;;  %v748_v33 = vmul.f32 %v4754_v4, %v4752_v1 }
 0x282   :  { %3603 = vmatpush3.bf16.msra.mxu0 %v756_v3 }
 0x283   :  { %v757_v9 = vpack.c.bf16 %v749_v8, %v748_v33 }
 0x285   :  { %3604 = vmatprep.subr.bf16.mxu0 %v757_v9 }
 0x286   :  { %3605 = vmatpush3.bf16.msra.mxu0 %v757_v9 }
 0x289   :  { %3607 = vmatmul.mubr.bf16.vlgmr.msra.gmra.mrb[16].mxu0 %v4760_v10 }
 0x28a   :  { %3610 = vmatprep.mubr.bf16.mxu0 %v4762_v11 }
 0x291   :  { %3611 = vmatmul.mubr.bf16.gmra.mrb[20].mxu0 %v4766_v12 }
 0x292   :  { %3614 = vmatprep.mubr.bf16.mxu0 %v4640_v28 }
 0x299   :  { %3615 = vmatmul.mubr.bf16.gmra.mrb[24].mxu0 %v4770_v13 }
 0x29a   :  { %3618 = vmatprep.mubr.bf16.mxu0 %v4772_v14 }
 0x2a1   :  { %3619 = vmatmul.mubr.bf16.gmra.mrb[28].mxu0 %v4776_v18 }
 0x2a2   :  { %3638 = vmatprep.mubr.bf16.mxu0 %v4637_v27 }
 0x35c   :  { %v3608_v19 = vpop.f32.mrb[16].mxu0 }
 0x35d   :  { %v840_v21 = vpop.f32.mrb[17].mxu0  ;;  %v4787_v25 = vmul.f32 %v3608_v19, %v4643_v29 }
 0x35e   :  { %v4781_v22 = vmul.f32 %v840_v21, %v4645_v30  ;;  %v3609_v28 = vpop.f32.mrb[18].mxu0 }
 0x35f   :  { %v4784_v23 = vmul.f32 %v3609_v28, %v4647_v31  ;;  %v843_v24 = vpop.f32.mrb[19].mxu0  ;;  %v921_v45 = vmul.f32 %v4787_v25, %v4643_v29 }
 0x360   :  { %6708 = vst [vmem:[#allocation36_spill] sm:$0xff] %v4781_v22  ;;  %v4790_v35 = vmul.f32 %v843_v24, %v4649_v32  ;;  %v919_v36 = vmul.f32 %v4781_v22, %v4645_v30 }
 0x361   :  { %v922_v38 = vmul.f32 %v4784_v23, %v4647_v31 }
 0x362   :  { %6709 = vst [vmem:[#allocation37_spill] sm:$0xff] %v4790_v35  ;;  %v920_v27 = vmul.f32 %v4790_v35, %v4649_v32 }
 0x363   :  { %v936_v56 = vpack.c.bf16 %v922_v38, %v921_v45 }
 0x364   :  { %v3612_v42 = vpop.f32.mrb[20].mxu0  ;;  %v935_v43 = vpack.c.bf16 %v920_v27, %v919_v36 }
 0x365   :  { %v856_v46 = vpop.f32.mrb[21].mxu0  ;;  %v4807_v61 = vmul.f32 %v3612_v42, %v4678_v53 }
 0x366   :  { %v4801_v54 = vmul.f32 %v856_v46, %v4660_v39  ;;  %v3613_v55 = vpop.f32.mrb[22].mxu0  ;;  %3622 = vmatprep.subr.bf16.mxu0 %v935_v43  ;;  %3994 = vmatprep.subr.bf16.mxu1 %v935_v43 }
 0x367   :  { %v4804_v57 = vmul.f32 %v3613_v55, %v4674_v49  ;;  %v859_v58 = vpop.f32.mrb[23].mxu0  ;;  %3623 = vmatpush3.bf16.msra.mxu0 %v935_v43  ;;  %4002 = vmatpush3.bf16.msra.mxu1 %v935_v43  ;;  %v925_v21 = vmul.f32 %v4807_v61, %v4678_v53 }
 0x368   :  { %v4810_v62 = vmul.f32 %v859_v58, %v4657_v37  ;;  %3624 = vmatprep.subr.bf16.mxu0 %v936_v56  ;;  %3995 = vmatprep.subr.bf16.mxu1 %v936_v56  ;;  %v923_v3 = vmul.f32 %v4801_v54, %v4660_v39  ;;  %v4940_v39 = vmul.f32 0.0, %v4686_v59 }
 0x369   :  { %v926_v33 = vmul.f32 %v4804_v57, %v4674_v49  ;;  %v1098_v49 = vld [vmem:[%s6550_s8 + $0x18] sm:$0xff] }
 0x36a   :  { %v924_v8 = vmul.f32 %v4810_v62, %v4657_v37  ;;  %v1509_v37 = vld [vmem:[#allocation11 + $0x18] sm:$0xff] }
 0x36b   :  { %3625 = vmatpush3.bf16.msra.mxu0 %v936_v56  ;;  %4003 = vmatpush3.bf16.msra.mxu1 %v936_v56  ;;  %v938_v27 = vpack.c.bf16 %v926_v33, %v925_v21 }
 0x36c   :  { %v3616_v9 = vpop.f32.mrb[24].mxu0  ;;  %v937_v19 = vpack.c.bf16 %v924_v8, %v923_v3 }
 0x36d   :  { %v872_v28 = vpop.f32.mrb[25].mxu0  ;;  %v4827_v43 = vmul.f32 %v3616_v9, %v4716_v20 }
 0x36e   :  { %v4821_v24 = vmul.f32 %v872_v28, %v4698_v5  ;;  %v3617_v36 = vpop.f32.mrb[26].mxu0  ;;  %3626 = vmatprep.subr.bf16.mxu0 %v937_v19  ;;  %3996 = vmatprep.subr.bf16.mxu1 %v937_v19 }
 0x36f   :  { %v4824_v38 = vmul.f32 %v3617_v36, %v4712_v16  ;;  %v875_v42 = vpop.f32.mrb[27].mxu0  ;;  %3627 = vmatpush3.bf16.msra.mxu0 %v937_v19  ;;  %4004 = vmatpush3.bf16.msra.mxu1 %v937_v19  ;;  %6712 = vst [vmem:[#allocation40_spill] sm:$0xff] %v4827_v43  ;;  %v929_v8 = vmul.f32 %v4827_v43, %v4716_v20 }
 0x370   :  { %6710 = vst [vmem:[#allocation38_spill] sm:$0xff] %v4821_v24  ;;  %v4830_v45 = vmul.f32 %v875_v42, %v4693_v2  ;;  %3628 = vmatprep.subr.bf16.mxu0 %v938_v27  ;;  %3997 = vmatprep.subr.bf16.mxu1 %v938_v27  ;;  %v927_v46 = vmul.f32 %v4821_v24, %v4698_v5 }
 0x371   :  { %6711 = vst [vmem:[#allocation39_spill] sm:$0xff] %v4824_v38  ;;  %v930_v56 = vmul.f32 %v4824_v38, %v4712_v16 }
 0x372   :  { %6713 = vst [vmem:[#allocation41_spill] sm:$0xff] %v4830_v45  ;;  %v928_v55 = vmul.f32 %v4830_v45, %v4693_v2  ;;  %v1483_v2 = vmul.f32 0.0, %v4738_v51 }
 0x373   :  { %3629 = vmatpush3.bf16.msra.mxu0 %v938_v27  ;;  %4005 = vmatpush3.bf16.msra.mxu1 %v938_v27  ;;  %v940_v21 = vpack.c.bf16 %v930_v56, %v929_v8  ;;  %v1506_v8 = vld [vmem:[#allocation11] sm:$0xff] }
 0x374   :  { %v3620_v58 = vpop.f32.mrb[28].mxu0  ;;  %v939_v3 = vpack.c.bf16 %v928_v55, %v927_v46 }
 0x375   :  { %v888_v33 = vpop.f32.mrb[29].mxu0  ;;  %v4847_v27 = vmul.f32 %v3620_v58, %v4754_v4 }
 0x376   :  { %v4841_v9 = vmul.f32 %v888_v33, %v4736_v47  ;;  %v3621_v19 = vpop.f32.mrb[30].mxu0  ;;  %3630 = vmatprep.subr.bf16.mxu0 %v939_v3  ;;  %3998 = vmatprep.subr.bf16.mxu1 %v939_v3  ;;  %v1507_v33 = vld [vmem:[#allocation11 + $0x8] sm:$0xff] }
 0x377   :  { %v4844_v28 = vmul.f32 %v3621_v19, %v4750_v0  ;;  %v891_v36 = vpop.f32.mrb[31].mxu0  ;;  %3631 = vmatpush3.bf16.msra.mxu0 %v939_v3  ;;  %4006 = vmatpush3.bf16.msra.mxu1 %v939_v3  ;;  %6716 = vst [vmem:[#allocation44_spill] sm:$0xff] %v4847_v27  ;;  %v933_v58 = vmul.f32 %v4847_v27, %v4754_v4  ;;  %v1095_v19 = vld [vmem:[%s6550_s8] sm:$0xff]  ;;  %v1481_v4 = vmul.f32 0.0, %v4724_v26 }
 0x378   :  { %6714 = vst [vmem:[#allocation42_spill] sm:$0xff] %v4841_v9  ;;  %v4850_v42 = vmul.f32 %v891_v36, %v4731_v44  ;;  %3632 = vmatprep.subr.bf16.mxu0 %v940_v21  ;;  %3999 = vmatprep.subr.bf16.mxu1 %v940_v21  ;;  %v931_v46 = vmul.f32 %v4841_v9, %v4736_v47  ;;  %v1096_v36 = vld [vmem:[%s6550_s8 + $0x8] sm:$0xff]  ;;  %v1064_v47 = vmul.f32 3.0, %v4686_v59 }
 0x379   :  { %6715 = vst [vmem:[#allocation43_spill] sm:$0xff] %v4844_v28  ;;  %v934_v56 = vmul.f32 %v4844_v28, %v4750_v0  ;;  %v1097_v0 = vld [vmem:[%s6550_s8 + $0x10] sm:$0xff] }
 0x37a   :  { %6717 = vst [vmem:[#allocation45_spill] sm:$0xff] %v4850_v42  ;;  %v932_v55 = vmul.f32 %v4850_v42, %v4731_v44 }
 0x37b   :  { %3633 = vmatpush3.bf16.msra.mxu0 %v940_v21  ;;  %4007 = vmatpush3.bf16.msra.mxu1 %v940_v21  ;;  %v942_v44 = vpack.c.bf16 %v934_v56, %v933_v58  ;;  %v3922_v21 = vpack.c.bf16 %v1507_v33, %v1506_v8  ;;  %v2278_v58 = vld [vmem:[%s6558_s16 + $0x28] sm:$0xff]  ;;  %v1059_v8 = vmul.f32 3.0, %v4664_v41  ;;  %v4884_v33 = vmul.f32 0.0, %v4664_v41 }
 0x37c   :  { %v941_v3 = vpack.c.bf16 %v932_v55, %v931_v46  ;;  %v3914_v46 = vpack.c.bf16 %v1096_v36, %v1095_v19  ;;  %v1508_v55 = vld [vmem:[#allocation11 + $0x10] sm:$0xff]  ;;  %v1060_v36 = vmul.f32 3.0, %v4662_v40 }
 0x37d   :  { %v3926_v56 = vpack.c.bf16 %v1509_v37, %v1508_v55  ;;  %v4909_v55 = vmul.f32 0.0, %v4676_v50 }
 0x37e   :  { %3634 = vmatprep.subr.bf16.mxu0 %v941_v3  ;;  %4000 = vmatprep.subr.bf16.mxu1 %v941_v3 }
 0x37f   :  { %3635 = vmatpush3.bf16.msra.mxu0 %v941_v3  ;;  %4008 = vmatpush3.bf16.msra.mxu1 %v941_v3  ;;  %v2277_v3 = vld [vmem:[%s6558_s16 + $0x20] sm:$0xff] }
 0x380   :  { %3636 = vmatprep.subr.bf16.mxu0 %v942_v44  ;;  %4001 = vmatprep.subr.bf16.mxu1 %v942_v44  ;;  %v3938_v37 = vpack.c.bf16 %v2278_v58, %v2277_v3 }
 0x383   :  { %3637 = vmatpush3.bf16.msra.mxu0 %v942_v44  ;;  %4009 = vmatpush3.bf16.msra.mxu1 %v942_v44  ;;  %v3918_v44 = vpack.c.bf16 %v1098_v49, %v1097_v0  ;;  %v1902_v49 = vld [vmem:[%s6556_s14 + $0x8] sm:$0xff]  ;;  %v4892_v0 = vld [vmem:[#allocation8] ss:$0 sm:$0xff] }
 0x384   :  { %3923 = vmatprep.subr.bf16.mxu1 %v3922_v21  ;;  %3915 = vmatprep.subr.bf16.mxu0 %v3914_v46 }
 0x386   :  { %3639 = vmatmul.mubr.bf16.vlgmr.msra.gmra.mrb[32].mxu0 %v4760_v10  ;;  %3647 = vmatmul.mubr.bf16.vlgmr.msra.gmra.mrb[16].mxu1 %v4770_v13  ;;  %v1901_v10 = vld [vmem:[%s6556_s14] sm:$0xff] }
 0x387   :  { %3925 = vmatpush3.bf16.msra.mxu1 %v3922_v21  ;;  %3642 = vmatprep.mubr.bf16.mxu0 %v4762_v11  ;;  %v4894_v11 = vld [vmem:[#allocation10] ss:$0 sm:$0xff]  ;;  %v3930_v13 = vpack.c.bf16 %v1902_v49, %v1901_v10  ;;  %v4905_v21 = vmul.f32 0.0, %v4662_v40  ;;  %v1063_v49 = vmul.f32 3.0, %v4688_v60 }
 0x388   :  { %3650 = vmatprep.mubr.bf16.mxu1 %v4772_v14  ;;  %3927 = vmatprep.subr.bf16.mxu1 %v3926_v56  ;;  %v1079_v14 = vmul.f32 %v4892_v0, %v1059_v8  ;;  %v1490_v19 = vmul.f32 %v4894_v11, %v4884_v33  ;;  %v4923_v8 = vmul.f32 0.0, %v4672_v48  ;;  %v1492_v10 = vmul.f32 %v4894_v11, %v4909_v55 }
 0x389   :  { %3917 = vmatpush3.bf16.msra.mxu0 %v3914_v46  ;;  %v1061_v46 = vmul.f32 3.0, %v4676_v50  ;;  %v1491_v3 = vmul.f32 %v4894_v11, %v4905_v21 }
 0x38a   :  { %3919 = vmatprep.subr.bf16.mxu0 %v3918_v44 }
 0x38b   :  { %3929 = vmatpush3.bf16.msra.mxu1 %v3926_v56  ;;  %v1080_v56 = vmul.f32 %v4892_v0, %v1060_v36  ;;  %v1081_v58 = vmul.f32 %v4892_v0, %v1061_v46  ;;  %v1493_v46 = vmul.f32 %v4894_v11, %v4923_v8 }
 0x38c   :  { %3939 = vmatprep.subr.bf16.mxu1 %v3938_v37 }
 0x38d   :  { %3921 = vmatpush3.bf16.msra.mxu0 %v3918_v44  ;;  %v1062_v44 = vmul.f32 3.0, %v4672_v48 }
 0x38e   :  { %3643 = vmatmul.mubr.bf16.gmra.mrb[36].mxu0 %v4766_v12  ;;  %3651 = vmatmul.mubr.bf16.gmra.mrb[20].mxu1 %v4776_v18  ;;  %v1903_v12 = vld [vmem:[%s6556_s14 + $0x10] sm:$0xff]  ;;  %v1904_v18 = vld [vmem:[%s6556_s14 + $0x18] sm:$0xff] }
 0x38f   :  { %3662 = vmatprep.mubr.msk.f32.mxu0 %vm428_vm1, %v1079_v14  ;;  %3694 = vmatprep.mubr.msk.f32.mxu1 %vm428_vm1, %v1490_v19  ;;  %v4929_v14 = vmul.f32 0.0, %v4688_v60  ;;  %v3934_v19 = vpack.c.bf16 %v1904_v18, %v1903_v12  ;;  %v1082_v36 = vmul.f32 %v4892_v0, %v1062_v44  ;;  %v1083_v12 = vmul.f32 %v4892_v0, %v1063_v49 }
 0x390   :  { %3931 = vmatprep.subr.bf16.mxu0 %v3930_v13  ;;  %v4958_v44 = vmul.f32 0.0, %v4700_v6 }
 0x391   :  { %v1494_v18 = vmul.f32 %v4894_v11, %v4929_v14 }
 0x396   :  { %3663 = vmatmul.mubr.msk.f32.vlgmr.msra.gmra.mrb[40].mxu0 %vm428_vm1, %v1080_v56  ;;  %3695 = vmatmul.mubr.msk.f32.vlgmr.msra.gmra.mrb[24].mxu1 %vm428_vm1, %v1491_v3  ;;  %v1065_v56 = vmul.f32 3.0, %v4702_v7  ;;  %v4947_v3 = vmul.f32 0.0, %v4702_v7 }
 0x397   :  { %3665 = vmatprep.mubr.msk.f32.mxu0 %vm428_vm1, %v1081_v58  ;;  %3697 = vmatprep.mubr.msk.f32.mxu1 %vm428_vm1, %v1492_v10  ;;  %v1066_v58 = vmul.f32 3.0, %v4700_v6 }
 0x398   :  { %3933 = vmatpush3.bf16.msra.mxu0 %v3930_v13  ;;  %3941 = vmatpush3.bf16.msra.mxu1 %v3938_v37  ;;  %v1084_v37 = vmul.f32 %v4892_v0, %v1064_v47  ;;  %v1495_v13 = vmul.f32 %v4894_v11, %v4940_v39  ;;  %v1085_v10 = vmul.f32 %v4892_v0, %v1065_v56 }
 0x399   :  { %3935 = vmatprep.subr.bf16.mxu0 %v3934_v19  ;;  %v1496_v49 = vmul.f32 %v4894_v11, %v4947_v3  ;;  %v1086_v47 = vmul.f32 %v4892_v0, %v1066_v58 }
 0x39a   :  { %3666 = vmatmul.mubr.msk.f32.gmra.mrb[42].mxu0 %vm428_vm1, %v1082_v36  ;;  %3698 = vmatmul.mubr.msk.f32.gmra.mrb[26].mxu1 %vm428_vm1, %v1493_v46  ;;  %v1067_v36 = vmul.f32 3.0, %v4714_v17  ;;  %v4965_v46 = vmul.f32 0.0, %v4714_v17 }
 0x39b   :  { %3668 = vmatprep.mubr.msk.f32.mxu0 %vm428_vm1, %v1083_v12  ;;  %3700 = vmatprep.mubr.msk.f32.mxu1 %vm428_vm1, %v1494_v18  ;;  %v1068_v12 = vmul.f32 3.0, %v4710_v15  ;;  %v4976_v18 = vmul.f32 0.0, %v4710_v15 }
 0x39c   :  { %3937 = vmatpush3.bf16.msra.mxu0 %v3934_v19  ;;  %v1497_v19 = vmul.f32 %v4894_v11, %v4958_v44  ;;  %v1087_v56 = vmul.f32 %v4892_v0, %v1067_v36  ;;  %v1070_v36 = vmul.f32 3.0, %v4724_v26 }
 0x39d   :  { %v1088_v58 = vmul.f32 %v4892_v0, %v1068_v12 }
 0x39e   :  { %3669 = vmatmul.mubr.msk.f32.gmra.mrb[44].mxu0 %vm428_vm1, %v1084_v37  ;;  %3701 = vmatmul.mubr.msk.f32.gmra.mrb[28].mxu1 %vm428_vm1, %v1495_v13  ;;  %v1498_v37 = vmul.f32 %v4894_v11, %v4965_v46  ;;  %v1069_v13 = vmul.f32 3.0, %v4726_v34  ;;  %v1090_v12 = vmul.f32 %v4892_v0, %v1070_v36  ;;  %v1503_v36 = vmul.f32 %v4894_v11, %v1483_v2 }
 0x39f   :  { %3671 = vmatprep.mubr.msk.f32.mxu0 %vm428_vm1, %v1085_v10  ;;  %3703 = vmatprep.mubr.msk.f32.mxu1 %vm428_vm1, %v1496_v49  ;;  %v4983_v10 = vmul.f32 0.0, %v4726_v34  ;;  %v1499_v49 = vmul.f32 %v4894_v11, %v4976_v18 }
 0x3a0   :  { %v1089_v53 = vmul.f32 %v4892_v0, %v1069_v13  ;;  %v1072_v13 = vmul.f32 3.0, %v4738_v51 }
 0x3a2   :  { %3672 = vmatmul.mubr.msk.f32.gmra.mrb[46].mxu0 %vm428_vm1, %v1086_v47  ;;  %3704 = vmatmul.mubr.msk.f32.gmra.mrb[30].mxu1 %vm428_vm1, %v1497_v19  ;;  %v1500_v47 = vmul.f32 %v4894_v11, %v4983_v10  ;;  %v1071_v19 = vmul.f32 3.0, %v4740_v52 }
 0x3a3   :  { %3674 = vmatprep.mubr.msk.f32.mxu0 %vm428_vm1, %v1087_v56  ;;  %3706 = vmatprep.mubr.msk.f32.mxu1 %vm428_vm1, %v1498_v37  ;;  %v1482_v56 = vmul.f32 0.0, %v4740_v52  ;;  %v1501_v37 = vmul.f32 %v4894_v11, %v1481_v4 }
 0x3a4   :  { %v1091_v32 = vmul.f32 %v4892_v0, %v1071_v19  ;;  %v1485_v19 = vmul.f32 0.0, %v4748_v63 }
 0x3a5   :  { %v1502_v16 = vmul.f32 %v4894_v11, %v1482_v56 }
 0x3a6   :  { %3675 = vmatmul.mubr.msk.f32.gmra.mrb[48].mxu0 %vm428_vm1, %v1088_v58  ;;  %3707 = vmatmul.mubr.msk.f32.gmra.mrb[32].mxu1 %vm428_vm1, %v1499_v49  ;;  %v1073_v58 = vmul.f32 3.0, %v4752_v1  ;;  %v1484_v49 = vmul.f32 0.0, %v4752_v1 }
 0x3a7   :  { %3677 = vmatprep.mubr.msk.f32.mxu0 %vm428_vm1, %v1089_v53  ;;  %3709 = vmatprep.mubr.msk.f32.mxu1 %vm428_vm1, %v1500_v47  ;;  %v1092_v53 = vmul.f32 %v4892_v0, %v1072_v13  ;;  %v1074_v47 = vmul.f32 3.0, %v4748_v63 }
 0x3a8   :  { %v1093_v31 = vmul.f32 %v4892_v0, %v1073_v58  ;;  %v1504_v5 = vmul.f32 %v4894_v11, %v1484_v49 }
 0x3aa   :  { %3678 = vmatmul.mubr.msk.f32.gmra.mrb[50].mxu0 %vm428_vm1, %v1090_v12  ;;  %3710 = vmatmul.mubr.msk.f32.gmra.mrb[34].mxu1 %vm428_vm1, %v1501_v37  ;;  %v3238_v12 = vld [vmem:[#allocation14] ss:$0 sm:$0xff] }
 0x3ab   :  { %3680 = vmatprep.mubr.msk.f32.mxu0 %vm428_vm1, %v1091_v32  ;;  %3712 = vmatprep.mubr.msk.f32.mxu1 %vm428_vm1, %v1502_v16  ;;  %v1094_v32 = vmul.f32 %v4892_v0, %v1074_v47  ;;  %v1505_v16 = vmul.f32 %v4894_v11, %v1485_v19  ;;  %v1885_v37 = vmul.f32 %v3238_v12, %v4884_v33 }
 0x3ac   :  { %v1886_v13 = vmul.f32 %v3238_v12, %v4905_v21  ;;  %v1887_v58 = vmul.f32 %v3238_v12, %v4909_v55  ;;  %v1890_v33 = vmul.f32 %v3238_v12, %v4940_v39  ;;  %v1891_v0 = vmul.f32 %v3238_v12, %v4947_v3 }
 0x3ad   :  { %v1892_v11 = vmul.f32 %v3238_v12, %v4958_v44  ;;  %v1893_v21 = vmul.f32 %v3238_v12, %v4965_v46  ;;  %v1894_v55 = vmul.f32 %v3238_v12, %v4976_v18  ;;  %v1896_v39 = vmul.f32 %v3238_v12, %v1481_v4  ;;  %v2279_v18 = vld [vmem:[%s6558_s16 + $0x30] sm:$0xff]  ;;  %v2280_v4 = vld [vmem:[%s6558_s16 + $0x38] sm:$0xff] }
 0x3ae   :  { %3681 = vmatmul.mubr.msk.f32.gmra.mrb[52].mxu0 %vm428_vm1, %v1092_v53  ;;  %3713 = vmatmul.mubr.msk.f32.gmra.mrb[36].mxu1 %vm428_vm1, %v1503_v36  ;;  %v1898_v3 = vmul.f32 %v3238_v12, %v1483_v2  ;;  %v1899_v44 = vmul.f32 %v3238_v12, %v1484_v49  ;;  %v1900_v46 = vmul.f32 %v3238_v12, %v1485_v19  ;;  %v2273_v2 = vld [vmem:[%s6558_s16] sm:$0xff]  ;;  %v5071_v53 = vld [vmem:[#allocation8 + $0x1] ss:$0 sm:$0xff]  ;;  %v5073_v36 = vld [vmem:[#allocation10 + $0x1] ss:$0 sm:$0xff] }
 0x3af   :  { %3683 = vmatprep.mubr.msk.f32.mxu0 %vm428_vm1, %v1093_v31  ;;  %3715 = vmatprep.mubr.msk.f32.mxu1 %vm428_vm1, %v1504_v5  ;;  %v1888_v31 = vmul.f32 %v3238_v12, %v4923_v8  ;;  %v1889_v5 = vmul.f32 %v3238_v12, %v4929_v14  ;;  %v1895_v8 = vmul.f32 %v3238_v12, %v4983_v10 }
 0x3b0   :  { %v1897_v14 = vmul.f32 %v3238_v12, %v1482_v56  ;;  %v3942_v10 = vpack.c.bf16 %v2280_v4, %v2279_v18  ;;  %v2274_v56 = vld [vmem:[%s6558_s16 + $0x8] sm:$0xff]  ;;  %v1303_v47 = vmul.f32 %v5071_v53, %v4781_v22  ;;  %v1714_v19 = vmul.f32 %v5073_v36, %v4781_v22 }
 0x3b1   :  { %v5068_v49 = vpack.c.bf16 %v2274_v56, %v2273_v2  ;;  %v1304_v12 = vmul.f32 %v5071_v53, %v4790_v35 }
 0x3b2   :  { %3684 = vmatmul.mubr.msk.f32.gmra.mrb[54].mxu0 %vm428_vm1, %v1094_v32  ;;  %3716 = vmatmul.mubr.msk.f32.gmra.mrb[38].mxu1 %vm428_vm1, %v1505_v16  ;;  %v1306_v32 = vmul.f32 %v5071_v53, %v4784_v23  ;;  %v1717_v16 = vmul.f32 %v5073_v36, %v4784_v23 }
 0x3b3   :  { %3726 = vmatprep.mubr.msk.f32.mxu0 %vm428_vm1, %v1885_v37  ;;  %3943 = vmatprep.subr.bf16.mxu1 %v3942_v10  ;;  %6718 = vst [vmem:[#allocation46_spill] sm:$0xff] %v5068_v49  ;;  %v1715_v37 = vmul.f32 %v5073_v36, %v4790_v35 }
 0x3b4   :  { %3945 = vmatpush3.bf16.msra.mxu1 %v3942_v10 }
 0x3b5   :  { %3947 = vmatprep.subr.bf16.mxu1 %v5068_v49 }
 0x3b6   :  { %3727 = vmatmul.mubr.msk.f32.vlgmr.msra.gmra.mrb[56].mxu0 %vm428_vm1, %v1886_v13  ;;  %v5088_v13 = vsub.f32 %v4664_v41, %v1303_v47 }
 0x3b7   :  { %3729 = vmatprep.mubr.msk.f32.mxu0 %vm428_vm1, %v1887_v58  ;;  %v1305_v58 = vmul.f32 %v5071_v53, %v4787_v25 }
 0x3b8   :  { %6719 = vst [vmem:[#allocation47_spill] sm:$0xff] %v5088_v13 }
 0x3b9   :  { %v5125_v18 = vsub.f32 %v4676_v50, %v1305_v58 }
 0x3ba   :  { %3730 = vmatmul.mubr.msk.f32.gmra.mrb[58].mxu0 %vm428_vm1, %v1888_v31  ;;  %v1716_v31 = vmul.f32 %v5073_v36, %v4787_v25 }
 0x3bb   :  { %3732 = vmatprep.mubr.msk.f32.mxu0 %vm428_vm1, %v1889_v5  ;;  %v5095_v5 = vsub.f32 %v4664_v41, %v1714_v19  ;;  %6723 = vst [vmem:[#allocation51_spill] sm:$0xff] %v5125_v18 }
 0x3bc   :  { %v5128_v4 = vsub.f32 %v4676_v50, %v1716_v31 }
 0x3bd   :  { %6720 = vst [vmem:[#allocation48_spill] sm:$0xff] %v5095_v5  ;;  %v5131_v10 = vmul.f32 3.0, %v5095_v5 }
 0x3be   :  { %3733 = vmatmul.mubr.msk.f32.gmra.mrb[60].mxu0 %vm428_vm1, %v1890_v33  ;;  %v1307_v33 = vmul.f32 %v5071_v53, %v4801_v54  ;;  %6724 = vst [vmem:[#allocation52_spill] sm:$0xff] %v5128_v4 }
 0x3bf   :  { %3735 = vmatprep.mubr.msk.f32.mxu0 %vm428_vm1, %v1891_v0  ;;  %v1718_v0 = vmul.f32 %v5073_v36, %v4801_v54  ;;  %6725 = vst [vmem:[#allocation53_spill] sm:$0xff] %v5131_v10 }
 0x3c0   :  { %v5134_v2 = vsub.f32 %v4688_v60, %v1307_v33  ;;  %v1720_v33 = vmul.f32 %v5073_v36, %v4807_v61 }
 0x3c1   :  { %v5137_v56 = vsub.f32 %v4688_v60, %v1718_v0 }
 0x3c2   :  { %3736 = vmatmul.mubr.msk.f32.gmra.mrb[62].mxu0 %vm428_vm1, %v1892_v11  ;;  %v1310_v11 = vmul.f32 %v5071_v53, %v4804_v57  ;;  %6726 = vst [vmem:[#allocation54_spill] sm:$0xff] %v5134_v2 }
 0x3c3   :  { %3738 = vmatprep.mubr.msk.f32.mxu0 %vm428_vm1, %v1893_v21  ;;  %v1308_v21 = vmul.f32 %v5071_v53, %v4810_v62  ;;  %6727 = vst [vmem:[#allocation55_spill] sm:$0xff] %v5137_v56  ;;  %v5179_v49 = vmul.f32 3.0, %v5137_v56  ;;  %v5199_v56 = vsub.f32 %v4702_v7, %v1720_v33  ;;  %v1724_v33 = vmul.f32 %v5073_v36, %v4827_v43 }
 0x3c4   :  { %v5140_v47 = vsub.f32 %v4700_v6, %v1310_v11  ;;  %v5168_v11 = vmul.f32 -3.0, %v5125_v18 }
 0x3c5   :  { %v5143_v19 = vsub.f32 %v4686_v59, %v1308_v21  ;;  %v5171_v21 = vmul.f32 3.0, %v5128_v4  ;;  %6737 = vst [vmem:[#allocation65_spill] sm:$0xff] %v5179_v49  ;;  %6743 = vst [vmem:[#allocation71_spill] sm:$0xff] %v5199_v56  ;;  %v1314_v49 = vmul.f32 %v5071_v53, %v4824_v38 }
 0x3c6   :  { %3739 = vmatmul.mubr.msk.f32.gmra.mrb[64].mxu0 %vm428_vm1, %v1894_v55  ;;  %v1719_v55 = vmul.f32 %v5073_v36, %v4810_v62  ;;  %6728 = vst [vmem:[#allocation56_spill] sm:$0xff] %v5140_v47  ;;  %6734 = vst [vmem:[#allocation62_spill] sm:$0xff] %v5168_v11  ;;  %v1318_v11 = vmul.f32 %v5071_v53, %v4844_v28 }
 0x3c7   :  { %3741 = vmatprep.mubr.msk.f32.mxu0 %vm428_vm1, %v1895_v8  ;;  %v1721_v8 = vmul.f32 %v5073_v36, %v4804_v57  ;;  %6729 = vst [vmem:[#allocation57_spill] sm:$0xff] %v5143_v19  ;;  %6735 = vst [vmem:[#allocation63_spill] sm:$0xff] %v5171_v21  ;;  %v5187_v18 = vmul.f32 -3.0, %v5143_v19 }
 0x3c9   :  { %6739 = vst [vmem:[#allocation67_spill] sm:$0xff] %v5187_v18  ;;  %v1726_v18 = vmul.f32 %v5073_v36, %v4841_v9 }
 0x3ca   :  { %3742 = vmatmul.mubr.msk.f32.gmra.mrb[66].mxu0 %vm428_vm1, %v1896_v39  ;;  %v5110_v39 = vsub.f32 %v4662_v40, %v1304_v12  ;;  %v5146_v12 = vsub.f32 %v4686_v59, %v1719_v55  ;;  %v1311_v55 = vmul.f32 %v5071_v53, %v4821_v24 }
 0x3cb   :  { %3744 = vmatprep.mubr.msk.f32.mxu0 %vm428_vm1, %v1897_v14  ;;  %v5113_v14 = vsub.f32 %v4672_v48, %v1306_v32  ;;  %v5149_v32 = vsub.f32 %v4700_v6, %v1721_v8  ;;  %v5176_v8 = vmul.f32 -3.0, %v5134_v2 }
 0x3cc   :  { %6730 = vst [vmem:[#allocation58_spill] sm:$0xff] %v5146_v12  ;;  %v5190_v4 = vmul.f32 3.0, %v5146_v12  ;;  %v1316_v12 = vmul.f32 %v5071_v53, %v4850_v42 }
 0x3cd   :  { %6721 = vst [vmem:[#allocation49_spill] sm:$0xff] %v5113_v14  ;;  %6731 = vst [vmem:[#allocation59_spill] sm:$0xff] %v5149_v32  ;;  %v5157_v58 = vmul.f32 -3.0, %v5113_v14  ;;  %v5193_v21 = vmul.f32 3.0, %v5149_v32  ;;  %v1725_v32 = vmul.f32 %v5073_v36, %v4824_v38  ;;  %v5235_v14 = vmul.f32 3.0, %v5199_v56 }
 0x3ce   :  { %3745 = vmatmul.mubr.msk.f32.gmra.mrb[68].mxu0 %vm428_vm1, %v1898_v3  ;;  %v5116_v3 = vsub.f32 %v4672_v48, %v1717_v16  ;;  %v1309_v16 = vmul.f32 %v5071_v53, %v4807_v61  ;;  %6736 = vst [vmem:[#allocation64_spill] sm:$0xff] %v5176_v8  ;;  %6740 = vst [vmem:[#allocation68_spill] sm:$0xff] %v5190_v4  ;;  %v5208_v8 = vsub.f32 %v4714_v17, %v1311_v55 }
 0x3cf   :  { %3747 = vmatprep.mubr.msk.f32.mxu0 %vm428_vm1, %v1899_v44  ;;  %v5119_v44 = vsub.f32 %v4662_v40, %v1715_v37  ;;  %v5154_v37 = vmul.f32 -3.0, %v5110_v39  ;;  %6732 = vst [vmem:[#allocation60_spill] sm:$0xff] %v5157_v58  ;;  %6741 = vst [vmem:[#allocation69_spill] sm:$0xff] %v5193_v21  ;;  %v1727_v4 = vmul.f32 %v5073_v36, %v4850_v42 }
 0x3d0   :  { %6722 = vst [vmem:[#allocation50_spill] sm:$0xff] %v5116_v3  ;;  %v5160_v31 = vmul.f32 3.0, %v5116_v3  ;;  %v5182_v3 = vmul.f32 -3.0, %v5140_v47  ;;  %v5196_v2 = vsub.f32 %v4702_v7, %v1309_v16  ;;  %v1723_v47 = vmul.f32 %v5073_v36, %v4830_v45  ;;  %6744 = vst [vmem:[#allocation72_spill] sm:$0xff] %v5208_v8 }
 0x3d1   :  { %v5165_v0 = vmul.f32 3.0, %v5119_v44  ;;  %v1313_v16 = vmul.f32 %v5071_v53, %v4827_v43  ;;  %v1315_v55 = vmul.f32 %v5071_v53, %v4841_v9  ;;  %v5250_v10 = vsub.f32 %v4724_v26, %v1725_v32  ;;  %v5270_v32 = vld [vmem:[#allocation14 + $0x1] ss:$0 sm:$0xff] }
 0x3d2   :  { %3748 = vmatmul.mubr.msk.f32.gmra.mrb[70].mxu0 %vm428_vm1, %v1900_v46  ;;  %v5122_v46 = vmul.f32 -3.0, %v5088_v13  ;;  %6733 = vst [vmem:[#allocation61_spill] sm:$0xff] %v5160_v31  ;;  %6738 = vst [vmem:[#allocation66_spill] sm:$0xff] %v5182_v3  ;;  %v1312_v31 = vmul.f32 %v5071_v53, %v4830_v45  ;;  %v1722_v3 = vmul.f32 %v5073_v36, %v4821_v24  ;;  %v5226_v19 = vmul.f32 -3.0, %v5196_v2 }
 0x3d3   :  { %6742 = vst [vmem:[#allocation70_spill] sm:$0xff] %v5196_v2  ;;  %v5238_v58 = vsub.f32 %v4710_v15, %v1723_v47  ;;  %v5244_v2 = vsub.f32 %v4724_v26, %v1314_v49  ;;  %6751 = vst [vmem:[#allocation79_spill] sm:$0xff] %v5250_v10  ;;  %v5253_v13 = vsub.f32 %v4726_v34, %v1313_v16 }
 0x3d4   :  { %v5217_v21 = vsub.f32 %v4710_v15, %v1312_v31  ;;  %6746 = vst [vmem:[#allocation74_spill] sm:$0xff] %v5226_v19  ;;  %v1729_v31 = vmul.f32 %v5073_v36, %v4844_v28  ;;  %v5241_v5 = vsub.f32 %v4714_v17, %v1722_v3  ;;  %v5247_v19 = vmul.f32 -3.0, %v5208_v8 }
 0x3d5   :  { %6747 = vst [vmem:[#allocation75_spill] sm:$0xff] %v5238_v58  ;;  %6749 = vst [vmem:[#allocation77_spill] sm:$0xff] %v5244_v2  ;;  %v5256_v56 = vsub.f32 %v4726_v34, %v1724_v33  ;;  %v5262_v3 = vsub.f32 %v4738_v51, %v1316_v12  ;;  %v5265_v49 = vsub.f32 %v4738_v51, %v1727_v4  ;;  %v5284_v4 = vmul.f32 3.0, %v5238_v58 }
 0x3d6   :  { %6745 = vst [vmem:[#allocation73_spill] sm:$0xff] %v5217_v21  ;;  %6748 = vst [vmem:[#allocation76_spill] sm:$0xff] %v5241_v5  ;;  %v5259_v47 = vmul.f32 -3.0, %v5217_v21  ;;  %v5268_v8 = vsub.f32 %v4740_v52, %v1315_v55  ;;  %v5273_v16 = vsub.f32 %v4740_v52, %v1726_v18  ;;  %v5276_v33 = vsub.f32 %v4748_v63, %v1318_v11 }
 0x3d7   :  { %6750 = vst [vmem:[#allocation78_spill] sm:$0xff] %v5247_v19  ;;  %6752 = vst [vmem:[#allocation80_spill] sm:$0xff] %v5253_v13  ;;  %v5279_v19 = vsub.f32 %v4748_v63, %v1729_v31  ;;  %v1317_v12 = vmul.f32 %v5071_v53, %v4847_v27  ;;  %v5287_v55 = vmul.f32 3.0, %v5241_v5  ;;  %v5290_v21 = vmul.f32 -3.0, %v5244_v2 }
 0x3d8   :  { %6753 = vst [vmem:[#allocation81_spill] sm:$0xff] %v5256_v56  ;;  %6754 = vst [vmem:[#allocation82_spill] sm:$0xff] %v5259_v47  ;;  %v1728_v18 = vmul.f32 %v5073_v36, %v4847_v27  ;;  %v5295_v11 = vmul.f32 3.0, %v5250_v10  ;;  %v5298_v31 = vmul.f32 -3.0, %v5253_v13  ;;  %v5301_v47 = vmul.f32 3.0, %v5256_v56 }
 0x3d9   :  { %6755 = vst [vmem:[#allocation83_spill] sm:$0xff] %v5262_v3  ;;  %6756 = vst [vmem:[#allocation84_spill] sm:$0xff] %v5265_v49  ;;  %v2110_v58 = vmul.f32 %v5270_v32, %v4790_v35  ;;  %v5306_v5 = vmul.f32 -3.0, %v5262_v3  ;;  %v5309_v2 = vmul.f32 3.0, %v5265_v49  ;;  %v2109_v10 = vmul.f32 %v5270_v32, %v4781_v22 }
 0x3da   :  { %6757 = vst [vmem:[#allocation85_spill] sm:$0xff] %v5268_v8  ;;  %6758 = vst [vmem:[#allocation86_spill] sm:$0xff] %v5273_v16  ;;  %v5317_v13 = vmul.f32 3.0, %v5273_v16  ;;  %v5320_v56 = vmul.f32 -3.0, %v5276_v33  ;;  %v5326_v3 = vsub.f32 %v4752_v1, %v1317_v12  ;;  %v5329_v49 = vsub.f32 %v4752_v1, %v1728_v18 }
 0x3db   :  { %6759 = vst [vmem:[#allocation87_spill] sm:$0xff] %v5276_v33  ;;  %6760 = vst [vmem:[#allocation88_spill] sm:$0xff] %v5279_v19  ;;  %v2114_v16 = vmul.f32 %v5270_v32, %v4810_v62  ;;  %v5338_v33 = vsub.f32 %v4662_v40, %v2110_v58  ;;  %v2116_v12 = vmul.f32 %v5270_v32, %v4804_v57 }
 0x3dc   :  { %6761 = vst [vmem:[#allocation89_spill] sm:$0xff] %v5284_v4  ;;  %6762 = vst [vmem:[#allocation90_spill] sm:$0xff] %v5287_v55  ;;  %v2115_v18 = vmul.f32 %v5270_v32, %v4807_v61  ;;  %v2120_v40 = vmul.f32 %v5270_v32, %v4824_v38  ;;  %v5356_v58 = vmul.f32 -3.0, %v5326_v3  ;;  %v6844_v38 = vld [vmem:[#allocation32_spill] sm:$0xff] }
 0x3dd   :  { %6763 = vst [vmem:[#allocation91_spill] sm:$0xff] %v5290_v21  ;;  %6764 = vst [vmem:[#allocation92_spill] sm:$0xff] %v5295_v11  ;;  %v5312_v21 = vmul.f32 -3.0, %v5268_v8  ;;  %v2112_v8 = vmul.f32 %v5270_v32, %v4784_v23  ;;  %v5383_v4 = vsub.f32 %v4700_v6, %v2116_v12 }
 0x3de   :  { %6765 = vst [vmem:[#allocation93_spill] sm:$0xff] %v5298_v31  ;;  %6766 = vst [vmem:[#allocation94_spill] sm:$0xff] %v5301_v47  ;;  %v5323_v47 = vmul.f32 3.0, %v5279_v19  ;;  %v2113_v19 = vmul.f32 %v5270_v32, %v4801_v54 }
 0x3df   :  { %6767 = vst [vmem:[#allocation95_spill] sm:$0xff] %v5306_v5  ;;  %6768 = vst [vmem:[#allocation96_spill] sm:$0xff] %v5309_v2  ;;  %v2119_v2 = vmul.f32 %v5270_v32, %v4827_v43  ;;  %v2122_v5 = vmul.f32 %v5270_v32, %v4850_v42  ;;  %v5368_v31 = vsub.f32 %v4672_v48, %v2112_v8  ;;  %v2668_v8 = vld [vmem:[%s6558_s16 + $0x48] sm:$0xff] }
 0x3e0   :  { %6769 = vst [vmem:[#allocation97_spill] sm:$0xff] %v5312_v21  ;;  %6770 = vst [vmem:[#allocation98_spill] sm:$0xff] %v5317_v13  ;;  %v2111_v21 = vmul.f32 %v5270_v32, %v4787_v25  ;;  %v2117_v13 = vmul.f32 %v5270_v32, %v4821_v24  ;;  %v5380_v55 = vsub.f32 %v4688_v60, %v2113_v19  ;;  %v5760_v24 = vld [vmem:[#allocation10 + $0x2] ss:$0 sm:$0xff] }
 0x3e1   :  { %6771 = vst [vmem:[#allocation99_spill] sm:$0xff] %v5320_v56  ;;  %6772 = vst [vmem:[#allocation100_spill] sm:$0xff] %v5323_v47  ;;  %v5347_v47 = vsub.f32 %v4664_v41, %v2109_v10  ;;  %v2118_v56 = vmul.f32 %v5270_v32, %v4830_v45  ;;  %v2121_v41 = vmul.f32 %v5270_v32, %v4841_v9  ;;  %v5365_v10 = vmul.f32 3.0, %v5329_v49 }
 0x3e2   :  { %6773 = vst [vmem:[#allocation101_spill] sm:$0xff] %v5326_v3  ;;  %6774 = vst [vmem:[#allocation102_spill] sm:$0xff] %v5329_v49  ;;  %v5371_v11 = vsub.f32 %v4676_v50, %v2111_v21  ;;  %v5374_v3 = vsub.f32 %v4686_v59, %v2114_v16  ;;  %v5386_v49 = vsub.f32 %v4702_v7, %v2115_v18 }
 0x3e3   :  { %6775 = vst [vmem:[#allocation103_spill] sm:$0xff] %v5338_v33  ;;  %6776 = vst [vmem:[#allocation104_spill] sm:$0xff] %v5347_v47  ;;  %v5389_v48 = vmul.f32 0.0, %v5347_v47  ;;  %v5392_v50 = vsub.f32 %v4710_v15, %v2118_v56  ;;  %v5395_v59 = vsub.f32 %v4714_v17, %v2117_v13  ;;  %v5398_v21 = vsub.f32 %v4724_v26, %v2120_v40  ;;  %v2669_v40 = vld [vmem:[%s6558_s16 + $0x50] sm:$0xff] }
 0x3e4   :  { %6777 = vst [vmem:[#allocation105_spill] sm:$0xff] %v5356_v58  ;;  %6778 = vst [vmem:[#allocation106_spill] sm:$0xff] %v5365_v10  ;;  %v5377_v58 = vmul.f32 0.0, %v5338_v33  ;;  %v5401_v60 = vsub.f32 %v4726_v34, %v2119_v2  ;;  %v5404_v6 = vsub.f32 %v4738_v51, %v2122_v5  ;;  %v5407_v7 = vsub.f32 %v4740_v52, %v2121_v41  ;;  %v2275_v51 = vld [vmem:[%s6558_s16 + $0x10] sm:$0xff]  ;;  %v2276_v52 = vld [vmem:[%s6558_s16 + $0x18] sm:$0xff] }
 0x3e5   :  { %6779 = vst [vmem:[#allocation107_spill] sm:$0xff] %v5368_v31  ;;  %6780 = vst [vmem:[#allocation108_spill] sm:$0xff] %v5371_v11  ;;  %v2124_v19 = vmul.f32 %v5270_v32, %v4844_v28  ;;  %v5412_v15 = vmul.f32 0.0, %v5368_v31  ;;  %v5415_v17 = vmul.f32 0.0, %v5371_v11  ;;  %v5418_v26 = vmul.f32 0.0, %v5374_v3  ;;  %v2667_v5 = vld [vmem:[%s6558_s16 + $0x40] sm:$0xff] }
 0x3e6   :  { %6781 = vst [vmem:[#allocation109_spill] sm:$0xff] %v5374_v3  ;;  %6782 = vst [vmem:[#allocation110_spill] sm:$0xff] %v5377_v58  ;;  %v2123_v34 = vmul.f32 %v5270_v32, %v4847_v27  ;;  %v5429_v13 = vmul.f32 0.0, %v5380_v55  ;;  %v5435_v2 = vmul.f32 0.0, %v5383_v4  ;;  %v5438_v56 = vmul.f32 0.0, %v5386_v49  ;;  %v2670_v41 = vld [vmem:[%s6558_s16 + $0x58] sm:$0xff] }
 0x3e7   :  { %6783 = vst [vmem:[#allocation111_spill] sm:$0xff] %v5380_v55  ;;  %6784 = vst [vmem:[#allocation112_spill] sm:$0xff] %v5383_v4  ;;  %v5444_v16 = vmul.f32 0.0, %v5392_v50  ;;  %v5447_v12 = vmul.f32 0.0, %v5395_v59  ;;  %v5450_v18 = vmul.f32 0.0, %v5398_v21  ;;  %v5459_v4 = vmul.f32 0.0, %v5401_v60 }
 0x3e8   :  { %6785 = vst [vmem:[#allocation113_spill] sm:$0xff] %v5386_v49  ;;  %6786 = vst [vmem:[#allocation114_spill] sm:$0xff] %v5389_v48  ;;  %v5472_v55 = vpack.c.bf16 %v2276_v52, %v2275_v51  ;;  %v6831_v48 = vld [vmem:[#allocation26_spill] sm:$0xff]  ;;  %v6843_v27 = vld [vmem:[#allocation25_spill] sm:$0xff] }
 0x3e9   :  { %6787 = vst [vmem:[#allocation115_spill] sm:$0xff] %v5392_v50  ;;  %6788 = vst [vmem:[#allocation116_spill] sm:$0xff] %v5395_v59  ;;  %v5462_v50 = vmul.f32 0.0, %v5404_v6  ;;  %v5465_v59 = vmul.f32 0.0, %v5407_v7 }
 0x3ea   :  { %6789 = vst [vmem:[#allocation117_spill] sm:$0xff] %v5398_v21  ;;  %6790 = vst [vmem:[#allocation118_spill] sm:$0xff] %v5401_v60  ;;  %v5468_v21 = vsub.f32 %v4748_v63, %v2124_v19  ;;  %v5475_v60 = vsub.f32 %v4752_v1, %v2123_v34  ;;  %v5481_v63 = vpack.c.bf16 %v2670_v41, %v2669_v40 }
 0x3eb   :  { %6791 = vst [vmem:[#allocation119_spill] sm:$0xff] %v5404_v6  ;;  %6792 = vst [vmem:[#allocation120_spill] sm:$0xff] %v5407_v7 }
 0x3ec   :  { %6793 = vst [vmem:[#allocation121_spill] sm:$0xff] %v5412_v15  ;;  %6794 = vst [vmem:[#allocation122_spill] sm:$0xff] %v5415_v17 }
 0x3ed   :  { %6795 = vst [vmem:[#allocation123_spill] sm:$0xff] %v5418_v26  ;;  %6796 = vst [vmem:[#allocation124_spill] sm:$0xff] %v5429_v13  ;;  %v5479_v13 = vpack.c.bf16 %v2668_v8, %v2667_v5  ;;  %v6818_v5 = vld [vmem:[#allocation31_spill] sm:$0xff] }
 0x3ee   :  { %6797 = vst [vmem:[#allocation125_spill] sm:$0xff] %v5435_v2  ;;  %6798 = vst [vmem:[#allocation126_spill] sm:$0xff] %v5438_v56 }
 0x3ef   :  { %6799 = vst [vmem:[#allocation127_spill] sm:$0xff] %v5444_v16  ;;  %6800 = vst [vmem:[#allocation128_spill] sm:$0xff] %v5447_v12 }
 0x3f0   :  { %6801 = vst [vmem:[#allocation129_spill] sm:$0xff] %v5450_v18  ;;  %6802 = vst [vmem:[#allocation130_spill] sm:$0xff] %v5459_v4 }
 0x3f1   :  { %6803 = vst [vmem:[#allocation131_spill] sm:$0xff] %v5462_v50  ;;  %6804 = vst [vmem:[#allocation132_spill] sm:$0xff] %v5465_v59  ;;  %v6807_v50 = vld [vmem:[#allocation30_spill] sm:$0xff] }
 0x3f2   :  { %6805 = vst [vmem:[#allocation133_spill] sm:$0xff] %v5468_v21  ;;  %6806 = vst [vmem:[#allocation134_spill] sm:$0xff] %v5475_v60 }
 0x3f3   :  { %6808 = vst [vmem:[#allocation30_spill] sm:$0xff] %v5481_v63  ;;  %v6820_v63 = vld [vmem:[#allocation29_spill] sm:$0xff] }
 0x459   :  { %v3640_v49 = vpop.f32.mrb[32].mxu0  ;;  %v3648_v56 = vpop.f32.mrb[16].mxu1 }
 0x45a   :  { %v1042_v18 = vmul.f32 %v3640_v49, %v4643_v29  ;;  %v1050_v12 = vmul.f32 %v3648_v56, %v4716_v20  ;;  %v977_v16 = vpop.f32.mrb[33].mxu0  ;;  %v1009_v2 = vpop.f32.mrb[17].mxu1 }
 0x45b   :  { %v1040_v6 = vmul.f32 %v977_v16, %v4645_v30  ;;  %v1048_v4 = vmul.f32 %v1009_v2, %v6807_v50  ;;  %v3641_v7 = vpop.f32.mrb[34].mxu0  ;;  %v3649_v59 = vpop.f32.mrb[18].mxu1  ;;  %v6817_v2 = vld [vmem:[#allocation23_spill] sm:$0xff] }
 0x45c   :  { %v5484_v29 = vmul.f32 %v5071_v53, %v1042_v18  ;;  %v5487_v20 = vmul.f32 %v5073_v36, %v1042_v18  ;;  %v5490_v49 = vmul.f32 %v5270_v32, %v1042_v18  ;;  %v5493_v1 = vmul.f32 %v5071_v53, %v1050_v12  ;;  %v980_v30 = vpop.f32.mrb[35].mxu0  ;;  %v1012_v50 = vpop.f32.mrb[19].mxu1  ;;  %v6819_v18 = vld [vmem:[#allocation24_spill] sm:$0xff] }
 0x45d   :  { %v5496_v19 = vmul.f32 %v5073_v36, %v1050_v12  ;;  %v5499_v34 = vmul.f32 %v5270_v32, %v1050_v12  ;;  %v5502_v51 = vmul.f32 %v5071_v53, %v1040_v6  ;;  %v5505_v52 = vmul.f32 %v5073_v36, %v1040_v6 }
 0x45e   :  { %6809 = vst [vmem:[#allocation135_spill] sm:$0xff] %v5490_v49  ;;  %6810 = vst [vmem:[#allocation136_spill] sm:$0xff] %v5493_v1  ;;  %v5524_v41 = vmul.f32 %v5270_v32, %v1040_v6  ;;  %v5527_v56 = vmul.f32 %v5071_v53, %v1048_v4  ;;  %v5530_v8 = vmul.f32 %v5073_v36, %v1048_v4 }
 0x45f   :  { %6811 = vst [vmem:[#allocation137_spill] sm:$0xff] %v5496_v19  ;;  %6812 = vst [vmem:[#allocation138_spill] sm:$0xff] %v5499_v34  ;;  %v5533_v16 = vmul.f32 %v5270_v32, %v1048_v4  ;;  %v1043_v12 = vmul.f32 %v3641_v7, %v6817_v2  ;;  %v1051_v60 = vmul.f32 %v3649_v59, %v6818_v5 }
 0x460   :  { %6813 = vst [vmem:[#allocation139_spill] sm:$0xff] %v5524_v41  ;;  %6814 = vst [vmem:[#allocation140_spill] sm:$0xff] %v5527_v56  ;;  %v1041_v34 = vmul.f32 %v980_v30, %v6819_v18  ;;  %v1049_v40 = vmul.f32 %v1012_v50, %v6820_v63  ;;  %v6832_v41 = vld [vmem:[#allocation33_spill] sm:$0xff] }
 0x461   :  { %6815 = vst [vmem:[#allocation141_spill] sm:$0xff] %v5530_v8  ;;  %6816 = vst [vmem:[#allocation142_spill] sm:$0xff] %v5533_v16  ;;  %v3644_v21 = vpop.f32.mrb[36].mxu0  ;;  %v3652_v6 = vpop.f32.mrb[20].mxu1  ;;  %v5548_v30 = vmul.f32 %v5071_v53, %v1043_v12  ;;  %v5551_v63 = vmul.f32 %v5073_v36, %v1043_v12  ;;  %v5554_v50 = vmul.f32 %v5270_v32, %v1043_v12 }
 0x462   :  { %v993_v2 = vpop.f32.mrb[37].mxu0  ;;  %v1025_v59 = vpop.f32.mrb[21].mxu1  ;;  %v5557_v5 = vmul.f32 %v5071_v53, %v1051_v60  ;;  %v5560_v4 = vmul.f32 %v5073_v36, %v1051_v60  ;;  %v5563_v7 = vmul.f32 %v5270_v32, %v1051_v60  ;;  %v5566_v26 = vmul.f32 %v5071_v53, %v1041_v34 }
 0x463   :  { %6821 = vst [vmem:[#allocation23_spill] sm:$0xff] %v5554_v50  ;;  %v3645_v18 = vpop.f32.mrb[38].mxu0  ;;  %v3653_v3 = vpop.f32.mrb[22].mxu1  ;;  %v5569_v16 = vmul.f32 %v5073_v36, %v1041_v34  ;;  %v5588_v31 = vmul.f32 %v5270_v32, %v1041_v34  ;;  %v5591_v49 = vmul.f32 %v5071_v53, %v1049_v40  ;;  %v5594_v60 = vmul.f32 %v5073_v36, %v1049_v40  ;;  %v6829_v50 = vld [vmem:[#allocation28_spill] sm:$0xff] }
 0x464   :  { %6822 = vst [vmem:[#allocation31_spill] sm:$0xff] %v5557_v5  ;;  %6823 = vst [vmem:[#allocation24_spill] sm:$0xff] %v5560_v4  ;;  %v996_v11 = vpop.f32.mrb[39].mxu0  ;;  %v1028_v12 = vpop.f32.mrb[23].mxu1  ;;  %v5597_v15 = vmul.f32 %v5270_v32, %v1049_v40  ;;  %v1046_v47 = vmul.f32 %v3644_v21, %v6829_v50  ;;  %v1044_v58 = vmul.f32 %v993_v2, %v6831_v48 }
 0x465   :  { %6824 = vst [vmem:[#allocation29_spill] sm:$0xff] %v5563_v7  ;;  %6825 = vst [vmem:[#allocation143_spill] sm:$0xff] %v5588_v31  ;;  %v6830_v7 = vld [vmem:[#allocation35_spill] sm:$0xff]  ;;  %v1052_v17 = vmul.f32 %v1025_v59, %v6832_v41  ;;  %v1053_v8 = vmul.f32 %v1028_v12, %v6844_v38 }
 0x466   :  { %6826 = vst [vmem:[#allocation144_spill] sm:$0xff] %v5591_v49  ;;  %6827 = vst [vmem:[#allocation145_spill] sm:$0xff] %v5594_v60  ;;  %v1054_v33 = vmul.f32 %v3652_v6, %v6830_v7  ;;  %v5616_v48 = vmul.f32 %v5071_v53, %v1046_v47  ;;  %v5619_v41 = vmul.f32 %v5073_v36, %v1046_v47 }
 0x467   :  { %6828 = vst [vmem:[#allocation146_spill] sm:$0xff] %v5597_v15  ;;  %v5622_v6 = vmul.f32 %v5270_v32, %v1046_v47  ;;  %v5638_v34 = vmul.f32 %v5071_v53, %v1044_v58  ;;  %v5641_v19 = vmul.f32 %v5073_v36, %v1044_v58  ;;  %v5664_v15 = vmul.f32 %v5270_v32, %v1044_v58  ;;  %v6841_v47 = vld [vmem:[#allocation27_spill] sm:$0xff] }
 0x468   :  { %v5625_v7 = vmul.f32 %v5071_v53, %v1054_v33  ;;  %v5632_v50 = vmul.f32 %v5073_v36, %v1054_v33  ;;  %v5635_v40 = vmul.f32 %v5270_v32, %v1054_v33  ;;  %v5667_v31 = vmul.f32 %v5071_v53, %v1052_v17 }
 0x469   :  { %v5611_v1 = vpop.f32.mrb[40].mxu0  ;;  %v5613_v21 = vpop.f32.mrb[24].mxu1  ;;  %6833 = vst [vmem:[#allocation28_spill] sm:$0xff] %v5622_v6  ;;  %6837 = vst [vmem:[#allocation147_spill] sm:$0xff] %v5664_v15  ;;  %v5670_v33 = vmul.f32 %v5073_v36, %v1052_v17  ;;  %v5673_v43 = vmul.f32 %v5270_v32, %v1052_v17  ;;  %v1047_v6 = vmul.f32 %v3645_v18, %v6841_v47 }
 0x46a   :  { %6834 = vst [vmem:[#allocation35_spill] sm:$0xff] %v5625_v7  ;;  %v5627_v2 = vpop.f32.mrb[41].mxu0  ;;  %v5629_v59 = vpop.f32.mrb[25].mxu1  ;;  %6835 = vst [vmem:[#allocation26_spill] sm:$0xff] %v5632_v50  ;;  %v6842_v50 = vld [vmem:[#allocation34_spill] sm:$0xff]  ;;  %v1045_v58 = vmul.f32 %v996_v11, %v6843_v27  ;;  %v5756_v9 = vmul.f32 %v5270_v32, %v1053_v8 }
 0x46b   :  { %6836 = vst [vmem:[#allocation33_spill] sm:$0xff] %v5635_v40  ;;  %6838 = vst [vmem:[#allocation148_spill] sm:$0xff] %v5667_v31  ;;  %v1055_v7 = vmul.f32 %v3653_v3, %v6842_v50  ;;  %v5692_v18 = vmul.f32 %v5071_v53, %v1047_v6  ;;  %v5695_v3 = vmul.f32 %v5073_v36, %v1047_v6  ;;  %v5736_v31 = vld [vmem:[#allocation13] ss:$0 sm:$0xff] }
 0x46c   :  { %6839 = vst [vmem:[#allocation149_spill] sm:$0xff] %v5670_v33  ;;  %6840 = vst [vmem:[#allocation150_spill] sm:$0xff] %v5673_v43  ;;  %v5698_v38 = vmul.f32 %v5270_v32, %v1047_v6  ;;  %v5714_v60 = vmul.f32 %v5071_v53, %v1045_v58  ;;  %v5717_v56 = vmul.f32 %v5073_v36, %v1045_v58  ;;  %v5734_v33 = vld [vmem:[%s6551_s9] ss:$0 sm:$0xff] }
 0x46d   :  { %v5659_v5 = vpop.f32.mrb[42].mxu0  ;;  %v5661_v10 = vpop.f32.mrb[26].mxu1  ;;  %v5701_v27 = vmul.f32 %v5071_v53, %v1055_v7  ;;  %v5708_v50 = vmul.f32 %v5073_v36, %v1055_v7  ;;  %v5711_v47 = vmul.f32 %v5270_v32, %v1055_v7  ;;  %v5747_v15 = vmul.f32 %v5270_v32, %v1045_v58  ;;  %6852 = vst [vmem:[#allocation154_spill] sm:$0xff] %v5756_v9 }
 0x46e   :  { %v5675_v4 = vpop.f32.mrb[43].mxu0  ;;  %v5677_v40 = vpop.f32.mrb[27].mxu1  ;;  %6845 = vst [vmem:[#allocation27_spill] sm:$0xff] %v5698_v38  ;;  %v5750_v38 = vmul.f32 %v5071_v53, %v1053_v8  ;;  %v1226_v58 = vadd.f32 %v5611_v1, %v5734_v33  ;;  %v6853_v53 = vsub.f32 %v4790_v35, %v5566_v26  ;;  %v1637_v32 = vadd.f32 %v5613_v21, %v5736_v31  ;;  %v6861_v21 = vld [vmem:[#allocation53_spill] sm:$0xff] }
 0x46f   :  { %6846 = vst [vmem:[#allocation34_spill] sm:$0xff] %v5701_v27  ;;  %6847 = vst [vmem:[#allocation25_spill] sm:$0xff] %v5708_v50  ;;  %v5753_v27 = vmul.f32 %v5073_v36, %v1053_v8  ;;  %v5758_v50 = vld [vmem:[#allocation8 + $0x2] ss:$0 sm:$0xff]  ;;  %v6854_v8 = vsub.f32 %v4790_v35, %v5569_v16  ;;  %v1221_v1 = vadd.f32 %v5734_v33, %v5627_v2 }
 0x470   :  { %6848 = vst [vmem:[#allocation32_spill] sm:$0xff] %v5711_v47  ;;  %6849 = vst [vmem:[#allocation151_spill] sm:$0xff] %v5747_v15  ;;  %v1404_v36 = vmul.f32 %v5758_v50, %v6853_v53  ;;  %v1352_v16 = vadd.f32 %v5154_v37, %v1226_v58  ;;  %v1763_v35 = vadd.f32 %v5165_v0, %v1637_v32 }
 0x471   :  { %v5703_v11 = vpop.f32.mrb[44].mxu0  ;;  %v5705_v12 = vpop.f32.mrb[28].mxu1  ;;  %6850 = vst [vmem:[#allocation152_spill] sm:$0xff] %v5750_v38  ;;  %6851 = vst [vmem:[#allocation153_spill] sm:$0xff] %v5753_v27  ;;  %v1815_v7 = vmul.f32 %v5760_v24, %v6854_v8  ;;  %v6855_v26 = vsub.f32 %v4781_v22, %v5502_v51  ;;  %v1632_v53 = vadd.f32 %v5736_v31, %v5629_v59  ;;  %v6863_v27 = vld [vmem:[#allocation60_spill] sm:$0xff] }
 0x472   :  { %v5719_v6 = vpop.f32.mrb[45].mxu0  ;;  %v5721_v17 = vpop.f32.mrb[29].mxu1  ;;  %v1420_v8 = vsub.f32 %v5110_v39, %v1404_v36  ;;  %v6856_v37 = vsub.f32 %v4781_v22, %v5505_v52  ;;  %v1236_v2 = vadd.f32 %v5659_v5, %v5734_v33  ;;  %v6858_v51 = vsub.f32 %v4784_v23, %v5548_v30  ;;  %v6864_v30 = vld [vmem:[#allocation49_spill] sm:$0xff] }
 0x473   :  { %v1831_v45 = vsub.f32 %v5119_v44, %v1815_v7  ;;  %v1403_v15 = vmul.f32 %v5758_v50, %v6855_v26  ;;  %v1351_v52 = vadd.f32 %v5122_v46, %v1221_v1  ;;  %v6860_v26 = vld [vmem:[#allocation47_spill] sm:$0xff]  ;;  %v1762_v9 = vadd.f32 %v6861_v21, %v1632_v53 }
 0x474   :  { %v1814_v39 = vmul.f32 %v5760_v24, %v6856_v37  ;;  %v1436_v44 = vmul.f32 0.75, %v1420_v8  ;;  %v1406_v36 = vmul.f32 %v5758_v50, %v6858_v51  ;;  %v6862_v8 = vld [vmem:[#allocation48_spill] sm:$0xff]  ;;  %v1354_v38 = vadd.f32 %v6863_v27, %v1236_v2  ;;  %v6867_v2 = vld [vmem:[#allocation61_spill] sm:$0xff] }
 0x475   :  { %v5762_v43 = vpop.f32.mrb[46].mxu0  ;;  %v5764_v47 = vpop.f32.mrb[30].mxu1  ;;  %v1847_v7 = vmul.f32 -1.5, %v1831_v45  ;;  %v1419_v37 = vsub.f32 %v6860_v26, %v1403_v15  ;;  %v6865_v46 = vsub.f32 %v4784_v23, %v5551_v63  ;;  %v6866_v27 = vsub.f32 %v4787_v25, %v5484_v29 }
 0x476   :  { %v5778_v28 = vpop.f32.mrb[47].mxu0  ;;  %v5780_v49 = vpop.f32.mrb[31].mxu1  ;;  %v1830_v45 = vsub.f32 %v6862_v8, %v1814_v39  ;;  %v5824_v22 = vadd.f32 %v1436_v44, %v1352_v16  ;;  %v1422_v42 = vsub.f32 %v6864_v30, %v1406_v36  ;;  %v6868_v36 = vld [vmem:[#allocation50_spill] sm:$0xff]  ;;  %v6870_v8 = vld [vmem:[#allocation51_spill] sm:$0xff] }
 0x477   :  { %v1863_v5 = vadd.f32 %v1847_v7, %v1763_v35  ;;  %v1435_v51 = vmul.f32 0.75, %v1419_v37  ;;  %v1817_v15 = vmul.f32 %v5760_v24, %v6865_v46  ;;  %v1231_v35 = vadd.f32 %v5734_v33, %v5675_v4  ;;  %v6869_v37 = vld [vmem:[#allocation62_spill] sm:$0xff]  ;;  %v6871_v30 = vld [vmem:[#allocation63_spill] sm:$0xff] }
 0x478   :  { %v1438_v21 = vmul.f32 0.75, %v1422_v42  ;;  %v1405_v16 = vmul.f32 %v5758_v50, %v6866_v27  ;;  %v6872_v27 = vsub.f32 %v4787_v25, %v5487_v20  ;;  %v1657_v20 = vadd.f32 %v5705_v12, %v5736_v31  ;;  %v6877_v12 = vld [vmem:[#allocation57_spill] sm:$0xff] }
 0x479   :  { %v5806_v58 = vpop.f32.mrb[48].mxu0  ;;  %v5808_v0 = vpop.f32.mrb[32].mxu1  ;;  %v5850_v44 = vadd.f32 %v1435_v51, %v1351_v52  ;;  %v1833_v26 = vsub.f32 %v6868_v36, %v1817_v15  ;;  %v1353_v29 = vadd.f32 %v6869_v37, %v1231_v35  ;;  %v6876_v36 = vld [vmem:[#allocation67_spill] sm:$0xff] }
 0x47a   :  { %6857 = vst [vmem:[#allocation155_spill] sm:$0xff] %v5808_v0  ;;  %v5816_v59 = vpop.f32.mrb[49].mxu0  ;;  %v5818_v32 = vpop.f32.mrb[33].mxu1  ;;  %v1846_v0 = vmul.f32 -1.5, %v1830_v45  ;;  %v5854_v4 = vadd.f32 %v1438_v21, %v1354_v38  ;;  %v1421_v45 = vsub.f32 %v6870_v8, %v1405_v16  ;;  %v1816_v52 = vmul.f32 %v5760_v24, %v6872_v27  ;;  %v6878_v8 = vld [vmem:[#allocation46_spill] sm:$0xff] }
 0x47b   :  { %6859 = vst [vmem:[#allocation156_spill] sm:$0xff] %v5818_v32  ;;  %v1647_v32 = vadd.f32 %v5661_v10, %v5736_v31  ;;  %v1642_v10 = vadd.f32 %v5736_v31, %v5677_v40  ;;  %v1849_v40 = vmul.f32 -1.5, %v1833_v26  ;;  %v6874_v21 = vsub.f32 %v4810_v62, %v5717_v56 }
 0x47c   :  { %v1862_v7 = vadd.f32 %v1846_v0, %v1762_v9  ;;  %v1246_v9 = vadd.f32 %v5703_v11, %v5734_v33  ;;  %v6873_v0 = vsub.f32 %v4810_v62, %v5714_v60  ;;  %v1437_v15 = vmul.f32 0.75, %v1421_v45  ;;  %v6879_v45 = vld [vmem:[#allocation68_spill] sm:$0xff] }
 0x47d   :  { %v5834_v1 = vpop.f32.mrb[50].mxu0  ;;  %v5836_v53 = vpop.f32.mrb[34].mxu1  ;;  %v1765_v42 = vadd.f32 %v6867_v2, %v1647_v32  ;;  %v1764_v46 = vadd.f32 %v6871_v30, %v1642_v10  ;;  %v1819_v11 = vmul.f32 %v5760_v24, %v6874_v21  ;;  %v1241_v60 = vadd.f32 %v5734_v33, %v5719_v6  ;;  %v6880_v6 = vld [vmem:[#allocation58_spill] sm:$0xff] }
 0x47e   :  { %v5846_v39 = vpop.f32.mrb[51].mxu0  ;;  %v5848_v63 = vpop.f32.mrb[35].mxu1  ;;  %v1408_v38 = vmul.f32 %v5758_v50, %v6873_v0  ;;  %3758 = vmatprep.mubr.msk.f32.mxu1 %vm428_vm1, %v1862_v7  ;;  %v6875_v7 = vld [vmem:[#allocation52_spill] sm:$0xff]  ;;  %v1356_v26 = vadd.f32 %v6876_v36, %v1246_v9  ;;  %v5891_v56 = vadd.f32 %v1437_v15, %v1353_v29  ;;  %v1767_v30 = vadd.f32 %v6879_v45, %v1657_v20 }
 0x47f   :  { %3759 = vmatmul.mubr.msk.f32.vlgmr.msra.gmra.mrb[40].mxu1 %vm428_vm1, %v1863_v5  ;;  %v1865_v10 = vadd.f32 %v1849_v40, %v1765_v42  ;;  %v1832_v2 = vsub.f32 %v6875_v7, %v1816_v52  ;;  %v1835_v27 = vsub.f32 %v6880_v6, %v1819_v11  ;;  %v6881_v5 = vld [vmem:[#allocation64_spill] sm:$0xff]  ;;  %v6882_v40 = vsub.f32 %v4801_v54, %v5638_v34 }
 0x480   :  { %v1424_v37 = vsub.f32 %v6877_v12, %v1408_v38  ;;  %3949 = vmatpush3.bf16.msra.mxu1 %v6878_v8  ;;  %v1355_v0 = vadd.f32 %v6881_v5, %v1241_v60  ;;  %v1652_v9 = vadd.f32 %v5736_v31, %v5721_v17  ;;  %v6883_v20 = vsub.f32 %v4801_v54, %v5641_v19  ;;  %v6887_v19 = vld [vmem:[#allocation65_spill] sm:$0xff]  ;;  %v6889_v5 = vld [vmem:[#allocation66_spill] sm:$0xff] }
 0x481   :  { %v5870_v32 = vpop.f32.mrb[52].mxu0  ;;  %v5872_v51 = vpop.f32.mrb[36].mxu1  ;;  %3951 = vmatprep.subr.bf16.mxu1 %v5472_v55  ;;  %v1848_v21 = vmul.f32 -1.5, %v1832_v2  ;;  %v1407_v52 = vmul.f32 %v5758_v50, %v6882_v40  ;;  %v1851_v15 = vmul.f32 -1.5, %v1835_v27  ;;  %v1256_v60 = vadd.f32 %v5762_v43, %v5734_v33  ;;  %v6888_v43 = vld [vmem:[#allocation55_spill] sm:$0xff]  ;;  %v6890_v40 = vld [vmem:[#allocation56_spill] sm:$0xff] }
 0x482   :  { %v5883_v35 = vpop.f32.mrb[53].mxu0  ;;  %v5885_v16 = vpop.f32.mrb[37].mxu1  ;;  %v1440_v42 = vmul.f32 0.75, %v1424_v37  ;;  %v1818_v11 = vmul.f32 %v5760_v24, %v6883_v20  ;;  %v6884_v34 = vsub.f32 %v4804_v57, %v5692_v18  ;;  %v6886_v37 = vld [vmem:[#allocation54_spill] sm:$0xff]  ;;  %v1766_v45 = vadd.f32 %v6887_v19, %v1652_v9 }
 0x483   :  { %v1864_v36 = vadd.f32 %v1848_v21, %v1764_v46  ;;  %v1423_v8 = vsub.f32 %v6886_v37, %v1407_v52  ;;  %v1867_v6 = vadd.f32 %v1851_v15, %v1767_v30  ;;  %v1358_v18 = vadd.f32 %v6889_v5, %v1256_v60  ;;  %v6894_v60 = vld [vmem:[#allocation69_spill] sm:$0xff]  ;;  %v6896_v37 = vld [vmem:[#allocation74_spill] sm:$0xff] }
 0x484   :  { %v1410_v7 = vmul.f32 %v5758_v50, %v6884_v34  ;;  %v5921_v12 = vadd.f32 %v1440_v42, %v1356_v26  ;;  %3953 = vmatpush3.bf16.msra.mxu1 %v5472_v55  ;;  %v1834_v27 = vsub.f32 %v6888_v43, %v1818_v11  ;;  %v1667_v46 = vadd.f32 %v5764_v47, %v5736_v31 }
 0x485   :  { %v5903_v29 = vpop.f32.mrb[54].mxu0  ;;  %v5905_v38 = vpop.f32.mrb[38].mxu1  ;;  %3955 = vmatprep.subr.bf16.mxu1 %v5479_v13  ;;  %v1439_v34 = vmul.f32 0.75, %v1423_v8  ;;  %v6891_v26 = vsub.f32 %v4804_v57, %v5695_v3  ;;  %3761 = vmatprep.mubr.msk.f32.mxu1 %vm428_vm1, %v1864_v36  ;;  %v1251_v55 = vadd.f32 %v5734_v33, %v5778_v28  ;;  %v6892_v9 = vsub.f32 %v4807_v61, %v5616_v48  ;;  %v6898_v48 = vld [vmem:[#allocation70_spill] sm:$0xff] }
 0x486   :  { %v5917_v2 = vpop.f32.mrb[55].mxu0  ;;  %v5919_v17 = vpop.f32.mrb[39].mxu1  ;;  %6885 = vst [vmem:[#allocation47_spill] sm:$0xff] %v5921_v12  ;;  %v1426_v20 = vsub.f32 %v6890_v40, %v1410_v7  ;;  %v1850_v42 = vmul.f32 -1.5, %v1834_v27  ;;  %v1662_v47 = vadd.f32 %v5736_v31, %v5780_v49  ;;  %3762 = vmatmul.mubr.msk.f32.gmra.mrb[42].mxu1 %vm428_vm1, %v1865_v10  ;;  %v1769_v28 = vadd.f32 %v6894_v60, %v1667_v46  ;;  %v6895_v7 = vld [vmem:[#allocation59_spill] sm:$0xff]  ;;  %v6907_v60 = vld [vmem:[#allocation82_spill] sm:$0xff] }
 0x487   :  { %v1821_v21 = vmul.f32 %v5760_v24, %v6891_v26  ;;  %v1409_v15 = vmul.f32 %v5758_v50, %v6892_v9  ;;  %v5950_v11 = vadd.f32 %v1439_v34, %v1355_v0  ;;  %v1357_v8 = vadd.f32 %v6896_v37, %v1251_v55  ;;  %v6901_v34 = vld [vmem:[#allocation144_spill] sm:$0xff]  ;;  %v6904_v55 = vld [vmem:[#allocation145_spill] sm:$0xff] }
 0x488   :  { %v1442_v52 = vmul.f32 0.75, %v1426_v20  ;;  %v1866_v19 = vadd.f32 %v1850_v42, %v1766_v45  ;;  %v1768_v5 = vadd.f32 %v5235_v14, %v1662_v47  ;;  %v6899_v10 = vsub.f32 %v4807_v61, %v5619_v41  ;;  %v6900_v20 = vld [vmem:[#allocation41_spill] sm:$0xff] }
 0x489   :  { %v5939_v30 = vpop.f32.mrb[56].mxu0  ;;  %6893 = vst [vmem:[#allocation53_spill] sm:$0xff] %v5950_v11  ;;  %v1837_v36 = vsub.f32 %v6895_v7, %v1821_v21  ;;  %v1425_v27 = vsub.f32 %v6898_v48, %v1409_v15  ;;  %v1266_v40 = vadd.f32 %v5806_v58, %v5734_v33  ;;  %v6902_v46 = vsub.f32 %v6900_v20, %v6901_v34  ;;  %v6903_v21 = vld [vmem:[#allocation155_spill] sm:$0xff] }
 0x48a   :  { %v5948_v3 = vpop.f32.mrb[57].mxu0  ;;  %v5955_v43 = vadd.f32 %v1442_v52, %v1358_v18  ;;  %v1820_v0 = vmul.f32 %v5760_v24, %v6899_v10  ;;  %v1677_v14 = vadd.f32 %v6903_v21, %v5736_v31  ;;  %v6905_v42 = vsub.f32 %v6900_v20, %v6904_v55  ;;  %3764 = vmatprep.mubr.msk.f32.mxu1 %vm428_vm1, %v1866_v19  ;;  %v6906_v15 = vld [vmem:[#allocation71_spill] sm:$0xff] }
 0x48b   :  { %v1853_v49 = vmul.f32 -1.5, %v1837_v36  ;;  %v1412_v45 = vmul.f32 %v5758_v50, %v6902_v46  ;;  %v1441_v26 = vmul.f32 0.75, %v1425_v27  ;;  %v1261_v58 = vadd.f32 %v5734_v33, %v5816_v59  ;;  %v6908_v36 = vld [vmem:[#allocation73_spill] sm:$0xff]  ;;  %3765 = vmatmul.mubr.msk.f32.gmra.mrb[44].mxu1 %vm428_vm1, %v1867_v6  ;;  %v6911_v34 = vld [vmem:[#allocation75_spill] sm:$0xff]  ;;  %v6912_v46 = vld [vmem:[#allocation78_spill] sm:$0xff] }
 0x48c   :  { %6897 = vst [vmem:[#allocation48_spill] sm:$0xff] %v5955_v43  ;;  %v1823_v41 = vmul.f32 %v5760_v24, %v6905_v42  ;;  %v1836_v47 = vsub.f32 %v6906_v15, %v1820_v0  ;;  %v1360_v7 = vadd.f32 %v6907_v60, %v1266_v40  ;;  %v6910_v27 = vld [vmem:[#allocation89_spill] sm:$0xff]  ;;  %v6913_v42 = vld [vmem:[#allocation38_spill] sm:$0xff]  ;;  %v6916_v40 = vld [vmem:[#allocation156_spill] sm:$0xff] }
 0x48d   :  { %v5969_v18 = vpop.f32.mrb[58].mxu0  ;;  %v1869_v9 = vadd.f32 %v1853_v49, %v1769_v28  ;;  %v1428_v37 = vsub.f32 %v6908_v36, %v1412_v45  ;;  %v5986_v48 = vadd.f32 %v1441_v26, %v1357_v8  ;;  %v1771_v10 = vadd.f32 %v6910_v27, %v1677_v14  ;;  %v6914_v28 = vld [vmem:[#allocation140_spill] sm:$0xff]  ;;  %v6917_v8 = vld [vmem:[#allocation141_spill] sm:$0xff]  ;;  %v6926_v43 = vld [vmem:[#allocation91_spill] sm:$0xff] }
 0x48e   :  { %v5980_v52 = vpop.f32.mrb[59].mxu0  ;;  %v1839_v19 = vsub.f32 %v6911_v34, %v1823_v41  ;;  %v1359_v21 = vadd.f32 %v6912_v46, %v1261_v58  ;;  %v1852_v59 = vmul.f32 -1.5, %v1836_v47  ;;  %v6915_v49 = vsub.f32 %v6913_v42, %v6914_v28  ;;  %v6919_v58 = vld [vmem:[#allocation39_spill] sm:$0xff]  ;;  %v6923_v46 = vld [vmem:[#allocation72_spill] sm:$0xff]  ;;  %v6924_v28 = vld [vmem:[#allocation90_spill] sm:$0xff] }
 0x48f   :  { %6909 = vst [vmem:[#allocation60_spill] sm:$0xff] %v5986_v48  ;;  %v1444_v55 = vmul.f32 0.75, %v1428_v37  ;;  %v1672_v45 = vadd.f32 %v5736_v31, %v6916_v40  ;;  %v6918_v26 = vsub.f32 %v6913_v42, %v6917_v8  ;;  %v1276_v41 = vadd.f32 %v5834_v1, %v5734_v33  ;;  %v6920_v47 = vld [vmem:[#allocation31_spill] sm:$0xff]  ;;  %v6925_v8 = vld [vmem:[#allocation76_spill] sm:$0xff]  ;;  %v6927_v1 = vld [vmem:[#allocation77_spill] sm:$0xff] }
 0x490   :  { %v1411_v0 = vmul.f32 %v5758_v50, %v6915_v49  ;;  %v1855_v6 = vmul.f32 -1.5, %v1839_v19  ;;  %v6921_v60 = vsub.f32 %v6919_v58, %v6920_v47  ;;  %v1868_v27 = vadd.f32 %v1852_v59, %v1768_v5 }
 0x491   :  { %v5997_v15 = vpop.f32.mrb[60].mxu0  ;;  %v1822_v14 = vmul.f32 %v5760_v24, %v6918_v26  ;;  %v6011_v34 = vadd.f32 %v1444_v55, %v1360_v7  ;;  %v1770_v49 = vadd.f32 %v6924_v28, %v1672_v45  ;;  %v1362_v48 = vadd.f32 %v6926_v43, %v1276_v41  ;;  %v6931_v45 = vld [vmem:[#allocation136_spill] sm:$0xff]  ;;  %v6936_v28 = vld [vmem:[#allocation93_spill] sm:$0xff] }
 0x492   :  { %v1414_v36 = vmul.f32 %v5758_v50, %v6921_v60  ;;  %v6009_v37 = vpop.f32.mrb[61].mxu0  ;;  %v1427_v19 = vsub.f32 %v6923_v46, %v1411_v0  ;;  %v1871_v40 = vadd.f32 %v1855_v6, %v1771_v10  ;;  %v1687_v47 = vadd.f32 %v5836_v53, %v5736_v31  ;;  %v6928_v60 = vld [vmem:[#allocation24_spill] sm:$0xff]  ;;  %3767 = vmatprep.mubr.msk.f32.mxu1 %vm428_vm1, %v1868_v27  ;;  %v6935_v46 = vld [vmem:[#allocation79_spill] sm:$0xff] }
 0x493   :  { %6922 = vst [vmem:[#allocation49_spill] sm:$0xff] %v6011_v34  ;;  %v1838_v26 = vsub.f32 %v6925_v8, %v1822_v14  ;;  %v6929_v5 = vsub.f32 %v6919_v58, %v6928_v60  ;;  %v1271_v10 = vadd.f32 %v5734_v33, %v5846_v39  ;;  %v6930_v0 = vld [vmem:[#allocation40_spill] sm:$0xff]  ;;  %v1682_v53 = vadd.f32 %v5736_v31, %v5848_v63 }
 0x494   :  { %v1430_v12 = vsub.f32 %v6927_v1, %v1414_v36  ;;  %v1443_v11 = vmul.f32 0.75, %v1427_v19  ;;  %v6932_v6 = vsub.f32 %v6930_v0, %v6931_v45  ;;  %3768 = vmatmul.mubr.msk.f32.gmra.mrb[46].mxu1 %vm428_vm1, %v1869_v9  ;;  %v6934_v27 = vld [vmem:[#allocation92_spill] sm:$0xff]  ;;  %v6940_v9 = vld [vmem:[#allocation137_spill] sm:$0xff] }
 0x495   :  { %v1825_v7 = vmul.f32 %v5760_v24, %v6929_v5  ;;  %v6027_v59 = vpop.f32.mrb[62].mxu0  ;;  %v1854_v55 = vmul.f32 -1.5, %v1838_v26  ;;  %v1773_v39 = vadd.f32 %v6934_v27, %v1687_v47  ;;  %v6938_v1 = vld [vmem:[#allocation80_spill] sm:$0xff]  ;;  %v6939_v5 = vld [vmem:[#allocation94_spill] sm:$0xff]  ;;  %v6942_v47 = vld [vmem:[#allocation45_spill] sm:$0xff] }
 0x496   :  { %v1446_v43 = vmul.f32 0.75, %v1430_v12  ;;  %v1413_v14 = vmul.f32 %v5758_v50, %v6932_v6  ;;  %v6036_v41 = vpop.f32.mrb[63].mxu0  ;;  %v6038_v36 = vadd.f32 %v1443_v11, %v1359_v21  ;;  %v1361_v12 = vadd.f32 %v6936_v28, %v1271_v10  ;;  %v6947_v28 = vld [vmem:[#allocation81_spill] sm:$0xff] }
 0x497   :  { %v1841_v19 = vsub.f32 %v6935_v46, %v1825_v7  ;;  %v1870_v8 = vadd.f32 %v1854_v55, %v1770_v49  ;;  %v1772_v45 = vadd.f32 %v6939_v5, %v1682_v53  ;;  %v6941_v6 = vsub.f32 %v6930_v0, %v6940_v9  ;;  %v6943_v7 = vld [vmem:[#allocation152_spill] sm:$0xff]  ;;  %v6948_v5 = vld [vmem:[#allocation95_spill] sm:$0xff] }
 0x498   :  { %6933 = vst [vmem:[#allocation61_spill] sm:$0xff] %v6038_v36  ;;  %v6043_v26 = vadd.f32 %v1446_v43, %v1362_v48  ;;  %v1429_v60 = vsub.f32 %v6938_v1, %v1413_v14  ;;  %v1286_v21 = vadd.f32 %v5870_v32, %v5734_v33  ;;  %v6944_v27 = vsub.f32 %v6942_v47, %v6943_v7  ;;  %v6945_v43 = vld [vmem:[#allocation153_spill] sm:$0xff]  ;;  %v6949_v9 = vld [vmem:[#allocation83_spill] sm:$0xff]  ;;  %v6951_v7 = vld [vmem:[#allocation96_spill] sm:$0xff] }
 0x499   :  { %v1857_v63 = vmul.f32 -1.5, %v1841_v19  ;;  %v1824_v11 = vmul.f32 %v5760_v24, %v6941_v6  ;;  %v6057_v48 = vpop.f32.mrb[64].mxu0  ;;  %v1697_v55 = vadd.f32 %v5872_v51, %v5736_v31  ;;  %v6946_v14 = vsub.f32 %v6942_v47, %v6945_v43  ;;  %3770 = vmatprep.mubr.msk.f32.mxu1 %vm428_vm1, %v1870_v8  ;;  %v6952_v43 = vld [vmem:[#allocation84_spill] sm:$0xff]  ;;  %v6954_v36 = vld [vmem:[#allocation42_spill] sm:$0xff] }
 0x49a   :  { %6937 = vst [vmem:[#allocation50_spill] sm:$0xff] %v6043_v26  ;;  %v1416_v49 = vmul.f32 %v5758_v50, %v6944_v27  ;;  %v1445_v10 = vmul.f32 0.75, %v1429_v60  ;;  %v1281_v32 = vadd.f32 %v5734_v33, %v5883_v35  ;;  %v6068_v46 = vpop.f32.mrb[65].mxu0  ;;  %v1364_v60 = vadd.f32 %v6948_v5, %v1286_v21  ;;  %3771 = vmatmul.mubr.msk.f32.gmra.mrb[48].mxu1 %vm428_vm1, %v1871_v40 }
 0x49b   :  { %v1827_v53 = vmul.f32 %v5760_v24, %v6946_v14  ;;  %v1873_v19 = vadd.f32 %v1857_v63, %v1773_v39  ;;  %v1840_v1 = vsub.f32 %v6947_v28, %v1824_v11  ;;  %v1775_v27 = vadd.f32 %v6951_v7, %v1697_v55  ;;  %v6953_v14 = vld [vmem:[#allocation97_spill] sm:$0xff]  ;;  %v6955_v39 = vld [vmem:[#allocation148_spill] sm:$0xff]  ;;  %v6960_v28 = vld [vmem:[#allocation34_spill] sm:$0xff] }
 0x49c   :  { %v1432_v6 = vsub.f32 %v6949_v9, %v1416_v49  ;;  %v6074_v51 = vadd.f32 %v1445_v10, %v1361_v12  ;;  %v1363_v26 = vadd.f32 %v6953_v14, %v1281_v32  ;;  %v6956_v63 = vsub.f32 %v6954_v36, %v6955_v39  ;;  %v6957_v12 = vld [vmem:[#allocation149_spill] sm:$0xff]  ;;  %v6959_v32 = vld [vmem:[#allocation43_spill] sm:$0xff] }
 0x49d   :  { %v1843_v8 = vsub.f32 %v6952_v43, %v1827_v53  ;;  %v1856_v35 = vmul.f32 -1.5, %v1840_v1  ;;  %v1692_v21 = vadd.f32 %v5736_v31, %v5885_v16  ;;  %v6085_v49 = vpop.f32.mrb[66].mxu0  ;;  %v6958_v10 = vsub.f32 %v6954_v36, %v6957_v12  ;;  %v6962_v7 = vld [vmem:[#allocation85_spill] sm:$0xff] }
 0x49e   :  { %6950 = vst [vmem:[#allocation62_spill] sm:$0xff] %v6074_v51  ;;  %v1448_v34 = vmul.f32 0.75, %v1432_v6  ;;  %v1415_v11 = vmul.f32 %v5758_v50, %v6956_v63  ;;  %v1296_v53 = vadd.f32 %v5903_v29, %v5734_v33  ;;  %v6961_v1 = vsub.f32 %v6959_v32, %v6960_v28  ;;  %v6097_v9 = vpop.f32.mrb[67].mxu0  ;;  %v6964_v63 = vld [vmem:[#allocation86_spill] sm:$0xff]  ;;  %v6966_v29 = vld [vmem:[#allocation87_spill] sm:$0xff] }
 0x49f   :  { %v1859_v40 = vmul.f32 -1.5, %v1843_v8  ;;  %v1826_v55 = vmul.f32 %v5760_v24, %v6958_v10  ;;  %v1872_v6 = vadd.f32 %v1856_v35, %v1772_v45  ;;  %v6963_v8 = vld [vmem:[#allocation98_spill] sm:$0xff]  ;;  %v6965_v10 = vld [vmem:[#allocation99_spill] sm:$0xff]  ;;  %v1707_v28 = vadd.f32 %v5905_v38, %v5736_v31 }
 0x4a0   :  { %v1418_v5 = vmul.f32 %v5758_v50, %v6961_v1  ;;  %v6099_v16 = vadd.f32 %v1448_v34, %v1364_v60  ;;  %v1431_v43 = vsub.f32 %v6962_v7, %v1415_v11  ;;  %v1774_v14 = vadd.f32 %v6963_v8, %v1692_v21  ;;  %v6967_v1 = vld [vmem:[#allocation25_spill] sm:$0xff]  ;;  %v6969_v21 = vld [vmem:[#allocation44_spill] sm:$0xff] }
 0x4a1   :  { %v1875_v39 = vadd.f32 %v1859_v40, %v1775_v27  ;;  %v1842_v12 = vsub.f32 %v6964_v63, %v1826_v55  ;;  %v1366_v51 = vadd.f32 %v6965_v10, %v1296_v53  ;;  %v6968_v45 = vsub.f32 %v6959_v32, %v6967_v1  ;;  %3773 = vmatprep.mubr.msk.f32.mxu1 %vm428_vm1, %v1872_v6  ;;  %v6115_v27 = vpop.f32.mrb[68].mxu0  ;;  %v6970_v40 = vld [vmem:[#allocation35_spill] sm:$0xff]  ;;  %v6973_v7 = vld [vmem:[#allocation88_spill] sm:$0xff]  ;;  %v6974_v8 = vld [vmem:[#allocation105_spill] sm:$0xff] }
 0x4a2   :  { %v1434_v36 = vsub.f32 %v6966_v29, %v1418_v5  ;;  %v1447_v47 = vmul.f32 0.75, %v1431_v43  ;;  %v1291_v60 = vadd.f32 %v5734_v33, %v5917_v2  ;;  %v6971_v55 = vsub.f32 %v6969_v21, %v6970_v40  ;;  %3774 = vmatmul.mubr.msk.f32.gmra.mrb[50].mxu1 %vm428_vm1, %v1873_v19  ;;  %v6127_v5 = vld [vmem:[%s6557_s15] ss:$0 sm:$0xff]  ;;  %v6129_v33 = vpop.f32.mrb[69].mxu0  ;;  %v6136_v63 = vld [vmem:[#allocation14 + $0x2] ss:$0 sm:$0xff] }
 0x4a3   :  { %v1829_v34 = vmul.f32 %v5760_v24, %v6968_v45  ;;  %v1858_v35 = vmul.f32 -1.5, %v1842_v12  ;;  %v1702_v38 = vadd.f32 %v5736_v31, %v5919_v17  ;;  %v6975_v19 = vld [vmem:[#allocation101_spill] sm:$0xff]  ;;  %v6976_v10 = vld [vmem:[#allocation106_spill] sm:$0xff] }
 0x4a4   :  { %v1450_v11 = vmul.f32 0.75, %v1434_v36  ;;  %v1417_v53 = vmul.f32 %v5758_v50, %v6971_v55  ;;  %v6131_v2 = vadd.f32 %v1447_v47, %v1363_v26  ;;  %v6972_v36 = vld [vmem:[#allocation100_spill] sm:$0xff]  ;;  %v1365_v50 = vadd.f32 %v6974_v8, %v1291_v60  ;;  %v6977_v45 = vld [vmem:[#allocation26_spill] sm:$0xff]  ;;  %v6980_v60 = vld [vmem:[#allocation143_spill] sm:$0xff] }
 0x4a5   :  { %v1777_v6 = vadd.f32 %v6972_v36, %v1707_v28  ;;  %v1845_v43 = vsub.f32 %v6973_v7, %v1829_v34  ;;  %v1874_v31 = vadd.f32 %v1858_v35, %v1774_v14  ;;  %v1776_v29 = vadd.f32 %v6976_v10, %v1702_v38  ;;  %v6979_v34 = vld [vmem:[#allocation37_spill] sm:$0xff]  ;;  %v6982_v55 = vld [vmem:[#allocation36_spill] sm:$0xff]  ;;  %v6987_v10 = vld [vmem:[#allocation103_spill] sm:$0xff] }
 0x4a6   :  { %v6138_v17 = vadd.f32 %v1450_v11, %v1366_v51  ;;  %v1433_v12 = vsub.f32 %v6975_v19, %v1417_v53  ;;  %v6978_v26 = vsub.f32 %v6969_v21, %v6977_v45  ;;  %v2032_v28 = vadd.f32 %v5939_v30, %v6127_v5  ;;  %v6152_v51 = vpop.f32.mrb[70].mxu0  ;;  %v6983_v53 = vld [vmem:[#allocation139_spill] sm:$0xff]  ;;  %v6986_v19 = vld [vmem:[#allocation110_spill] sm:$0xff] }
 0x4a7   :  { %v1861_v1 = vmul.f32 -1.5, %v1845_v43  ;;  %v6981_v40 = vsub.f32 %v6979_v34, %v6980_v60  ;;  %3776 = vmatprep.mubr.msk.f32.mxu1 %vm428_vm1, %v1874_v31  ;;  %v2027_v11 = vadd.f32 %v6127_v5, %v5948_v3  ;;  %v6984_v38 = vsub.f32 %v6982_v55, %v6983_v53  ;;  %v6163_v36 = vpop.f32.mrb[71].mxu0  ;;  %v6985_v43 = vld [vmem:[#allocation102_spill] sm:$0xff]  ;;  %v6989_v34 = vld [vmem:[#allocation104_spill] sm:$0xff] }
 0x4a8   :  { %v1828_v47 = vmul.f32 %v5760_v24, %v6978_v26  ;;  %v1449_v35 = vmul.f32 0.75, %v1433_v12  ;;  %v2042_v30 = vadd.f32 %v5969_v18, %v6127_v5  ;;  %v2158_v12 = vadd.f32 %v6986_v19, %v2032_v28  ;;  %3777 = vmatmul.mubr.msk.f32.gmra.mrb[52].mxu1 %vm428_vm1, %v1875_v39  ;;  %v6988_v45 = vld [vmem:[#allocation114_spill] sm:$0xff]  ;;  %v6993_v39 = vld [vmem:[#allocation135_spill] sm:$0xff] }
 0x4a9   :  { %v2210_v14 = vmul.f32 %v6136_v63, %v6981_v40  ;;  %v2209_v24 = vmul.f32 %v6136_v63, %v6984_v38  ;;  %v1877_v7 = vadd.f32 %v1861_v1, %v1777_v6  ;;  %v2157_v26 = vadd.f32 %v6988_v45, %v2027_v11  ;;  %v6990_v40 = vld [vmem:[#allocation121_spill] sm:$0xff]  ;;  %v6991_v6 = vld [vmem:[#allocation23_spill] sm:$0xff] }
 0x4aa   :  { %v1844_v8 = vsub.f32 %v6985_v43, %v1828_v47  ;;  %v6169_v3 = vadd.f32 %v1449_v35, %v1365_v50  ;;  %v2160_v55 = vadd.f32 %v6990_v40, %v2042_v30  ;;  %v6992_v1 = vsub.f32 %v4784_v23, %v6991_v6  ;;  %v6995_v38 = vld [vmem:[#allocation151_spill] sm:$0xff]  ;;  %v7001_v40 = vld [vmem:[#allocation109_spill] sm:$0xff] }
 0x4ab   :  { %v2226_v31 = vsub.f32 %v6987_v10, %v2210_v14  ;;  %v2225_v60 = vsub.f32 %v6989_v34, %v2209_v24  ;;  %v2037_v28 = vadd.f32 %v6127_v5, %v5980_v52  ;;  %v6994_v50 = vsub.f32 %v4787_v25, %v6993_v39  ;;  %v6998_v52 = vld [vmem:[#allocation122_spill] sm:$0xff]  ;;  %v6999_v25 = vld [vmem:[#allocation108_spill] sm:$0xff]  ;;  %v7000_v34 = vld [vmem:[#allocation123_spill] sm:$0xff] }
 0x4ac   :  { %v1860_v18 = vmul.f32 -1.5, %v1844_v8  ;;  %v2212_v47 = vmul.f32 %v6136_v63, %v6992_v1  ;;  %v2052_v11 = vadd.f32 %v5997_v15, %v6127_v5  ;;  %v6996_v24 = vsub.f32 %v4810_v62, %v6995_v38  ;;  %v6997_v8 = vld [vmem:[#allocation107_spill] sm:$0xff] }
 0x4ad   :  { %v2242_v53 = vmul.f32 0.75, %v2226_v31  ;;  %v2241_v14 = vmul.f32 0.75, %v2225_v60  ;;  %v2211_v35 = vmul.f32 %v6136_v63, %v6994_v50  ;;  %v2159_v10 = vadd.f32 %v6998_v52, %v2037_v28 }
 0x4ae   :  { %v2214_v30 = vmul.f32 %v6136_v63, %v6996_v24  ;;  %v1876_v23 = vadd.f32 %v1860_v18, %v1776_v29  ;;  %v2228_v19 = vsub.f32 %v6997_v8, %v2212_v47  ;;  %v2162_v60 = vadd.f32 %v7000_v34, %v2052_v11  ;;  %v7002_v29 = vld [vmem:[#allocation147_spill] sm:$0xff]  ;;  %v7008_v11 = vld [vmem:[#allocation125_spill] sm:$0xff] }
 0x4af   :  { %v6190_v43 = vadd.f32 %v2242_v53, %v2158_v12  ;;  %v6194_v31 = vadd.f32 %v2241_v14, %v2157_v26  ;;  %v2227_v45 = vsub.f32 %v6999_v25, %v2211_v35  ;;  %v2047_v62 = vadd.f32 %v6127_v5, %v6009_v37  ;;  %v7004_v47 = vld [vmem:[#allocation27_spill] sm:$0xff]  ;;  %v7013_v25 = vld [vmem:[#allocation146_spill] sm:$0xff] }
 0x4b0   :  { %v2230_v15 = vsub.f32 %v7001_v40, %v2214_v30  ;;  %v2244_v6 = vmul.f32 0.75, %v2228_v19  ;;  %3779 = vmatprep.mubr.msk.f32.mxu1 %vm428_vm1, %v1876_v23  ;;  %v7003_v12 = vsub.f32 %v4801_v54, %v7002_v29  ;;  %v2062_v26 = vadd.f32 %v6027_v59, %v6127_v5  ;;  %v7006_v54 = vld [vmem:[#allocation124_spill] sm:$0xff]  ;;  %v7007_v59 = vld [vmem:[#allocation111_spill] sm:$0xff]  ;;  %v7010_v23 = vld [vmem:[#allocation126_spill] sm:$0xff] }
 0x4b1   :  { %v2243_v53 = vmul.f32 0.75, %v2227_v45  ;;  %3780 = vmatmul.mubr.msk.f32.gmra.mrb[54].mxu1 %vm428_vm1, %v1877_v7  ;;  %v7005_v28 = vsub.f32 %v4804_v57, %v7004_v47  ;;  %v2057_v37 = vadd.f32 %v6127_v5, %v6036_v41  ;;  %v2161_v50 = vadd.f32 %v7006_v54, %v2047_v62  ;;  %v7009_v57 = vld [vmem:[#allocation112_spill] sm:$0xff]  ;;  %v7015_v40 = vld [vmem:[#allocation142_spill] sm:$0xff]  ;;  %v7018_v62 = vld [vmem:[#allocation127_spill] sm:$0xff] }
 0x4b2   :  { %v2213_v18 = vmul.f32 %v6136_v63, %v7003_v12  ;;  %v2246_v1 = vmul.f32 0.75, %v2230_v15  ;;  %v6215_v39 = vadd.f32 %v2244_v6, %v2160_v55  ;;  %3790 = vmatprep.mubr.msk.f32.mxu1 %vm428_vm1, %v5850_v44  ;;  %v2164_v7 = vadd.f32 %v7008_v11, %v2062_v26  ;;  %v7011_v55 = vld [vmem:[#allocation28_spill] sm:$0xff] }
 0x4b3   :  { %v2216_v14 = vmul.f32 %v6136_v63, %v7005_v28  ;;  %v6222_v38 = vadd.f32 %v2243_v53, %v2159_v10  ;;  %v2163_v8 = vadd.f32 %v7010_v23, %v2057_v37  ;;  %v7012_v19 = vsub.f32 %v4807_v61, %v7011_v55  ;;  %v7021_v53 = vld [vmem:[#allocation128_spill] sm:$0xff]  ;;  %v7023_v28 = vld [vmem:[#allocation30_spill] sm:$0xff]  ;;  %v7030_v55 = vld [vmem:[#allocation117_spill] sm:$0xff] }
 0x4b4   :  { %v2229_v35 = vsub.f32 %v7007_v59, %v2213_v18  ;;  %v6224_v24 = vadd.f32 %v2246_v1, %v2162_v60  ;;  %v2072_v52 = vadd.f32 %v6057_v48, %v6127_v5  ;;  %v7014_v45 = vsub.f32 %v6900_v20, %v7013_v25 }
 0x4b5   :  { %v2232_v30 = vsub.f32 %v7009_v57, %v2216_v14  ;;  %v2215_v44 = vmul.f32 %v6136_v63, %v7012_v19  ;;  %3791 = vmatmul.mubr.msk.f32.vlgmr.msra.gmra.mrb[40].mxu1 %vm428_vm1, %v5824_v22  ;;  %v2067_v60 = vadd.f32 %v6127_v5, %v6068_v46  ;;  %v7016_v61 = vsub.f32 %v6913_v42, %v7015_v40  ;;  %v7017_v22 = vld [vmem:[#allocation113_spill] sm:$0xff]  ;;  %v7020_v42 = vld [vmem:[#allocation115_spill] sm:$0xff]  ;;  %v7031_v19 = vld [vmem:[#allocation130_spill] sm:$0xff] }
 0x4b6   :  { %v2245_v41 = vmul.f32 0.75, %v2229_v35  ;;  %v2218_v10 = vmul.f32 %v6136_v63, %v7014_v45  ;;  %v2082_v48 = vadd.f32 %v6085_v49, %v6127_v5  ;;  %3793 = vmatprep.mubr.msk.f32.mxu1 %vm428_vm1, %v5891_v56  ;;  %3957 = vmatpush3.bf16.msra.mxu1 %v5479_v13  ;;  %v2166_v29 = vadd.f32 %v7018_v62, %v2072_v52  ;;  %v7019_v46 = vld [vmem:[#allocation133_spill] sm:$0xff]  ;;  %v7022_v49 = vld [vmem:[#allocation116_spill] sm:$0xff]  ;;  %v7033_v52 = vld [vmem:[#allocation154_spill] sm:$0xff] }
 0x4b7   :  { %v2248_v34 = vmul.f32 0.75, %v2232_v30  ;;  %v2217_v15 = vmul.f32 %v6136_v63, %v7016_v61  ;;  %v2231_v20 = vsub.f32 %v7017_v22, %v2215_v44  ;;  %v2156_v12 = vmul.f32 0.0, %v7019_v46  ;;  %3959 = vmatprep.subr.bf16.mxu1 %v7023_v28  ;;  %v7024_v56 = vld [vmem:[#allocation129_spill] sm:$0xff]  ;;  %v7037_v61 = vld [vmem:[#allocation119_spill] sm:$0xff]  ;;  %v7038_v22 = vld [vmem:[#allocation42_spill] sm:$0xff] }
 0x4b8   :  { %v6248_v6 = vadd.f32 %v2245_v41, %v2161_v50  ;;  %v2234_v26 = vsub.f32 %v7020_v42, %v2218_v10  ;;  %v2165_v1 = vadd.f32 %v7021_v53, %v2067_v60  ;;  %v2168_v37 = vadd.f32 %v7024_v56, %v2082_v48  ;;  %v7025_v13 = vld [vmem:[#allocation29_spill] sm:$0xff]  ;;  %v7041_v42 = vld [vmem:[#allocation47_spill] sm:$0xff]  ;;  %v7044_v56 = vld [vmem:[#allocation60_spill] sm:$0xff] }
 0x4b9   :  { %v6256_v18 = vadd.f32 %v2248_v34, %v2164_v7  ;;  %v2233_v47 = vsub.f32 %v7022_v49, %v2217_v15  ;;  %v2247_v14 = vmul.f32 0.75, %v2231_v20  ;;  %v7026_v54 = vsub.f32 %v6919_v58, %v7025_v13  ;;  %3794 = vmatmul.mubr.msk.f32.gmra.mrb[42].mxu1 %vm428_vm1, %v5854_v4  ;;  %v7027_v7 = vld [vmem:[#allocation138_spill] sm:$0xff]  ;;  %v7029_v58 = vld [vmem:[#allocation53_spill] sm:$0xff] }
 0x4ba   :  { %v2077_v59 = vadd.f32 %v6127_v5, %v6097_v9  ;;  %v2250_v35 = vmul.f32 0.75, %v2234_v26  ;;  %v7028_v57 = vsub.f32 %v6930_v0, %v7027_v7  ;;  %v2092_v23 = vadd.f32 %v6115_v27, %v6127_v5  ;;  %3796 = vmatprep.mubr.msk.f32.mxu1 %vm428_vm1, %v7029_v58  ;;  %v7032_v4 = vld [vmem:[#allocation45_spill] sm:$0xff]  ;;  %v7035_v34 = vld [vmem:[#allocation118_spill] sm:$0xff]  ;;  %3961 = vmatpush3.bf16.msra.mxu1 %v7023_v28  ;;  %v2919_v28 = vld [vmem:[%s6560_s18] sm:$0xff] }
 0x4bb   :  { %v2220_v50 = vmul.f32 %v6136_v63, %v7026_v54  ;;  %v2249_v11 = vmul.f32 0.75, %v2233_v47  ;;  %v6277_v41 = vadd.f32 %v2247_v14, %v2163_v8  ;;  %v7034_v25 = vsub.f32 %v7032_v4, %v7033_v52  ;;  %v7036_v8 = vld [vmem:[#allocation131_spill] sm:$0xff]  ;;  %v7039_v20 = vld [vmem:[#allocation150_spill] sm:$0xff]  ;;  %v2920_v14 = vld [vmem:[%s6560_s18 + $0x8] sm:$0xff] }
 0x4bc   :  { %v2219_v30 = vmul.f32 %v6136_v63, %v7028_v57  ;;  %v2167_v44 = vadd.f32 %v7031_v19, %v2077_v59  ;;  %v6287_v0 = vadd.f32 %v2250_v35, %v2166_v29  ;;  %v2170_v60 = vadd.f32 %v7036_v8, %v2092_v23  ;;  %v7048_v58 = vld [vmem:[#allocation33_spill] sm:$0xff]  ;;  %v7050_v4 = vld [vmem:[#allocation48_spill] sm:$0xff] }
 0x4bd   :  { %v2236_v9 = vsub.f32 %v7030_v55, %v2220_v50  ;;  %v2222_v45 = vmul.f32 %v6136_v63, %v7034_v25  ;;  %v6289_v10 = vadd.f32 %v2249_v11, %v2165_v1  ;;  %v2087_v48 = vadd.f32 %v6127_v5, %v6129_v33  ;;  %3797 = vmatmul.mubr.msk.f32.gmra.mrb[44].mxu1 %vm428_vm1, %v7041_v42  ;;  %v7042_v1 = vld [vmem:[#allocation32_spill] sm:$0xff]  ;;  %v7051_v25 = vld [vmem:[#allocation61_spill] sm:$0xff] }
 0x4be   :  { %v2235_v27 = vsub.f32 %v7035_v34, %v2219_v30  ;;  %v7040_v62 = vsub.f32 %v7038_v22, %v7039_v20  ;;  %v2102_v53 = vadd.f32 %v6152_v51, %v6127_v5  ;;  %v7043_v49 = vsub.f32 %v6959_v32, %v7042_v1  ;;  %3799 = vmatprep.mubr.msk.f32.mxu1 %vm428_vm1, %v7044_v56  ;;  %v7045_v32 = vld [vmem:[#allocation132_spill] sm:$0xff]  ;;  %v7054_v20 = vld [vmem:[#allocation50_spill] sm:$0xff] }
 0x4bf   :  { %v2252_v40 = vmul.f32 0.75, %v2236_v9  ;;  %v2238_v15 = vsub.f32 %v7037_v61, %v2222_v45  ;;  %v2097_v33 = vadd.f32 %v6127_v5, %v6163_v36  ;;  %v2169_v54 = vadd.f32 %v7045_v32, %v2087_v48  ;;  %v7046_v50 = vld [vmem:[#allocation120_spill] sm:$0xff]  ;;  %v2921_v5 = vld [vmem:[%s6560_s18 + $0x10] sm:$0xff]  ;;  %v2922_v36 = vld [vmem:[%s6560_s18 + $0x18] sm:$0xff] }
 0x4c0   :  { %v2221_v29 = vmul.f32 %v6136_v63, %v7040_v62  ;;  %v2251_v26 = vmul.f32 0.75, %v2235_v27  ;;  %v2224_v47 = vmul.f32 %v6136_v63, %v7043_v49  ;;  %v2172_v11 = vadd.f32 %v2156_v12, %v2102_v53  ;;  %v2924_v12 = vld [vmem:[%s6560_s18 + $0x28] sm:$0xff]  ;;  %v2926_v61 = vld [vmem:[%s6560_s18 + $0x38] sm:$0xff]  ;;  %v2927_v62 = vld [vmem:[%s6560_s18 + $0x40] sm:$0xff] }
 0x4c1   :  { %v6319_v51 = vadd.f32 %v2252_v40, %v2168_v37  ;;  %v2254_v13 = vmul.f32 0.75, %v2238_v15  ;;  %v7047_v37 = vld [vmem:[#allocation134_spill] sm:$0xff]  ;;  %v7049_v55 = vsub.f32 %v6969_v21, %v7048_v58  ;;  %v3962_v19 = vpack.c.bf16 %v2920_v14, %v2919_v28  ;;  %3800 = vmatmul.mubr.msk.f32.gmra.mrb[46].mxu1 %vm428_vm1, %v7050_v4  ;;  %v2925_v40 = vld [vmem:[%s6560_s18 + $0x30] sm:$0xff]  ;;  %v2932_v1 = vld [vmem:[%s6560_s18 + $0x68] sm:$0xff] }
 0x4c2   :  { %v2237_v59 = vsub.f32 %v7046_v50, %v2221_v29  ;;  %v6329_v35 = vadd.f32 %v2251_v26, %v2167_v44  ;;  %v2240_v7 = vsub.f32 %v7019_v46, %v2224_v47  ;;  %v2155_v57 = vmul.f32 0.0, %v7047_v37  ;;  %v2923_v46 = vld [vmem:[%s6560_s18 + $0x20] sm:$0xff]  ;;  %3802 = vmatprep.mubr.msk.f32.mxu1 %vm428_vm1, %v7051_v25  ;;  %v7053_v15 = vld [vmem:[#allocation62_spill] sm:$0xff]  ;;  %v2928_v29 = vld [vmem:[%s6560_s18 + $0x48] sm:$0xff] }
 0x4c3   :  { %v6333_v30 = vadd.f32 %v2254_v13, %v2170_v60  ;;  %v2223_v9 = vmul.f32 %v6136_v63, %v7049_v55  ;;  %v3966_v44 = vpack.c.bf16 %v2922_v36, %v2921_v5  ;;  %3963 = vmatprep.subr.bf16.mxu0 %v3962_v19  ;;  %v3970_v8 = vpack.c.bf16 %v2924_v12, %v2923_v46  ;;  %v7052_v60 = vld [vmem:[#allocation49_spill] sm:$0xff]  ;;  %v2930_v53 = vld [vmem:[%s6560_s18 + $0x58] sm:$0xff] }
 0x4c4   :  { %v2253_v23 = vmul.f32 0.75, %v2237_v59  ;;  %v2256_v52 = vmul.f32 0.75, %v2240_v7  ;;  %v2171_v45 = vadd.f32 %v2155_v57, %v2097_v33  ;;  %3965 = vmatpush3.bf16.msra.mxu0 %v3962_v19  ;;  %v3974_v22 = vpack.c.bf16 %v2926_v61, %v2925_v40  ;;  %v2929_v26 = vld [vmem:[%s6560_s18 + $0x50] sm:$0xff] }
 0x4c5   :  { %v2239_v63 = vsub.f32 %v7047_v37, %v2223_v9  ;;  %3967 = vmatprep.subr.bf16.mxu0 %v3966_v44  ;;  %3803 = vmatmul.mubr.msk.f32.gmra.mrb[48].mxu1 %vm428_vm1, %v7052_v60  ;;  %v3978_v42 = vpack.c.bf16 %v2928_v29, %v2927_v62 }
 0x4c6   :  { %v2269_v21 = vadd.f32 %v2253_v23, %v2169_v54  ;;  %v2272_v34 = vadd.f32 %v2256_v52, %v2172_v11  ;;  %3805 = vmatprep.mubr.msk.f32.mxu1 %vm428_vm1, %v7053_v15 }
 0x4c7   :  { %v2255_v27 = vmul.f32 0.75, %v2239_v63 }
 0x4c8   :  { %3969 = vmatpush3.bf16.msra.mxu0 %v3966_v44 }
 0x4c9   :  { %v2271_v48 = vadd.f32 %v2255_v27, %v2171_v45  ;;  %3971 = vmatprep.subr.bf16.mxu0 %v3970_v8  ;;  %3806 = vmatmul.mubr.msk.f32.gmra.mrb[50].mxu1 %vm428_vm1, %v7054_v20 }
 0x4ca   :  { %3808 = vmatprep.mubr.msk.f32.mxu1 %vm428_vm1, %v6131_v2  ;;  %v3982_v2 = vpack.c.bf16 %v2930_v53, %v2929_v26 }
 0x4cc   :  { %3973 = vmatpush3.bf16.msra.mxu0 %v3970_v8 }
 0x4cd   :  { %3975 = vmatprep.subr.bf16.mxu0 %v3974_v22  ;;  %3809 = vmatmul.mubr.msk.f32.gmra.mrb[52].mxu1 %vm428_vm1, %v6099_v16  ;;  %v2931_v16 = vld [vmem:[%s6560_s18 + $0x60] sm:$0xff] }
 0x4ce   :  { %3811 = vmatprep.mubr.msk.f32.mxu1 %vm428_vm1, %v6169_v3  ;;  %v3986_v3 = vpack.c.bf16 %v2932_v1, %v2931_v16 }
 0x4d0   :  { %3977 = vmatpush3.bf16.msra.mxu0 %v3974_v22  ;;  %v6493_v22 = vld [vmem:[%s7055_s2] ss:$0 sm:$0xff] }
 0x4d1   :  { %3979 = vmatprep.subr.bf16.mxu0 %v3978_v42  ;;  %3812 = vmatmul.mubr.msk.f32.gmra.mrb[54].mxu1 %vm428_vm1, %v6138_v17  ;;  %v2933_v17 = vld [vmem:[%s6560_s18 + $0x70] sm:$0xff] }
 0x4d2   :  { %3822 = vmatprep.mubr.msk.f32.mxu1 %vm428_vm1, %v6194_v31 }
 0x4d4   :  { %3981 = vmatpush3.bf16.msra.mxu0 %v3978_v42 }
 0x4d5   :  { %3983 = vmatprep.subr.bf16.mxu0 %v3982_v2  ;;  %3823 = vmatmul.mubr.msk.f32.vlgmr.msra.gmra.mrb[40].mxu1 %vm428_vm1, %v6190_v43  ;;  %v2934_v43 = vld [vmem:[%s6560_s18 + $0x78] sm:$0xff] }
 0x4d6   :  { %3825 = vmatprep.mubr.msk.f32.mxu1 %vm428_vm1, %v6222_v38  ;;  %v3990_v31 = vpack.c.bf16 %v2934_v43, %v2933_v17 }
 0x4d8   :  { %3985 = vmatpush3.bf16.msra.mxu0 %v3982_v2 }
 0x4d9   :  { %3987 = vmatprep.subr.bf16.mxu0 %v3986_v3  ;;  %3826 = vmatmul.mubr.msk.f32.gmra.mrb[42].mxu1 %vm428_vm1, %v6215_v39  ;;  %v3306_v39 = vld [vmem:[%s6559_s17] ss:$0 sm:$0xff] }
 0x4da   :  { %3828 = vmatprep.mubr.msk.f32.mxu1 %vm428_vm1, %v6248_v6 }
 0x4dc   :  { %3989 = vmatpush3.bf16.msra.mxu0 %v3986_v3 }
 0x4dd   :  { %3829 = vmatmul.mubr.msk.f32.gmra.mrb[44].mxu1 %vm428_vm1, %v6224_v24  ;;  %3991 = vmatprep.subr.bf16.mxu0 %v3990_v31 }
 0x4de   :  { %3831 = vmatprep.mubr.msk.f32.mxu1 %vm428_vm1, %v6277_v41 }
 0x4e0   :  { %3993 = vmatpush3.bf16.msra.mxu0 %v3990_v31 }
 0x4e1   :  { %3832 = vmatmul.mubr.msk.f32.gmra.mrb[46].mxu1 %vm428_vm1, %v6256_v18 }
 0x4e2   :  { %3834 = vmatprep.mubr.msk.f32.mxu1 %vm428_vm1, %v6289_v10 }
 0x4e5   :  { %3835 = vmatmul.mubr.msk.f32.gmra.mrb[48].mxu1 %vm428_vm1, %v6287_v0 }
 0x4e6   :  { %3837 = vmatprep.mubr.msk.f32.mxu1 %vm428_vm1, %v6329_v35 }
 0x4e9   :  { %3838 = vmatmul.mubr.msk.f32.gmra.mrb[50].mxu1 %vm428_vm1, %v6319_v51 }
 0x4ea   :  { %3840 = vmatprep.mubr.msk.f32.mxu1 %vm428_vm1, %v2269_v21 }
 0x4ed   :  { %3841 = vmatmul.mubr.msk.f32.gmra.mrb[52].mxu1 %vm428_vm1, %v6333_v30 }
 0x4ee   :  { %3843 = vmatprep.mubr.msk.f32.mxu1 %vm428_vm1, %v2271_v48 }
 0x4f1   :  { %3844 = vmatmul.mubr.msk.f32.gmra.mrb[54].mxu1 %vm428_vm1, %v2272_v34 }
 0x5a8   :  { %v3824_v38 = vpop.f32.mrb[40].mxu1 }
 0x5a9   :  { %v6426_v24 = vadd.f32 %v3824_v38, %v3306_v39  ;;  %v2785_v6 = vpop.f32.mrb[41].mxu1 }
 0x5aa   :  { %v6428_v18 = vadd.f32 %v3306_v39, %v2785_v6 }
 0x5ab   :  { %v2904_v10 = vmax.f32 %v6426_v24, 0.0 }
 0x5ac   :  { %v2903_v41 = vmax.f32 %v6428_v18, 0.0  ;;  %v3827_v0 = vpop.f32.mrb[42].mxu1 }
 0x5ad   :  { %v6432_v49 = vadd.f32 %v3827_v0, %v3306_v39  ;;  %v2795_v47 = vpop.f32.mrb[43].mxu1 }
 0x5ae   :  { %v6434_v33 = vadd.f32 %v3306_v39, %v2795_v47  ;;  %3878 = vmatprep.mubr.f32.mxu0 %v2903_v41 }
 0x5af   :  { %3879 = vmatmul.mubr.f32.vlgmr.msra.gmra.mrb[72].mxu0 %v2904_v10  ;;  %v2906_v56 = vmax.f32 %v6432_v49, 0.0 }
 0x5b0   :  { %v2905_v28 = vmax.f32 %v6434_v33, 0.0  ;;  %v3830_v14 = vpop.f32.mrb[44].mxu1 }
 0x5b1   :  { %v6440_v51 = vadd.f32 %v3830_v14, %v3306_v39  ;;  %v2805_v13 = vpop.f32.mrb[45].mxu1 }
 0x5b2   :  { %v6442_v32 = vadd.f32 %v3306_v39, %v2805_v13  ;;  %3881 = vmatprep.mubr.f32.mxu0 %v2905_v28 }
 0x5b3   :  { %3882 = vmatmul.mubr.f32.gmra.mrb[74].mxu0 %v2906_v56  ;;  %v2908_v59 = vmax.f32 %v6440_v51, 0.0 }
 0x5b4   :  { %v2907_v54 = vmax.f32 %v6442_v32, 0.0  ;;  %v3833_v50 = vpop.f32.mrb[46].mxu1 }
 0x5b5   :  { %v6448_v5 = vadd.f32 %v3833_v50, %v3306_v39  ;;  %v2815_v36 = vpop.f32.mrb[47].mxu1 }
 0x5b6   :  { %v6450_v35 = vadd.f32 %v3306_v39, %v2815_v36  ;;  %3884 = vmatprep.mubr.f32.mxu0 %v2907_v54 }
 0x5b7   :  { %3885 = vmatmul.mubr.f32.gmra.mrb[76].mxu0 %v2908_v59  ;;  %v2910_v37 = vmax.f32 %v6448_v5, 0.0 }
 0x5b8   :  { %v2909_v11 = vmax.f32 %v6450_v35, 0.0  ;;  %v3836_v7 = vpop.f32.mrb[48].mxu1 }
 0x5b9   :  { %v6456_v57 = vadd.f32 %v3836_v7, %v3306_v39  ;;  %v2825_v30 = vpop.f32.mrb[49].mxu1 }
 0x5ba   :  { %v6458_v23 = vadd.f32 %v3306_v39, %v2825_v30  ;;  %3887 = vmatprep.mubr.f32.mxu0 %v2909_v11 }
 0x5bb   :  { %3888 = vmatmul.mubr.f32.gmra.mrb[78].mxu0 %v2910_v37  ;;  %v2912_v9 = vmax.f32 %v6456_v57, 0.0 }
 0x5bc   :  { %v2911_v58 = vmax.f32 %v6458_v23, 0.0  ;;  %v3839_v55 = vpop.f32.mrb[50].mxu1 }
 0x5bd   :  { %v6464_v19 = vadd.f32 %v3839_v55, %v3306_v39  ;;  %v2835_v4 = vpop.f32.mrb[51].mxu1 }
 0x5be   :  { %v6466_v52 = vadd.f32 %v3306_v39, %v2835_v4  ;;  %3890 = vmatprep.mubr.f32.mxu0 %v2911_v58 }
 0x5bf   :  { %3891 = vmatmul.mubr.f32.gmra.mrb[80].mxu0 %v2912_v9  ;;  %v2914_v12 = vmax.f32 %v6464_v19, 0.0 }
 0x5c0   :  { %v2913_v44 = vmax.f32 %v6466_v52, 0.0  ;;  %v3842_v46 = vpop.f32.mrb[52].mxu1 }
 0x5c1   :  { %v6472_v25 = vadd.f32 %v3842_v46, %v3306_v39  ;;  %v2845_v21 = vpop.f32.mrb[53].mxu1 }
 0x5c2   :  { %v6474_v45 = vadd.f32 %v3306_v39, %v2845_v21  ;;  %3893 = vmatprep.mubr.f32.mxu0 %v2913_v44 }
 0x5c3   :  { %3894 = vmatmul.mubr.f32.gmra.mrb[82].mxu0 %v2914_v12  ;;  %v2916_v27 = vmax.f32 %v6472_v25, 0.0 }
 0x5c4   :  { %v2915_v63 = vmax.f32 %v6474_v45, 0.0  ;;  %v3845_v34 = vpop.f32.mrb[54].mxu1 }
 0x5c5   :  { %v6480_v8 = vadd.f32 %v3845_v34, %v3306_v39  ;;  %v2855_v60 = vpop.f32.mrb[55].mxu1 }
 0x5c6   :  { %v6482_v40 = vadd.f32 %v3306_v39, %v2855_v60  ;;  %3896 = vmatprep.mubr.f32.mxu0 %v2915_v63 }
 0x5c7   :  { %3897 = vmatmul.mubr.f32.gmra.mrb[84].mxu0 %v2916_v27  ;;  %v2918_v15 = vmax.f32 %v6480_v8, 0.0 }
 0x5c8   :  { %v2917_v61 = vmax.f32 %v6482_v40, 0.0 }
 0x5ca   :  { %3899 = vmatprep.mubr.f32.mxu0 %v2917_v61 }
 0x5cb   :  { %3900 = vmatmul.mubr.f32.gmra.mrb[86].mxu0 %v2918_v15 }
 0x682   :  { %v3880_v48 = vpop.f32.mrb[72].mxu0 }
 0x683   :  { %v3081_v20 = vadd.f32 %v3880_v48, %v2904_v10  ;;  %v3001_v62 = vpop.f32.mrb[73].mxu0 }
 0x684   :  { %v3080_v29 = vadd.f32 %v3001_v62, %v2903_v41 }
 0x685   :  { %v3104_v42 = vadd.f32 %v6493_v22, %v3081_v20 }
 0x686   :  { %v3103_v26 = vadd.f32 %v6493_v22, %v3080_v29  ;;  %v3883_v53 = vpop.f32.mrb[74].mxu0 }
 0x687   :  { %3120 = vst [vmem:[#allocation16 + $0x8] sm:$0xff] %v3104_v42  ;;  %v3083_v2 = vadd.f32 %v3883_v53, %v2906_v56  ;;  %v3011_v16 = vpop.f32.mrb[75].mxu0 }
 0x688   :  { %3119 = vst [vmem:[#allocation16] sm:$0xff] %v3103_v26  ;;  %v3082_v1 = vadd.f32 %v3011_v16, %v2905_v28 }
 0x689   :  { %v3106_v3 = vadd.f32 %v6493_v22, %v3083_v2 }
 0x68a   :  { %v3105_v17 = vadd.f32 %v6493_v22, %v3082_v1  ;;  %v3886_v43 = vpop.f32.mrb[76].mxu0 }
 0x68b   :  { %3122 = vst [vmem:[#allocation16 + $0x18] sm:$0xff] %v3106_v3  ;;  %v3085_v31 = vadd.f32 %v3886_v43, %v2908_v59  ;;  %v3021_v39 = vpop.f32.mrb[77].mxu0 }
 0x68c   :  { %3121 = vst [vmem:[#allocation16 + $0x10] sm:$0xff] %v3105_v17  ;;  %v3084_v38 = vadd.f32 %v3021_v39, %v2907_v54 }
 0x68d   :  { %v3108_v24 = vadd.f32 %v6493_v22, %v3085_v31 }
 0x68e   :  { %v3107_v6 = vadd.f32 %v6493_v22, %v3084_v38  ;;  %v3889_v18 = vpop.f32.mrb[78].mxu0 }
 0x68f   :  { %3124 = vst [vmem:[#allocation16 + $0x28] sm:$0xff] %v3108_v24  ;;  %v3087_v41 = vadd.f32 %v3889_v18, %v2910_v37  ;;  %v3031_v0 = vpop.f32.mrb[79].mxu0 }
 0x690   :  { %3123 = vst [vmem:[#allocation16 + $0x20] sm:$0xff] %v3107_v6  ;;  %v3086_v10 = vadd.f32 %v3031_v0, %v2909_v11 }
 0x691   :  { %v3110_v49 = vadd.f32 %v6493_v22, %v3087_v41 }
 0x692   :  { %v3109_v47 = vadd.f32 %v6493_v22, %v3086_v10  ;;  %v3892_v33 = vpop.f32.mrb[80].mxu0 }
 0x693   :  { %3126 = vst [vmem:[#allocation16 + $0x38] sm:$0xff] %v3110_v49  ;;  %v3089_v28 = vadd.f32 %v3892_v33, %v2912_v9  ;;  %v3041_v14 = vpop.f32.mrb[81].mxu0 }
 0x694   :  { %3125 = vst [vmem:[#allocation16 + $0x30] sm:$0xff] %v3109_v47  ;;  %v3088_v56 = vadd.f32 %v3041_v14, %v2911_v58 }
 0x695   :  { %v3112_v51 = vadd.f32 %v6493_v22, %v3089_v28 }
 0x696   :  { %v3111_v13 = vadd.f32 %v6493_v22, %v3088_v56  ;;  %v3895_v32 = vpop.f32.mrb[82].mxu0 }
 0x697   :  { %3128 = vst [vmem:[#allocation16 + $0x48] sm:$0xff] %v3112_v51  ;;  %v3091_v54 = vadd.f32 %v3895_v32, %v2914_v12  ;;  %v3051_v50 = vpop.f32.mrb[83].mxu0 }
 0x698   :  { %3127 = vst [vmem:[#allocation16 + $0x40] sm:$0xff] %v3111_v13  ;;  %v3090_v59 = vadd.f32 %v3051_v50, %v2913_v44 }
 0x699   :  { %v3114_v5 = vadd.f32 %v6493_v22, %v3091_v54 }
 0x69a   :  { %v3113_v36 = vadd.f32 %v6493_v22, %v3090_v59  ;;  %v3898_v35 = vpop.f32.mrb[84].mxu0 }
 0x69b   :  { %3130 = vst [vmem:[#allocation16 + $0x58] sm:$0xff] %v3114_v5  ;;  %v3093_v11 = vadd.f32 %v3898_v35, %v2916_v27  ;;  %v3061_v7 = vpop.f32.mrb[85].mxu0 }
 0x69c   :  { %3129 = vst [vmem:[#allocation16 + $0x50] sm:$0xff] %v3113_v36  ;;  %v3092_v37 = vadd.f32 %v3061_v7, %v2915_v63 }
 0x69d   :  { %v3116_v57 = vadd.f32 %v6493_v22, %v3093_v11 }
 0x69e   :  { %v3115_v30 = vadd.f32 %v6493_v22, %v3092_v37  ;;  %v3901_v23 = vpop.f32.mrb[86].mxu0 }
 0x69f   :  { %3132 = vst [vmem:[#allocation16 + $0x68] sm:$0xff] %v3116_v57  ;;  %v3095_v58 = vadd.f32 %v3901_v23, %v2918_v15  ;;  %v3071_v55 = vpop.f32.mrb[87].mxu0 }
 0x6a0   :  { %3131 = vst [vmem:[#allocation16 + $0x60] sm:$0xff] %v3115_v30  ;;  %v3094_v9 = vadd.f32 %v3071_v55, %v2917_v61 }
 0x6a1   :  { %v3118_v19 = vadd.f32 %v6493_v22, %v3095_v58 }
 0x6a2   :  { %v3117_v4 = vadd.f32 %v6493_v22, %v3094_v9 }
 0x6a3   :  { %3134 = vst [vmem:[#allocation16 + $0x78] sm:$0xff] %v3118_v19 }
 0x6a4   :  { %3133 = vst [vmem:[#allocation16 + $0x70] sm:$0xff] %v3117_v4 }
 0x6a5   :  { %4253 = shalt.err (!%p4250_p12)
}
 0x6a6   :  { %s7056_s1 = sld [smem:[#allocation163_spill]] }
 0x6ac   :  { %s4254_s19 = scalar_lea.hbm %s7056_s1, 2048 }
 0x6ad   :  { %p4255_p13 = scmp.ne.s32.totalorder %s7056_s1, %s4254_s19  ;;  %p4258_p0 = scmp.lt.u32.totalorder %s4254_s19, %s7056_s1 }
 0x6af   :  { %p4260_p1 = pnand %p4258_p0, %p4255_p13 }
 0x6b1   :  { %4263 = shalt.err (!%p4260_p1)
}
 0x6b2   :  { %s7057_s20 = smov 128  }
 0x6b3   :  { %3146 = dma.vmem_to_hbm [thread:$0]  %s3141_s21, 2048, %s7056_s1, [#allocation4], %s7057_s20, %s7057_s20, %s4278_s30  }
 0x6b4   :  { %4274 = dma.done.wait [#allocation4], 2048  }
 0x6b5   :  { %4275 = vsyncadd [#allocation4], 4294965248 }
 0x6b6   :  { %3150 = vsyncpa [#allocation3], 1 }
 0x6b7   :  { %3151 = vsyncpa [#allocation6], 1 }
 0x6b8   :  { %3152 = vsyncpa [#allocation9], 1 }
 0x6b9   :  { %3153 = vsyncpa [#allocation12], 1 }
 0x6ba   :  { %3154 = vsyncpa [#allocation15], 1 }
 0x6bb   :  { %3155 = vsyncpa [#allocation4], 1 }

</bundles_post_ra>
